<compile_context>
chip_gen: v6e
topology: v6e:2x2x1
jax: 0.10.0
libtpu: 0.0.40
codegen_flags: <defaults>
</compile_context>

<pallas_src>
import functools
import math

import jax
import jax.numpy as jnp
from jax import lax
from jax.experimental import pallas as pl
from jax.experimental.pallas import tpu as pltpu

# ------------------------------- model dims --------------------------------
D_MODEL = 80
FFN_DIM = 256
N_HEAD = 2
N_SPEAKERS = 600
N_LAYERS = 4
DW_KERNEL = 31
LN_EPS = 1e-5
BN_EPS = 1e-5
NEG_INF = -1e9

# padded (lane-dense) dims
DP = 128                      # d_model padded to lane width
HP = 64                       # per-head dim padded (40 -> 64); N_HEAD * HP == DP
FP = 128                      # mel features padded (40 -> 128)
NSP = 640                     # speaker logits padded (600 -> 640)

# bf16 MXU operands (f32 accumulation).  Use jnp.float32 for exact torch parity.
MATMUL_DTYPE = jnp.bfloat16
APPROX_RECIP = True           # softmax denominators via EUP approx reciprocal


def _sigmoid(x):
    return 1.0 / (1.0 + jnp.exp(-x))


# order of the stacked per-layer parameters (leading axis = layer index)
LAYER_PARAM_ORDER = (
    "ffn1_ln_g", "ffn1_ln_b", "ffn1_w1", "ffn1_b1", "ffn1_w2", "ffn1_b2",
    "attn_ln_g", "attn_ln_b", "attn_in_w", "attn_in_b", "attn_out_w", "attn_out_b",
    "conv_ln_g", "conv_ln_b", "pw1_w", "pw1_b",
    "dw_w", "bn_scale", "bn_shift", "pw2_w", "pw2_b",
    "ffn2_ln_g", "ffn2_ln_b", "ffn2_w1", "ffn2_b1", "ffn2_w2", "ffn2_b2",
    "fin_ln_g", "fin_ln_b",
)


# ---------------------------------------------------------------------------
# Fused kernel: projector + 4 Conformer layers + attentive pooling.
# grid = (B, N_LAYERS); activation resident in VMEM scratch across the layer axis.
# ---------------------------------------------------------------------------
def _fused_encoder_kernel(
        mels_ref, bias_ref, proj_w, proj_b,
        ffn1_ln_g, ffn1_ln_b, ffn1_w1, ffn1_b1, ffn1_w2, ffn1_b2,
        attn_ln_g, attn_ln_b, attn_in_w, attn_in_b, attn_out_w, attn_out_b,
        conv_ln_g, conv_ln_b, pw1_w, pw1_b,
        dw_w, bn_scale, bn_shift, pw2_w, pw2_b,
        ffn2_ln_g, ffn2_ln_b, ffn2_w1, ffn2_b1, ffn2_w2, ffn2_b2,
        fin_ln_g, fin_ln_b,
        pool_w, pool_b,
        pooled_ref,
        act, conv_buf,
        *, n_head, head_pad, d_valid, ksize):
    l = pl.program_id(1)
    n_l = pl.num_programs(1)
    T, D = act.shape
    pad = (ksize - 1) // 2

    lane = lax.broadcasted_iota(jnp.int32, (1, D), 1)
    feat_mask = (lane < d_valid).astype(jnp.float32)     # valid-feature lanes
    inv_d = jnp.float32(1.0 / d_valid)

    def recip(v):
        if APPROX_RECIP:
            return pl.reciprocal(v, approx=True)
        return 1.0 / v

    def layer_norm(v, g_ref, b_ref):
        # statistics over the d_valid real features only (padded lanes are 0)
        mean = jnp.sum(v, axis=-1, keepdims=True) * inv_d
        dv = (v - mean) * feat_mask
        var = jnp.sum(dv * dv, axis=-1, keepdims=True) * inv_d
        return dv * lax.rsqrt(var + LN_EPS) * g_ref[0] + b_ref[0]

    def matmul(a, w_ref, b_ref):
        # stacked weights: ref block is (1, in, out); weights stored MATMUL_DTYPE
        return jnp.dot(a.astype(MATMUL_DTYPE), w_ref[0],
                       preferred_element_type=jnp.float32) + b_ref[0]

    def feed_forward(v, ln_g, ln_b, w1, b1, w2, b2):
        h = layer_norm(v, ln_g, ln_b)
        h = matmul(h, w1, b1)
        h = h * _sigmoid(h)                               # SiLU
        return matmul(h, w2, b2)

    # ---- layer 0: projector Linear(40 -> d_model) initializes the resident
    #      activation; conv padding rows are zeroed once per batch element ----
    @pl.when(l == 0)
    def _():
        x0 = jnp.dot(mels_ref[0].astype(MATMUL_DTYPE), proj_w[...],
                     preferred_element_type=jnp.float32) + proj_b[...]
        act[...] = x0
        zpad = jnp.zeros((pad, D), jnp.float32)
        conv_buf[pl.ds(0, pad), :] = zpad
        conv_buf[pl.ds(pad + T, pad), :] = zpad

    x = act[...]                                          # (T, DP) f32

    # ---- FFN1 (half-step residual) --------------------------------------
    x = x + 0.5 * feed_forward(x, ffn1_ln_g, ffn1_ln_b,
                               ffn1_w1, ffn1_b1, ffn1_w2, ffn1_b2)

    # ---- Multi-head self attention (both heads via lane masks) ----------
    h = layer_norm(x, attn_ln_g, attn_ln_b)
    qkv = matmul(h, attn_in_w, attn_in_b)                 # (T, 3*DP); q pre-scaled
    q = qkv[:, 0:D]
    k = qkv[:, D:2 * D]
    v = qkv[:, 2 * D:3 * D]
    bias = bias_ref[0]                                    # (1, T) key-padding bias
    attn_out = None
    for hh in range(n_head):                              # static unroll (2 heads)
        hm = ((lane >= hh * head_pad) &
              (lane < (hh + 1) * head_pad)).astype(jnp.float32)
        # masking q alone restricts the contraction to this head's lanes
        s = lax.dot_general((q * hm).astype(MATMUL_DTYPE), k.astype(MATMUL_DTYPE),
                            (((1,), (1,)), ((), ())),
                            preferred_element_type=jnp.float32)   # (T, T)
        s = s + bias
        s = s - jnp.max(s, axis=-1, keepdims=True)
        p = jnp.exp(s)
        p = p * recip(jnp.sum(p, axis=-1, keepdims=True))
        oh = jnp.dot(p.astype(MATMUL_DTYPE), (v * hm).astype(MATMUL_DTYPE),
                     preferred_element_type=jnp.float32)
        attn_out = oh if attn_out is None else attn_out + oh
    x = x + matmul(attn_out, attn_out_w, attn_out_b)

    # ---- Convolution module (LN -> pw(GLU) -> dwconv -> BN -> SiLU -> pw) ---
    h = layer_norm(x, conv_ln_g, conv_ln_b)
    ab = matmul(h, pw1_w, pw1_b)                          # (T, 2*DP) fused pointwise
    h = ab[:, 0:D] * _sigmoid(ab[:, D:2 * D])             # GLU, lane-128 split = free
    conv_buf[pl.ds(pad, T), :] = h
    w_dw = dw_w[0]                                        # (ksize, DP) f32
    acc = conv_buf[pl.ds(0, T), :] * w_dw[0:1, :]         # init from tap 0
    for kk in range(1, ksize):                            # static unroll
        acc = acc + conv_buf[pl.ds(kk, T), :] * w_dw[kk:kk + 1, :]
    acc = acc * bn_scale[0] + bn_shift[0]                 # dw bias folded into shift
    acc = acc * _sigmoid(acc)                             # SiLU
    x = x + matmul(acc, pw2_w, pw2_b)

    # ---- FFN2 (half-step residual) + final LayerNorm --------------------
    x = x + 0.5 * feed_forward(x, ffn2_ln_g, ffn2_ln_b,
                               ffn2_w1, ffn2_b1, ffn2_w2, ffn2_b2)
    x = layer_norm(x, fin_ln_g, fin_ln_b)
    act[...] = x

    # ---- after the last layer: attentive pooling over time --------------
    @pl.when(l == n_l - 1)
    def _():
        logit = jnp.sum(x * pool_w[...], axis=-1, keepdims=True) + pool_b[...]
        logit = logit - jnp.max(logit, axis=0, keepdims=True)
        wgt = jnp.exp(logit)
        wgt = wgt * recip(jnp.sum(wgt, axis=0, keepdims=True))  # softmax over time
        pooled_ref[...] = jnp.sum(wgt * x, axis=0, keepdims=True)[None]   # (1,1,DP)


def _bcast2_spec(a):
    """Full-array block, same block at every grid step (shared weights)."""
    nd = a.ndim
    return pl.BlockSpec(a.shape, lambda b, l: (0,) * nd)


def _layer_spec(a):
    """Stacked per-layer weight: select the l-th slice."""
    nd = a.ndim
    return pl.BlockSpec((1,) + a.shape[1:], lambda b, l: (l,) + (0,) * (nd - 1))


def fused_encoder(mels_p, attn_bias, kp):
    B, T, F = mels_p.shape
    stacked = [kp["stacked"][name] for name in LAYER_PARAM_ORDER]
    kernel = functools.partial(
        _fused_encoder_kernel,
        n_head=N_HEAD, head_pad=HP, d_valid=D_MODEL, ksize=DW_KERNEL)

    # explicit VMEM budget: 2x (double-buffered) per-layer weights + activation
    # scratch + conv buffer + (T,T) score temporaries + headroom
    layer_bytes = sum(math.prod(w.shape) * w.dtype.itemsize
                      for w in stacked) // N_LAYERS
    vmem_bytes = int(max(32 * 1024 * 1024,
                         2 * layer_bytes + 16 * T * DP * 4 + 8 * T * T * 4
                         + (8 << 20)))

    pooled = pl.pallas_call(
        kernel,
        out_shape=jax.ShapeDtypeStruct((B, 1, DP), jnp.float32),
        grid=(B, N_LAYERS),
        in_specs=[pl.BlockSpec((1, T, F), lambda b, l: (b, 0, 0)),
                  pl.BlockSpec((1, 1, T), lambda b, l: (b, 0, 0)),
                  _bcast2_spec(kp["proj_w"]), _bcast2_spec(kp["proj_b"])]
                 + [_layer_spec(w) for w in stacked]
                 + [_bcast2_spec(kp["pool_w"]), _bcast2_spec(kp["pool_b"])],
        out_specs=pl.BlockSpec((1, 1, DP), lambda b, l: (b, 0, 0)),
        scratch_shapes=[pltpu.VMEM((T, DP), jnp.float32),                 # activation
                        pltpu.VMEM((T + DW_KERNEL - 1, DP), jnp.float32)],  # conv pad buf
        compiler_params=pltpu.CompilerParams(
            dimension_semantics=("parallel", "arbitrary"),
            vmem_limit_bytes=vmem_bytes),
    )(mels_p, attn_bias, kp["proj_w"], kp["proj_b"], *stacked,
      kp["pool_w"], kp["pool_b"])
    return pooled.reshape(B, DP)


# ---------------------------------------------------------------------------
# Classification head: fc0 + sigmoid + fc1, ONCE over the whole batch.
# ---------------------------------------------------------------------------
def _head_kernel(p_ref, fc0_w, fc0_b, fc1_w, fc1_b, o_ref):
    h = jnp.dot(p_ref[...].astype(MATMUL_DTYPE), fc0_w[...],
                preferred_element_type=jnp.float32) + fc0_b[...]
    h = _sigmoid(h)
    o_ref[...] = jnp.dot(h.astype(MATMUL_DTYPE), fc1_w[...],
                         preferred_element_type=jnp.float32) + fc1_b[...]


def head(pooled, kp):
    B = pooled.shape[0]
    return pl.pallas_call(
        _head_kernel,
        out_shape=jax.ShapeDtypeStruct((B, NSP), jnp.float32),
        compiler_params=pltpu.CompilerParams(
            vmem_limit_bytes=16 * 1024 * 1024),
    )(pooled, kp["fc0_w"], kp["fc0_b"], kp["fc1_w"], kp["fc1_b"])


# ---------------------------------------------------------------------------
# One-time parameter preparation: pad to lane multiples, pre-transpose
# (torch Linear is (out,in)), rearrange attention heads into 64-lane slots,
# fold 1/sqrt(head_dim) into q projection, fuse the GLU pointwise weights,
# fold eval-mode BatchNorm (+ depthwise bias) into a scale/shift, stack the
# per-layer params along a leading layer axis, cast matmul weights to
# MATMUL_DTYPE.  Padded gammas/biases are zero so padded lanes stay exactly
# zero through the whole network.
# ---------------------------------------------------------------------------
def prepare_params(p):
    f32 = jnp.float32
    hd = D_MODEL // N_HEAD                                # 40
    q_scale = 1.0 / math.sqrt(hd)

    def pad2(w, rows, cols):
        w = w.astype(f32)
        return jnp.pad(w, ((0, rows - w.shape[0]), (0, cols - w.shape[1])))

    def padrow(v, n):
        return jnp.pad(v.astype(f32), (0, n - v.shape[0])).reshape(1, n)

    def lin_t(w, b, in_pad, out_pad):
        """torch Linear (out,in) -> pre-transposed (in_pad,out_pad), (1,out_pad)."""
        return pad2(w, out_pad, in_pad).T, padrow(b, out_pad)

    def head_pad_rows(m):
        """(D_MODEL, C) rows in concat-head order -> (DP, C), head h at h*HP."""
        out = jnp.zeros((DP,) + m.shape[1:], f32)
        for h in range(N_HEAD):
            out = out.at[h * HP:h * HP + hd].set(m[h * hd:(h + 1) * hd].astype(f32))
        return out

    def prep_layer(lp):
        o = {}
        for name, d in (("ffn1", lp["ffn1"]), ("ffn2", lp["ffn2"])):
            o[name + "_ln_g"] = padrow(d["ln_g"], DP)
            o[name + "_ln_b"] = padrow(d["ln_b"], DP)
            o[name + "_w1"], o[name + "_b1"] = lin_t(d["w1"], d["b1"], DP, FFN_DIM)
            o[name + "_w2"], o[name + "_b2"] = lin_t(d["w2"], d["b2"], FFN_DIM, DP)
        o["attn_ln_g"] = padrow(lp["attn_ln_g"], DP)
        o["attn_ln_b"] = padrow(lp["attn_ln_b"], DP)
        at = lp["attn"]
        ws, bs = [], []
        for j in range(3):                                # q, k, v
            wj = head_pad_rows(at["in_w"][j * D_MODEL:(j + 1) * D_MODEL, :])
            wj = jnp.pad(wj, ((0, 0), (0, DP - D_MODEL)))  # (DP, DP)
            bj = head_pad_rows(at["in_b"][j * D_MODEL:(j + 1) * D_MODEL, None])[:, 0]
            if j == 0:                                    # fold attention scale into q
                wj = wj * q_scale
                bj = bj * q_scale
            ws.append(wj.T)                               # (in, out)
            bs.append(bj)
        o["attn_in_w"] = jnp.concatenate(ws, axis=1)      # (DP, 3*DP)
        o["attn_in_b"] = jnp.concatenate(bs).reshape(1, 3 * DP)
        ow = head_pad_rows(at["out_w"].T)                 # (DP_in_new, D_MODEL)
        o["attn_out_w"] = jnp.pad(ow, ((0, 0), (0, DP - D_MODEL)))
        o["attn_out_b"] = padrow(at["out_b"], DP)
        cv = lp["conv"]
        o["conv_ln_g"] = padrow(cv["ln_g"], DP)
        o["conv_ln_b"] = padrow(cv["ln_b"], DP)
        # fused GLU pointwise: [value | gate] -> one (DP, 2*DP) matmul
        wa, ba = lin_t(cv["pw1_w"][:D_MODEL], cv["pw1_b"][:D_MODEL], DP, DP)
        wg, bg = lin_t(cv["pw1_w"][D_MODEL:], cv["pw1_b"][D_MODEL:], DP, DP)
        o["pw1_w"] = jnp.concatenate([wa, wg], axis=1)    # (DP, 2*DP)
        o["pw1_b"] = jnp.concatenate([ba, bg], axis=1)    # (1, 2*DP)
        o["dw_w"] = pad2(cv["dw_w"], DW_KERNEL, DP)       # (K, DP)
        bn_scale = cv["bn_g"] / jnp.sqrt(cv["bn_var"] + BN_EPS)
        bn_shift = cv["bn_b"] + (cv["dw_b"] - cv["bn_mean"]) * bn_scale  # dw bias folded
        o["bn_scale"] = padrow(bn_scale, DP)
        o["bn_shift"] = padrow(bn_shift, DP)
        o["pw2_w"], o["pw2_b"] = lin_t(cv["pw2_w"], cv["pw2_b"], DP, DP)
        o["fin_ln_g"] = padrow(lp["final_ln_g"], DP)
        o["fin_ln_b"] = padrow(lp["final_ln_b"], DP)
        return o

    layers = [prep_layer(lp) for lp in p["layers"]]
    mm_keys = {"ffn1_w1", "ffn1_w2", "ffn2_w1", "ffn2_w2",
               "attn_in_w", "attn_out_w", "pw1_w", "pw2_w"}
    stacked = {}
    for name in LAYER_PARAM_ORDER:
        s = jnp.stack([lyr[name] for lyr in layers], axis=0)
        if name in mm_keys:
            s = s.astype(MATMUL_DTYPE)                    # bf16 weight storage
        stacked[name] = s

    proj_w, proj_b = lin_t(p["projector"]["w"], p["projector"]["b"], FP, DP)
    fc0_w, fc0_b = lin_t(p["fc0"]["w"], p["fc0"]["b"], DP, DP)
    fc1_w, fc1_b = lin_t(p["fc1"]["w"], p["fc1"]["b"], DP, NSP)
    return {
        "proj_w": proj_w.astype(MATMUL_DTYPE), "proj_b": proj_b,
        "stacked": stacked,
        "pool_w": padrow(p["pooling"]["w"][0], DP),
        "pool_b": p["pooling"]["b"].astype(f32).reshape(1, 1),
        "fc0_w": fc0_w.astype(MATMUL_DTYPE), "fc0_b": fc0_b,
        "fc1_w": fc1_w.astype(MATMUL_DTYPE), "fc1_b": fc1_b,
    }


# ---------------------------------------------------------------------------
# Forward pass
# ---------------------------------------------------------------------------
def classifier_forward(kp, mels, lengths):
    """mels: (B, T, 40) float32; lengths: (B,) int32 -> (B, N_SPEAKERS)."""
    B, T, F = mels.shape
    mels_p = jnp.pad(mels.astype(jnp.float32), ((0, 0), (0, 0), (0, FP - F)))

    # torchaudio key_padding_mask -> additive bias on attention scores (keys only)
    attn_bias = jnp.where(jnp.arange(T)[None, :] >= lengths[:, None],
                          jnp.float32(NEG_INF), jnp.float32(0.0)).reshape(B, 1, T)

    pooled = fused_encoder(mels_p, attn_bias, kp)         # (B, DP)
    logits_p = head(pooled, kp)                           # (B, NSP)
    # normalize=False (module default): raw fc1 logits; strip lane padding.
    return logits_p[:, :N_SPEAKERS]


# ---------------------------------------------------------------------------
# Deterministic synthetic parameter init (shapes follow the PyTorch module)
# ---------------------------------------------------------------------------
def init_params(key, d_model=D_MODEL, ffn=FFN_DIM, n_speakers=N_SPEAKERS,
                n_layers=N_LAYERS, ksize=DW_KERNEL):
    keys = iter(jax.random.split(key, 512))

    def nrm(shape, scale=0.05):
        return scale * jax.random.normal(next(keys), shape, jnp.float32)

    def ffn_params():
        return {"ln_g": 1.0 + nrm((d_model,)), "ln_b": nrm((d_model,)),
                "w1": nrm((ffn, d_model)), "b1": nrm((ffn,)),
                "w2": nrm((d_model, ffn)), "b2": nrm((d_model,))}

    def layer_params():
        return {
            "ffn1": ffn_params(),
            "attn_ln_g": 1.0 + nrm((d_model,)), "attn_ln_b": nrm((d_model,)),
            "attn": {"in_w": nrm((3 * d_model, d_model)), "in_b": nrm((3 * d_model,)),
                     "out_w": nrm((d_model, d_model)), "out_b": nrm((d_model,))},
            "conv": {"ln_g": 1.0 + nrm((d_model,)), "ln_b": nrm((d_model,)),
                     "pw1_w": nrm((2 * d_model, d_model)), "pw1_b": nrm((2 * d_model,)),
                     "dw_w": nrm((ksize, d_model)), "dw_b": nrm((d_model,)),
                     "bn_g": 1.0 + nrm((d_model,)), "bn_b": nrm((d_model,)),
                     "bn_mean": nrm((d_model,)),
                     "bn_var": 1.0 + jnp.abs(nrm((d_model,))),
                     "pw2_w": nrm((d_model, d_model)), "pw2_b": nrm((d_model,))},
            "ffn2": ffn_params(),
            "final_ln_g": 1.0 + nrm((d_model,)), "final_ln_b": nrm((d_model,)),
        }

    return {
        "projector": {"w": nrm((d_model, 40)), "b": nrm((d_model,))},
        "layers": [layer_params() for _ in range(n_layers)],
        "pooling": {"w": nrm((1, d_model)), "b": nrm((1,))},
        "fc0": {"w": nrm((d_model, d_model)), "b": nrm((d_model,))},
        "fc1": {"w": nrm((n_speakers, d_model)), "b": nrm((n_speakers,))},
    }


if __name__ == "__main__":
    B, T = 2, 16
    k_mels, _ = jax.random.split(jax.random.PRNGKey(0))
    mels = jax.random.normal(k_mels, (B, T, 40), jnp.float32)
    lengths = jnp.array([T, T - 3], dtype=jnp.int32)   # batch 1 has padded frames

    torch_layout_params = init_params(jax.random.PRNGKey(42))
    kparams = prepare_params(torch_layout_params)      # pad/transpose/fold/stack ONCE

    fwd = jax.jit(classifier_forward)
    out = jax.block_until_ready(fwd(kparams, mels, lengths))

    assert out.shape == (B, N_SPEAKERS), out.shape
    assert bool(jnp.all(jnp.isfinite(out)))
    print("KERNEL_OK")
</pallas_src>

<mosaic_0001>
module attributes {stable_mosaic.version = 11 : i64} {
  func.func @_head_kernel(%arg0: memref<2x128xf32, #tpu.memory_space<vmem>>, %arg1: memref<128x128xbf16, #tpu.memory_space<vmem>>, %arg2: memref<1x128xf32, #tpu.memory_space<vmem>>, %arg3: memref<128x640xbf16, #tpu.memory_space<vmem>>, %arg4: memref<1x640xf32, #tpu.memory_space<vmem>>, %arg5: memref<2x640xf32, #tpu.memory_space<vmem>>) attributes {dimension_semantics = [], scalar_prefetch = 0 : i64, scratch_operands = 0 : i64, tpu.core_type = #tpu.core_type<tc>} {
    %c0 = arith.constant 0 : index
    %c0_0 = arith.constant 0 : index
    %0 = vector.load %arg0[%c0, %c0_0] : memref<2x128xf32, #tpu.memory_space<vmem>>, vector<2x128xf32>
    %1 = arith.truncf %0 : vector<2x128xf32> to vector<2x128xbf16>
    %c0_1 = arith.constant 0 : index
    %c0_2 = arith.constant 0 : index
    %2 = vector.load %arg1[%c0_1, %c0_2] : memref<128x128xbf16, #tpu.memory_space<vmem>>, vector<128x128xbf16>
    %cst = arith.constant dense<0.000000e+00> : vector<2x128xf32>
    %3 = tpu.matmul %1, %2, %cst {dimension_numbers = #tpu.dot_dimension_numbers<[1], [0], [0], [1], [0, 0, 1, 1], [], []>} : vector<2x128xbf16>, vector<128x128xbf16>, vector<2x128xf32> -> vector<2x128xf32>
    %c0_3 = arith.constant 0 : index
    %c0_4 = arith.constant 0 : index
    %4 = vector.load %arg2[%c0_3, %c0_4] : memref<1x128xf32, #tpu.memory_space<vmem>>, vector<1x128xf32>
    %5 = vector.broadcast %4 : vector<1x128xf32> to vector<2x128xf32>
    %6 = arith.addf %3, %5 : vector<2x128xf32>
    %cst_5 = arith.constant 0.000000e+00 : f32
    %7 = vector.broadcast %cst_5 : f32 to vector<2x128xf32>
    %8 = arith.subf %7, %6 : vector<2x128xf32>
    %9 = math.exp %8 : vector<2x128xf32>
    %cst_6 = arith.constant 1.000000e+00 : f32
    %10 = vector.broadcast %cst_6 : f32 to vector<2x128xf32>
    %11 = arith.addf %10, %9 : vector<2x128xf32>
    %cst_7 = arith.constant 1.000000e+00 : f32
    %12 = vector.broadcast %cst_7 : f32 to vector<2x128xf32>
    %13 = arith.divf %12, %11 : vector<2x128xf32>
    %14 = arith.truncf %13 : vector<2x128xf32> to vector<2x128xbf16>
    %c0_8 = arith.constant 0 : index
    %c0_9 = arith.constant 0 : index
    %15 = vector.load %arg3[%c0_8, %c0_9] : memref<128x640xbf16, #tpu.memory_space<vmem>>, vector<128x640xbf16>
    %cst_10 = arith.constant dense<0.000000e+00> : vector<2x640xf32>
    %16 = tpu.matmul %14, %15, %cst_10 {dimension_numbers = #tpu.dot_dimension_numbers<[1], [0], [0], [1], [0, 0, 1, 1], [], []>} : vector<2x128xbf16>, vector<128x640xbf16>, vector<2x640xf32> -> vector<2x640xf32>
    %c0_11 = arith.constant 0 : index
    %c0_12 = arith.constant 0 : index
    %17 = vector.load %arg4[%c0_11, %c0_12] : memref<1x640xf32, #tpu.memory_space<vmem>>, vector<1x640xf32>
    %18 = vector.broadcast %17 : vector<1x640xf32> to vector<2x640xf32>
    %19 = arith.addf %16, %18 : vector<2x640xf32>
    %c0_13 = arith.constant 0 : index
    %c0_14 = arith.constant 0 : index
    %20 = vector.load %arg5[%c0_13, %c0_14] : memref<2x640xf32, #tpu.memory_space<vmem>>, vector<2x640xf32>
    tpu.vector_store %arg5[%c0_13, %c0_14], %19 {strides = array<i32>} : memref<2x640xf32, #tpu.memory_space<vmem>>, vector<2x640xf32>,
    return
  }
}

module attributes {stable_mosaic.version = 11 : i64} {
  func.func @_fused_encoder_kernel(%arg0: i32, %arg1: i32, %arg2: memref<1x16x128xf32, #tpu.memory_space<vmem>>, %arg3: memref<1x1x16xf32, #tpu.memory_space<vmem>>, %arg4: memref<128x128xbf16, #tpu.memory_space<vmem>>, %arg5: memref<1x128xf32, #tpu.memory_space<vmem>>, %arg6: memref<1x1x128xf32, #tpu.memory_space<vmem>>, %arg7: memref<1x1x128xf32, #tpu.memory_space<vmem>>, %arg8: memref<1x128x256xbf16, #tpu.memory_space<vmem>>, %arg9: memref<1x1x256xf32, #tpu.memory_space<vmem>>, %arg10: memref<1x256x128xbf16, #tpu.memory_space<vmem>>, %arg11: memref<1x1x128xf32, #tpu.memory_space<vmem>>, %arg12: memref<1x1x128xf32, #tpu.memory_space<vmem>>, %arg13: memref<1x1x128xf32, #tpu.memory_space<vmem>>, %arg14: memref<1x128x384xbf16, #tpu.memory_space<vmem>>, %arg15: memref<1x1x384xf32, #tpu.memory_space<vmem>>, %arg16: memref<1x128x128xbf16, #tpu.memory_space<vmem>>, %arg17: memref<1x1x128xf32, #tpu.memory_space<vmem>>, %arg18: memref<1x1x128xf32, #tpu.memory_space<vmem>>, %arg19: memref<1x1x128xf32, #tpu.memory_space<vmem>>, %arg20: memref<1x128x256xbf16, #tpu.memory_space<vmem>>, %arg21: memref<1x1x256xf32, #tpu.memory_space<vmem>>, %arg22: memref<1x31x128xf32, #tpu.memory_space<vmem>>, %arg23: memref<1x1x128xf32, #tpu.memory_space<vmem>>, %arg24: memref<1x1x128xf32, #tpu.memory_space<vmem>>, %arg25: memref<1x128x128xbf16, #tpu.memory_space<vmem>>, %arg26: memref<1x1x128xf32, #tpu.memory_space<vmem>>, %arg27: memref<1x1x128xf32, #tpu.memory_space<vmem>>, %arg28: memref<1x1x128xf32, #tpu.memory_space<vmem>>, %arg29: memref<1x128x256xbf16, #tpu.memory_space<vmem>>, %arg30: memref<1x1x256xf32, #tpu.memory_space<vmem>>, %arg31: memref<1x256x128xbf16, #tpu.memory_space<vmem>>, %arg32: memref<1x1x128xf32, #tpu.memory_space<vmem>>, %arg33: memref<1x1x128xf32, #tpu.memory_space<vmem>>, %arg34: memref<1x1x128xf32, #tpu.memory_space<vmem>>, %arg35: memref<1x128xf32, #tpu.memory_space<vmem>>, %arg36: memref<1x1xf32, #tpu.memory_space<vmem>>, %arg37: memref<1x1x128xf32, #tpu.memory_space<vmem>>, %arg38: memref<16x128xf32, #tpu.memory_space<vmem>>, %arg39: memref<46x128xf32, #tpu.memory_space<vmem>>) attributes {dimension_semantics = [#tpu.dimension_semantics<parallel>, #tpu.dimension_semantics<arbitrary>], iteration_bounds = array<i64: 2, 4>, scalar_prefetch = 0 : i64, scratch_operands = 2 : i64, tpu.core_type = #tpu.core_type<tc>, window_params = [{transform_indices = @transform_0, window_bounds = array<i64: 1, 16, 128>}, {transform_indices = @transform_1, window_bounds = array<i64: 1, 1, 16>}, {pipeline_mode = #tpu.pipeline_mode<synchronous>, transform_indices = @transform_2, window_bounds = array<i64: 128, 128>}, {pipeline_mode = #tpu.pipeline_mode<synchronous>, transform_indices = @transform_3, window_bounds = array<i64: 1, 128>}, {transform_indices = @transform_4, window_bounds = array<i64: 1, 1, 128>}, {transform_indices = @transform_5, window_bounds = array<i64: 1, 1, 128>}, {transform_indices = @transform_6, window_bounds = array<i64: 1, 128, 256>}, {transform_indices = @transform_7, window_bounds = array<i64: 1, 1, 256>}, {transform_indices = @transform_8, window_bounds = array<i64: 1, 256, 128>}, {transform_indices = @transform_9, window_bounds = array<i64: 1, 1, 128>}, {transform_indices = @transform_10, window_bounds = array<i64: 1, 1, 128>}, {transform_indices = @transform_11, window_bounds = array<i64: 1, 1, 128>}, {transform_indices = @transform_12, window_bounds = array<i64: 1, 128, 384>}, {transform_indices = @transform_13, window_bounds = array<i64: 1, 1, 384>}, {transform_indices = @transform_14, window_bounds = array<i64: 1, 128, 128>}, {transform_indices = @transform_15, window_bounds = array<i64: 1, 1, 128>}, {transform_indices = @transform_16, window_bounds = array<i64: 1, 1, 128>}, {transform_indices = @transform_17, window_bounds = array<i64: 1, 1, 128>}, {transform_indices = @transform_18, window_bounds = array<i64: 1, 128, 256>}, {transform_indices = @transform_19, window_bounds = array<i64: 1, 1, 256>}, {transform_indices = @transform_20, window_bounds = array<i64: 1, 31, 128>}, {transform_indices = @transform_21, window_bounds = array<i64: 1, 1, 128>}, {transform_indices = @transform_22, window_bounds = array<i64: 1, 1, 128>}, {transform_indices = @transform_23, window_bounds = array<i64: 1, 128, 128>}, {transform_indices = @transform_24, window_bounds = array<i64: 1, 1, 128>}, {transform_indices = @transform_25, window_bounds = array<i64: 1, 1, 128>}, {transform_indices = @transform_26, window_bounds = array<i64: 1, 1, 128>}, {transform_indices = @transform_27, window_bounds = array<i64: 1, 128, 256>}, {transform_indices = @transform_28, window_bounds = array<i64: 1, 1, 256>}, {transform_indices = @transform_29, window_bounds = array<i64: 1, 256, 128>}, {transform_indices = @transform_30, window_bounds = array<i64: 1, 1, 128>}, {transform_indices = @transform_31, window_bounds = array<i64: 1, 1, 128>}, {transform_indices = @transform_32, window_bounds = array<i64: 1, 1, 128>}, {pipeline_mode = #tpu.pipeline_mode<synchronous>, transform_indices = @transform_33, window_bounds = array<i64: 1, 128>}, {pipeline_mode = #tpu.pipeline_mode<synchronous>, transform_indices = @transform_34, window_bounds = array<i64: 1, 1>}, {transform_indices = @transform_35, window_bounds = array<i64: 1, 1, 128>}]} {
    %0 = tpu.iota {dimensions = array<i32: 1>} : vector<1x128xi32>
    %c80_i32 = arith.constant 80 : i32
    %1 = vector.broadcast %c80_i32 : i32 to vector<1x128xi32>
    %2 = arith.cmpi slt, %0, %1 : vector<1x128xi32>
    %3 = arith.extui %2 : vector<1x128xi1> to vector<1x128xi32>
    %4 = arith.sitofp %3 : vector<1x128xi32> to vector<1x128xf32>
    %c0_i32 = arith.constant 0 : i32
    %5 = arith.cmpi eq, %arg1, %c0_i32 : i32
    %6 = arith.extui %5 : i1 to i32
    %c0_i32_0 = arith.constant 0 : i32
    %7 = arith.cmpi ne, %6, %c0_i32_0 : i32
    scf.if %7 {
      %c0_185 = arith.constant 0 : index
      %c0_186 = arith.constant 0 : index
      %c0_187 = arith.constant 0 : index
      %478 = vector.load %arg2[%c0_185, %c0_186, %c0_187] : memref<1x16x128xf32, #tpu.memory_space<vmem>>, vector<1x16x128xf32>
      %479 = vector.shape_cast %478 : vector<1x16x128xf32> to vector<16x128xf32>
      %480 = arith.truncf %479 : vector<16x128xf32> to vector<16x128xbf16>
      %c0_188 = arith.constant 0 : index
      %c0_189 = arith.constant 0 : index
      %481 = vector.load %arg4[%c0_188, %c0_189] : memref<128x128xbf16, #tpu.memory_space<vmem>>, vector<128x128xbf16>
      %cst_190 = arith.constant dense<0.000000e+00> : vector<16x128xf32>
      %482 = tpu.matmul %480, %481, %cst_190 {dimension_numbers = #tpu.dot_dimension_numbers<[1], [0], [0], [1], [0, 0, 1, 1], [], []>} : vector<16x128xbf16>, vector<128x128xbf16>, vector<16x128xf32> -> vector<16x128xf32>
      %c0_191 = arith.constant 0 : index
      %c0_192 = arith.constant 0 : index
      %483 = vector.load %arg5[%c0_191, %c0_192] : memref<1x128xf32, #tpu.memory_space<vmem>>, vector<1x128xf32>
      %484 = vector.broadcast %483 : vector<1x128xf32> to vector<16x128xf32>
      %485 = arith.addf %482, %484 : vector<16x128xf32>
      %c0_193 = arith.constant 0 : index
      %c0_194 = arith.constant 0 : index
      %486 = vector.load %arg38[%c0_193, %c0_194] : memref<16x128xf32, #tpu.memory_space<vmem>>, vector<16x128xf32>
      tpu.vector_store %arg38[%c0_193, %c0_194], %485 {strides = array<i32>} : memref<16x128xf32, #tpu.memory_space<vmem>>, vector<16x128xf32>,
      %cst_195 = arith.constant 0.000000e+00 : f32
      %487 = vector.broadcast %cst_195 : f32 to vector<15x128xf32>
      %c0_196 = arith.constant 0 : index
      %c0_197 = arith.constant 0 : index
      %488 = vector.load %arg39[%c0_196, %c0_197] : memref<46x128xf32, #tpu.memory_space<vmem>>, vector<15x128xf32>
      tpu.vector_store %arg39[%c0_196, %c0_197], %487 {strides = array<i32>} : memref<46x128xf32, #tpu.memory_space<vmem>>, vector<15x128xf32>,
      %c31 = arith.constant 31 : index
      %c0_198 = arith.constant 0 : index
      %489 = vector.load %arg39[%c31, %c0_198] : memref<46x128xf32, #tpu.memory_space<vmem>>, vector<15x128xf32>
      tpu.vector_store %arg39[%c31, %c0_198], %487 {strides = array<i32>} : memref<46x128xf32, #tpu.memory_space<vmem>>, vector<15x128xf32>,
    } else {
    }
    %c0 = arith.constant 0 : index
    %c0_1 = arith.constant 0 : index
    %8 = vector.load %arg38[%c0, %c0_1] : memref<16x128xf32, #tpu.memory_space<vmem>>, vector<16x128xf32>
    %cst = arith.constant dense<0.000000e+00> : vector<16xf32>
    %9 = vector.multi_reduction <add>, %8, %cst [1] : vector<16x128xf32> to vector<16xf32>
    %10 = vector.shape_cast %9 : vector<16xf32> to vector<16x1xf32>
    %cst_2 = arith.constant 1.250000e-02 : f32
    %11 = vector.broadcast %cst_2 : f32 to vector<16x1xf32>
    %12 = arith.mulf %10, %11 : vector<16x1xf32>
    %13 = vector.broadcast %12 : vector<16x1xf32> to vector<16x128xf32>
    %14 = arith.subf %8, %13 : vector<16x128xf32>
    %15 = vector.broadcast %4 : vector<1x128xf32> to vector<16x128xf32>
    %16 = arith.mulf %14, %15 : vector<16x128xf32>
    %17 = arith.mulf %16, %16 : vector<16x128xf32>
    %cst_3 = arith.constant dense<0.000000e+00> : vector<16xf32>
    %18 = vector.multi_reduction <add>, %17, %cst_3 [1] : vector<16x128xf32> to vector<16xf32>
    %19 = vector.shape_cast %18 : vector<16xf32> to vector<16x1xf32>
    %cst_4 = arith.constant 1.250000e-02 : f32
    %20 = vector.broadcast %cst_4 : f32 to vector<16x1xf32>
    %21 = arith.mulf %19, %20 : vector<16x1xf32>
    %cst_5 = arith.constant 9.99999974E-6 : f32
    %22 = vector.broadcast %cst_5 : f32 to vector<16x1xf32>
    %23 = arith.addf %21, %22 : vector<16x1xf32>
    %24 = math.rsqrt %23 : vector<16x1xf32>
    %25 = vector.broadcast %24 : vector<16x1xf32> to vector<16x128xf32>
    %26 = arith.mulf %16, %25 : vector<16x128xf32>
    %c0_6 = arith.constant 0 : index
    %c0_7 = arith.constant 0 : index
    %c0_8 = arith.constant 0 : index
    %27 = vector.load %arg6[%c0_6, %c0_7, %c0_8] : memref<1x1x128xf32, #tpu.memory_space<vmem>>, vector<1x1x128xf32>
    %28 = vector.shape_cast %27 : vector<1x1x128xf32> to vector<1x128xf32>
    %29 = vector.broadcast %28 : vector<1x128xf32> to vector<16x128xf32>
    %30 = arith.mulf %26, %29 : vector<16x128xf32>
    %c0_9 = arith.constant 0 : index
    %c0_10 = arith.constant 0 : index
    %c0_11 = arith.constant 0 : index
    %31 = vector.load %arg7[%c0_9, %c0_10, %c0_11] : memref<1x1x128xf32, #tpu.memory_space<vmem>>, vector<1x1x128xf32>
    %32 = vector.shape_cast %31 : vector<1x1x128xf32> to vector<1x128xf32>
    %33 = vector.broadcast %32 : vector<1x128xf32> to vector<16x128xf32>
    %34 = arith.addf %30, %33 : vector<16x128xf32>
    %35 = arith.truncf %34 : vector<16x128xf32> to vector<16x128xbf16>
    %c0_12 = arith.constant 0 : index
    %c0_13 = arith.constant 0 : index
    %c0_14 = arith.constant 0 : index
    %36 = vector.load %arg8[%c0_12, %c0_13, %c0_14] : memref<1x128x256xbf16, #tpu.memory_space<vmem>>, vector<1x128x256xbf16>
    %37 = vector.shape_cast %36 : vector<1x128x256xbf16> to vector<128x256xbf16>
    %cst_15 = arith.constant dense<0.000000e+00> : vector<16x256xf32>
    %38 = tpu.matmul %35, %37, %cst_15 {dimension_numbers = #tpu.dot_dimension_numbers<[1], [0], [0], [1], [0, 0, 1, 1], [], []>} : vector<16x128xbf16>, vector<128x256xbf16>, vector<16x256xf32> -> vector<16x256xf32>
    %c0_16 = arith.constant 0 : index
    %c0_17 = arith.constant 0 : index
    %c0_18 = arith.constant 0 : index
    %39 = vector.load %arg9[%c0_16, %c0_17, %c0_18] : memref<1x1x256xf32, #tpu.memory_space<vmem>>, vector<1x1x256xf32>
    %40 = vector.shape_cast %39 : vector<1x1x256xf32> to vector<1x256xf32>
    %41 = vector.broadcast %40 : vector<1x256xf32> to vector<16x256xf32>
    %42 = arith.addf %38, %41 : vector<16x256xf32>
    %cst_19 = arith.constant 0.000000e+00 : f32
    %43 = vector.broadcast %cst_19 : f32 to vector<16x256xf32>
    %44 = arith.subf %43, %42 : vector<16x256xf32>
    %45 = math.exp %44 : vector<16x256xf32>
    %cst_20 = arith.constant 1.000000e+00 : f32
    %46 = vector.broadcast %cst_20 : f32 to vector<16x256xf32>
    %47 = arith.addf %46, %45 : vector<16x256xf32>
    %cst_21 = arith.constant 1.000000e+00 : f32
    %48 = vector.broadcast %cst_21 : f32 to vector<16x256xf32>
    %49 = arith.divf %48, %47 : vector<16x256xf32>
    %50 = arith.mulf %42, %49 : vector<16x256xf32>
    %51 = arith.truncf %50 : vector<16x256xf32> to vector<16x256xbf16>
    %c0_22 = arith.constant 0 : index
    %c0_23 = arith.constant 0 : index
    %c0_24 = arith.constant 0 : index
    %52 = vector.load %arg10[%c0_22, %c0_23, %c0_24] : memref<1x256x128xbf16, #tpu.memory_space<vmem>>, vector<1x256x128xbf16>
    %53 = vector.shape_cast %52 : vector<1x256x128xbf16> to vector<256x128xbf16>
    %cst_25 = arith.constant dense<0.000000e+00> : vector<16x128xf32>
    %54 = tpu.matmul %51, %53, %cst_25 {dimension_numbers = #tpu.dot_dimension_numbers<[1], [0], [0], [1], [0, 0, 1, 1], [], []>} : vector<16x256xbf16>, vector<256x128xbf16>, vector<16x128xf32> -> vector<16x128xf32>
    %c0_26 = arith.constant 0 : index
    %c0_27 = arith.constant 0 : index
    %c0_28 = arith.constant 0 : index
    %55 = vector.load %arg11[%c0_26, %c0_27, %c0_28] : memref<1x1x128xf32, #tpu.memory_space<vmem>>, vector<1x1x128xf32>
    %56 = vector.shape_cast %55 : vector<1x1x128xf32> to vector<1x128xf32>
    %57 = vector.broadcast %56 : vector<1x128xf32> to vector<16x128xf32>
    %58 = arith.addf %54, %57 : vector<16x128xf32>
    %cst_29 = arith.constant 5.000000e-01 : f32
    %59 = vector.broadcast %cst_29 : f32 to vector<16x128xf32>
    %60 = arith.mulf %59, %58 : vector<16x128xf32>
    %61 = arith.addf %8, %60 : vector<16x128xf32>
    %cst_30 = arith.constant dense<0.000000e+00> : vector<16xf32>
    %62 = vector.multi_reduction <add>, %61, %cst_30 [1] : vector<16x128xf32> to vector<16xf32>
    %63 = vector.shape_cast %62 : vector<16xf32> to vector<16x1xf32>
    %cst_31 = arith.constant 1.250000e-02 : f32
    %64 = vector.broadcast %cst_31 : f32 to vector<16x1xf32>
    %65 = arith.mulf %63, %64 : vector<16x1xf32>
    %66 = vector.broadcast %65 : vector<16x1xf32> to vector<16x128xf32>
    %67 = arith.subf %61, %66 : vector<16x128xf32>
    %68 = vector.broadcast %4 : vector<1x128xf32> to vector<16x128xf32>
    %69 = arith.mulf %67, %68 : vector<16x128xf32>
    %70 = arith.mulf %69, %69 : vector<16x128xf32>
    %cst_32 = arith.constant dense<0.000000e+00> : vector<16xf32>
    %71 = vector.multi_reduction <add>, %70, %cst_32 [1] : vector<16x128xf32> to vector<16xf32>
    %72 = vector.shape_cast %71 : vector<16xf32> to vector<16x1xf32>
    %cst_33 = arith.constant 1.250000e-02 : f32
    %73 = vector.broadcast %cst_33 : f32 to vector<16x1xf32>
    %74 = arith.mulf %72, %73 : vector<16x1xf32>
    %cst_34 = arith.constant 9.99999974E-6 : f32
    %75 = vector.broadcast %cst_34 : f32 to vector<16x1xf32>
    %76 = arith.addf %74, %75 : vector<16x1xf32>
    %77 = math.rsqrt %76 : vector<16x1xf32>
    %78 = vector.broadcast %77 : vector<16x1xf32> to vector<16x128xf32>
    %79 = arith.mulf %69, %78 : vector<16x128xf32>
    %c0_35 = arith.constant 0 : index
    %c0_36 = arith.constant 0 : index
    %c0_37 = arith.constant 0 : index
    %80 = vector.load %arg12[%c0_35, %c0_36, %c0_37] : memref<1x1x128xf32, #tpu.memory_space<vmem>>, vector<1x1x128xf32>
    %81 = vector.shape_cast %80 : vector<1x1x128xf32> to vector<1x128xf32>
    %82 = vector.broadcast %81 : vector<1x128xf32> to vector<16x128xf32>
    %83 = arith.mulf %79, %82 : vector<16x128xf32>
    %c0_38 = arith.constant 0 : index
    %c0_39 = arith.constant 0 : index
    %c0_40 = arith.constant 0 : index
    %84 = vector.load %arg13[%c0_38, %c0_39, %c0_40] : memref<1x1x128xf32, #tpu.memory_space<vmem>>, vector<1x1x128xf32>
    %85 = vector.shape_cast %84 : vector<1x1x128xf32> to vector<1x128xf32>
    %86 = vector.broadcast %85 : vector<1x128xf32> to vector<16x128xf32>
    %87 = arith.addf %83, %86 : vector<16x128xf32>
    %88 = arith.truncf %87 : vector<16x128xf32> to vector<16x128xbf16>
    %c0_41 = arith.constant 0 : index
    %c0_42 = arith.constant 0 : index
    %c0_43 = arith.constant 0 : index
    %89 = vector.load %arg14[%c0_41, %c0_42, %c0_43] : memref<1x128x384xbf16, #tpu.memory_space<vmem>>, vector<1x128x384xbf16>
    %90 = vector.shape_cast %89 : vector<1x128x384xbf16> to vector<128x384xbf16>
    %cst_44 = arith.constant dense<0.000000e+00> : vector<16x384xf32>
    %91 = tpu.matmul %88, %90, %cst_44 {dimension_numbers = #tpu.dot_dimension_numbers<[1], [0], [0], [1], [0, 0, 1, 1], [], []>} : vector<16x128xbf16>, vector<128x384xbf16>, vector<16x384xf32> -> vector<16x384xf32>
    %c0_45 = arith.constant 0 : index
    %c0_46 = arith.constant 0 : index
    %c0_47 = arith.constant 0 : index
    %92 = vector.load %arg15[%c0_45, %c0_46, %c0_47] : memref<1x1x384xf32, #tpu.memory_space<vmem>>, vector<1x1x384xf32>
    %93 = vector.shape_cast %92 : vector<1x1x384xf32> to vector<1x384xf32>
    %94 = vector.broadcast %93 : vector<1x384xf32> to vector<16x384xf32>
    %95 = arith.addf %91, %94 : vector<16x384xf32>
    %96 = vector.extract_strided_slice %95 {offsets = [0, 0], sizes = [16, 128], strides = [1, 1]} : vector<16x384xf32> to vector<16x128xf32>
    %97 = vector.extract_strided_slice %95 {offsets = [0, 128], sizes = [16, 128], strides = [1, 1]} : vector<16x384xf32> to vector<16x128xf32>
    %98 = vector.extract_strided_slice %95 {offsets = [0, 256], sizes = [16, 128], strides = [1, 1]} : vector<16x384xf32> to vector<16x128xf32>
    %c0_48 = arith.constant 0 : index
    %c0_49 = arith.constant 0 : index
    %c0_50 = arith.constant 0 : index
    %99 = vector.load %arg3[%c0_48, %c0_49, %c0_50] : memref<1x1x16xf32, #tpu.memory_space<vmem>>, vector<1x1x16xf32>
    %100 = vector.shape_cast %99 : vector<1x1x16xf32> to vector<1x16xf32>
    %c0_i32_51 = arith.constant 0 : i32
    %101 = vector.broadcast %c0_i32_51 : i32 to vector<1x128xi32>
    %102 = arith.cmpi sge, %0, %101 : vector<1x128xi32>
    %c64_i32 = arith.constant 64 : i32
    %103 = vector.broadcast %c64_i32 : i32 to vector<1x128xi32>
    %104 = arith.cmpi slt, %0, %103 : vector<1x128xi32>
    %105 = arith.andi %102, %104 : vector<1x128xi1>
    %106 = arith.extui %105 : vector<1x128xi1> to vector<1x128xi32>
    %107 = arith.sitofp %106 : vector<1x128xi32> to vector<1x128xf32>
    %108 = vector.broadcast %107 : vector<1x128xf32> to vector<16x128xf32>
    %109 = arith.mulf %96, %108 : vector<16x128xf32>
    %110 = arith.truncf %109 : vector<16x128xf32> to vector<16x128xbf16>
    %111 = arith.truncf %97 : vector<16x128xf32> to vector<16x128xbf16>
    %cst_52 = arith.constant dense<0.000000e+00> : vector<16x16xf32>
    %112 = tpu.matmul %110, %111, %cst_52 {dimension_numbers = #tpu.dot_dimension_numbers<[1], [1], [0], [0], [0, 0, 1, 0], [], []>} : vector<16x128xbf16>, vector<16x128xbf16>, vector<16x16xf32> -> vector<16x16xf32>
    %113 = vector.broadcast %100 : vector<1x16xf32> to vector<16x16xf32>
    %114 = arith.addf %112, %113 : vector<16x16xf32>
    %cst_53 = arith.constant dense<0xFF800000> : vector<16xf32>
    %115 = vector.multi_reduction <maximumf>, %114, %cst_53 [1] : vector<16x16xf32> to vector<16xf32>
    %116 = vector.shape_cast %115 : vector<16xf32> to vector<16x1xf32>
    %117 = vector.broadcast %116 : vector<16x1xf32> to vector<16x16xf32>
    %118 = arith.subf %114, %117 : vector<16x16xf32>
    %119 = math.exp %118 : vector<16x16xf32>
    %cst_54 = arith.constant dense<0.000000e+00> : vector<16xf32>
    %120 = vector.multi_reduction <add>, %119, %cst_54 [1] : vector<16x16xf32> to vector<16xf32>
    %121 = vector.shape_cast %120 : vector<16xf32> to vector<16x1xf32>
    %122 = tpu.reciprocal %121 {approx = true} : vector<16x1xf32> -> vector<16x1xf32>
    %123 = vector.broadcast %122 : vector<16x1xf32> to vector<16x16xf32>
    %124 = arith.mulf %119, %123 : vector<16x16xf32>
    %125 = arith.truncf %124 : vector<16x16xf32> to vector<16x16xbf16>
    %126 = vector.broadcast %107 : vector<1x128xf32> to vector<16x128xf32>
    %127 = arith.mulf %98, %126 : vector<16x128xf32>
    %128 = arith.truncf %127 : vector<16x128xf32> to vector<16x128xbf16>
    %cst_55 = arith.constant dense<0.000000e+00> : vector<16x128xf32>
    %129 = tpu.matmul %125, %128, %cst_55 {dimension_numbers = #tpu.dot_dimension_numbers<[1], [0], [0], [1], [0, 0, 1, 1], [], []>} : vector<16x16xbf16>, vector<16x128xbf16>, vector<16x128xf32> -> vector<16x128xf32>
    %c64_i32_56 = arith.constant 64 : i32
    %130 = vector.broadcast %c64_i32_56 : i32 to vector<1x128xi32>
    %131 = arith.cmpi sge, %0, %130 : vector<1x128xi32>
    %c128_i32 = arith.constant 128 : i32
    %132 = vector.broadcast %c128_i32 : i32 to vector<1x128xi32>
    %133 = arith.cmpi slt, %0, %132 : vector<1x128xi32>
    %134 = arith.andi %131, %133 : vector<1x128xi1>
    %135 = arith.extui %134 : vector<1x128xi1> to vector<1x128xi32>
    %136 = arith.sitofp %135 : vector<1x128xi32> to vector<1x128xf32>
    %137 = vector.broadcast %136 : vector<1x128xf32> to vector<16x128xf32>
    %138 = arith.mulf %96, %137 : vector<16x128xf32>
    %139 = arith.truncf %138 : vector<16x128xf32> to vector<16x128xbf16>
    %140 = arith.truncf %97 : vector<16x128xf32> to vector<16x128xbf16>
    %cst_57 = arith.constant dense<0.000000e+00> : vector<16x16xf32>
    %141 = tpu.matmul %139, %140, %cst_57 {dimension_numbers = #tpu.dot_dimension_numbers<[1], [1], [0], [0], [0, 0, 1, 0], [], []>} : vector<16x128xbf16>, vector<16x128xbf16>, vector<16x16xf32> -> vector<16x16xf32>
    %142 = vector.broadcast %100 : vector<1x16xf32> to vector<16x16xf32>
    %143 = arith.addf %141, %142 : vector<16x16xf32>
    %cst_58 = arith.constant dense<0xFF800000> : vector<16xf32>
    %144 = vector.multi_reduction <maximumf>, %143, %cst_58 [1] : vector<16x16xf32> to vector<16xf32>
    %145 = vector.shape_cast %144 : vector<16xf32> to vector<16x1xf32>
    %146 = vector.broadcast %145 : vector<16x1xf32> to vector<16x16xf32>
    %147 = arith.subf %143, %146 : vector<16x16xf32>
    %148 = math.exp %147 : vector<16x16xf32>
    %cst_59 = arith.constant dense<0.000000e+00> : vector<16xf32>
    %149 = vector.multi_reduction <add>, %148, %cst_59 [1] : vector<16x16xf32> to vector<16xf32>
    %150 = vector.shape_cast %149 : vector<16xf32> to vector<16x1xf32>
    %151 = tpu.reciprocal %150 {approx = true} : vector<16x1xf32> -> vector<16x1xf32>
    %152 = vector.broadcast %151 : vector<16x1xf32> to vector<16x16xf32>
    %153 = arith.mulf %148, %152 : vector<16x16xf32>
    %154 = arith.truncf %153 : vector<16x16xf32> to vector<16x16xbf16>
    %155 = vector.broadcast %136 : vector<1x128xf32> to vector<16x128xf32>
    %156 = arith.mulf %98, %155 : vector<16x128xf32>
    %157 = arith.truncf %156 : vector<16x128xf32> to vector<16x128xbf16>
    %cst_60 = arith.constant dense<0.000000e+00> : vector<16x128xf32>
    %158 = tpu.matmul %154, %157, %cst_60 {dimension_numbers = #tpu.dot_dimension_numbers<[1], [0], [0], [1], [0, 0, 1, 1], [], []>} : vector<16x16xbf16>, vector<16x128xbf16>, vector<16x128xf32> -> vector<16x128xf32>
    %159 = arith.addf %129, %158 : vector<16x128xf32>
    %160 = arith.truncf %159 : vector<16x128xf32> to vector<16x128xbf16>
    %c0_61 = arith.constant 0 : index
    %c0_62 = arith.constant 0 : index
    %c0_63 = arith.constant 0 : index
    %161 = vector.load %arg16[%c0_61, %c0_62, %c0_63] : memref<1x128x128xbf16, #tpu.memory_space<vmem>>, vector<1x128x128xbf16>
    %162 = vector.shape_cast %161 : vector<1x128x128xbf16> to vector<128x128xbf16>
    %cst_64 = arith.constant dense<0.000000e+00> : vector<16x128xf32>
    %163 = tpu.matmul %160, %162, %cst_64 {dimension_numbers = #tpu.dot_dimension_numbers<[1], [0], [0], [1], [0, 0, 1, 1], [], []>} : vector<16x128xbf16>, vector<128x128xbf16>, vector<16x128xf32> -> vector<16x128xf32>
    %c0_65 = arith.constant 0 : index
    %c0_66 = arith.constant 0 : index
    %c0_67 = arith.constant 0 : index
    %164 = vector.load %arg17[%c0_65, %c0_66, %c0_67] : memref<1x1x128xf32, #tpu.memory_space<vmem>>, vector<1x1x128xf32>
    %165 = vector.shape_cast %164 : vector<1x1x128xf32> to vector<1x128xf32>
    %166 = vector.broadcast %165 : vector<1x128xf32> to vector<16x128xf32>
    %167 = arith.addf %163, %166 : vector<16x128xf32>
    %168 = arith.addf %61, %167 : vector<16x128xf32>
    %cst_68 = arith.constant dense<0.000000e+00> : vector<16xf32>
    %169 = vector.multi_reduction <add>, %168, %cst_68 [1] : vector<16x128xf32> to vector<16xf32>
    %170 = vector.shape_cast %169 : vector<16xf32> to vector<16x1xf32>
    %cst_69 = arith.constant 1.250000e-02 : f32
    %171 = vector.broadcast %cst_69 : f32 to vector<16x1xf32>
    %172 = arith.mulf %170, %171 : vector<16x1xf32>
    %173 = vector.broadcast %172 : vector<16x1xf32> to vector<16x128xf32>
    %174 = arith.subf %168, %173 : vector<16x128xf32>
    %175 = vector.broadcast %4 : vector<1x128xf32> to vector<16x128xf32>
    %176 = arith.mulf %174, %175 : vector<16x128xf32>
    %177 = arith.mulf %176, %176 : vector<16x128xf32>
    %cst_70 = arith.constant dense<0.000000e+00> : vector<16xf32>
    %178 = vector.multi_reduction <add>, %177, %cst_70 [1] : vector<16x128xf32> to vector<16xf32>
    %179 = vector.shape_cast %178 : vector<16xf32> to vector<16x1xf32>
    %cst_71 = arith.constant 1.250000e-02 : f32
    %180 = vector.broadcast %cst_71 : f32 to vector<16x1xf32>
    %181 = arith.mulf %179, %180 : vector<16x1xf32>
    %cst_72 = arith.constant 9.99999974E-6 : f32
    %182 = vector.broadcast %cst_72 : f32 to vector<16x1xf32>
    %183 = arith.addf %181, %182 : vector<16x1xf32>
    %184 = math.rsqrt %183 : vector<16x1xf32>
    %185 = vector.broadcast %184 : vector<16x1xf32> to vector<16x128xf32>
    %186 = arith.mulf %176, %185 : vector<16x128xf32>
    %c0_73 = arith.constant 0 : index
    %c0_74 = arith.constant 0 : index
    %c0_75 = arith.constant 0 : index
    %187 = vector.load %arg18[%c0_73, %c0_74, %c0_75] : memref<1x1x128xf32, #tpu.memory_space<vmem>>, vector<1x1x128xf32>
    %188 = vector.shape_cast %187 : vector<1x1x128xf32> to vector<1x128xf32>
    %189 = vector.broadcast %188 : vector<1x128xf32> to vector<16x128xf32>
    %190 = arith.mulf %186, %189 : vector<16x128xf32>
    %c0_76 = arith.constant 0 : index
    %c0_77 = arith.constant 0 : index
    %c0_78 = arith.constant 0 : index
    %191 = vector.load %arg19[%c0_76, %c0_77, %c0_78] : memref<1x1x128xf32, #tpu.memory_space<vmem>>, vector<1x1x128xf32>
    %192 = vector.shape_cast %191 : vector<1x1x128xf32> to vector<1x128xf32>
    %193 = vector.broadcast %192 : vector<1x128xf32> to vector<16x128xf32>
    %194 = arith.addf %190, %193 : vector<16x128xf32>
    %195 = arith.truncf %194 : vector<16x128xf32> to vector<16x128xbf16>
    %c0_79 = arith.constant 0 : index
    %c0_80 = arith.constant 0 : index
    %c0_81 = arith.constant 0 : index
    %196 = vector.load %arg20[%c0_79, %c0_80, %c0_81] : memref<1x128x256xbf16, #tpu.memory_space<vmem>>, vector<1x128x256xbf16>
    %197 = vector.shape_cast %196 : vector<1x128x256xbf16> to vector<128x256xbf16>
    %cst_82 = arith.constant dense<0.000000e+00> : vector<16x256xf32>
    %198 = tpu.matmul %195, %197, %cst_82 {dimension_numbers = #tpu.dot_dimension_numbers<[1], [0], [0], [1], [0, 0, 1, 1], [], []>} : vector<16x128xbf16>, vector<128x256xbf16>, vector<16x256xf32> -> vector<16x256xf32>
    %c0_83 = arith.constant 0 : index
    %c0_84 = arith.constant 0 : index
    %c0_85 = arith.constant 0 : index
    %199 = vector.load %arg21[%c0_83, %c0_84, %c0_85] : memref<1x1x256xf32, #tpu.memory_space<vmem>>, vector<1x1x256xf32>
    %200 = vector.shape_cast %199 : vector<1x1x256xf32> to vector<1x256xf32>
    %201 = vector.broadcast %200 : vector<1x256xf32> to vector<16x256xf32>
    %202 = arith.addf %198, %201 : vector<16x256xf32>
    %203 = vector.extract_strided_slice %202 {offsets = [0, 0], sizes = [16, 128], strides = [1, 1]} : vector<16x256xf32> to vector<16x128xf32>
    %204 = vector.extract_strided_slice %202 {offsets = [0, 128], sizes = [16, 128], strides = [1, 1]} : vector<16x256xf32> to vector<16x128xf32>
    %cst_86 = arith.constant 0.000000e+00 : f32
    %205 = vector.broadcast %cst_86 : f32 to vector<16x128xf32>
    %206 = arith.subf %205, %204 : vector<16x128xf32>
    %207 = math.exp %206 : vector<16x128xf32>
    %cst_87 = arith.constant 1.000000e+00 : f32
    %208 = vector.broadcast %cst_87 : f32 to vector<16x128xf32>
    %209 = arith.addf %208, %207 : vector<16x128xf32>
    %cst_88 = arith.constant 1.000000e+00 : f32
    %210 = vector.broadcast %cst_88 : f32 to vector<16x128xf32>
    %211 = arith.divf %210, %209 : vector<16x128xf32>
    %212 = arith.mulf %203, %211 : vector<16x128xf32>
    %c15 = arith.constant 15 : index
    %c0_89 = arith.constant 0 : index
    %213 = vector.load %arg39[%c15, %c0_89] : memref<46x128xf32, #tpu.memory_space<vmem>>, vector<16x128xf32>
    tpu.vector_store %arg39[%c15, %c0_89], %212 {strides = array<i32>} : memref<46x128xf32, #tpu.memory_space<vmem>>, vector<16x128xf32>,
    %c0_90 = arith.constant 0 : index
    %c0_91 = arith.constant 0 : index
    %c0_92 = arith.constant 0 : index
    %214 = vector.load %arg22[%c0_90, %c0_91, %c0_92] : memref<1x31x128xf32, #tpu.memory_space<vmem>>, vector<1x31x128xf32>
    %215 = vector.shape_cast %214 : vector<1x31x128xf32> to vector<31x128xf32>
    %c0_93 = arith.constant 0 : index
    %c0_94 = arith.constant 0 : index
    %216 = vector.load %arg39[%c0_93, %c0_94] : memref<46x128xf32, #tpu.memory_space<vmem>>, vector<16x128xf32>
    %217 = vector.extract_strided_slice %215 {offsets = [0, 0], sizes = [1, 128], strides = [1, 1]} : vector<31x128xf32> to vector<1x128xf32>
    %218 = vector.broadcast %217 : vector<1x128xf32> to vector<16x128xf32>
    %219 = arith.mulf %216, %218 : vector<16x128xf32>
    %c1 = arith.constant 1 : index
    %c0_95 = arith.constant 0 : index
    %220 = vector.load %arg39[%c1, %c0_95] : memref<46x128xf32, #tpu.memory_space<vmem>>, vector<16x128xf32>
    %221 = vector.extract_strided_slice %215 {offsets = [1, 0], sizes = [1, 128], strides = [1, 1]} : vector<31x128xf32> to vector<1x128xf32>
    %222 = vector.broadcast %221 : vector<1x128xf32> to vector<16x128xf32>
    %223 = arith.mulf %220, %222 : vector<16x128xf32>
    %224 = arith.addf %219, %223 : vector<16x128xf32>
    %c2 = arith.constant 2 : index
    %c0_96 = arith.constant 0 : index
    %225 = vector.load %arg39[%c2, %c0_96] : memref<46x128xf32, #tpu.memory_space<vmem>>, vector<16x128xf32>
    %226 = vector.extract_strided_slice %215 {offsets = [2, 0], sizes = [1, 128], strides = [1, 1]} : vector<31x128xf32> to vector<1x128xf32>
    %227 = vector.broadcast %226 : vector<1x128xf32> to vector<16x128xf32>
    %228 = arith.mulf %225, %227 : vector<16x128xf32>
    %229 = arith.addf %224, %228 : vector<16x128xf32>
    %c3 = arith.constant 3 : index
    %c0_97 = arith.constant 0 : index
    %230 = vector.load %arg39[%c3, %c0_97] : memref<46x128xf32, #tpu.memory_space<vmem>>, vector<16x128xf32>
    %231 = vector.extract_strided_slice %215 {offsets = [3, 0], sizes = [1, 128], strides = [1, 1]} : vector<31x128xf32> to vector<1x128xf32>
    %232 = vector.broadcast %231 : vector<1x128xf32> to vector<16x128xf32>
    %233 = arith.mulf %230, %232 : vector<16x128xf32>
    %234 = arith.addf %229, %233 : vector<16x128xf32>
    %c4 = arith.constant 4 : index
    %c0_98 = arith.constant 0 : index
    %235 = vector.load %arg39[%c4, %c0_98] : memref<46x128xf32, #tpu.memory_space<vmem>>, vector<16x128xf32>
    %236 = vector.extract_strided_slice %215 {offsets = [4, 0], sizes = [1, 128], strides = [1, 1]} : vector<31x128xf32> to vector<1x128xf32>
    %237 = vector.broadcast %236 : vector<1x128xf32> to vector<16x128xf32>
    %238 = arith.mulf %235, %237 : vector<16x128xf32>
    %239 = arith.addf %234, %238 : vector<16x128xf32>
    %c5 = arith.constant 5 : index
    %c0_99 = arith.constant 0 : index
    %240 = vector.load %arg39[%c5, %c0_99] : memref<46x128xf32, #tpu.memory_space<vmem>>, vector<16x128xf32>
    %241 = vector.extract_strided_slice %215 {offsets = [5, 0], sizes = [1, 128], strides = [1, 1]} : vector<31x128xf32> to vector<1x128xf32>
    %242 = vector.broadcast %241 : vector<1x128xf32> to vector<16x128xf32>
    %243 = arith.mulf %240, %242 : vector<16x128xf32>
    %244 = arith.addf %239, %243 : vector<16x128xf32>
    %c6 = arith.constant 6 : index
    %c0_100 = arith.constant 0 : index
    %245 = vector.load %arg39[%c6, %c0_100] : memref<46x128xf32, #tpu.memory_space<vmem>>, vector<16x128xf32>
    %246 = vector.extract_strided_slice %215 {offsets = [6, 0], sizes = [1, 128], strides = [1, 1]} : vector<31x128xf32> to vector<1x128xf32>
    %247 = vector.broadcast %246 : vector<1x128xf32> to vector<16x128xf32>
    %248 = arith.mulf %245, %247 : vector<16x128xf32>
    %249 = arith.addf %244, %248 : vector<16x128xf32>
    %c7 = arith.constant 7 : index
    %c0_101 = arith.constant 0 : index
    %250 = vector.load %arg39[%c7, %c0_101] : memref<46x128xf32, #tpu.memory_space<vmem>>, vector<16x128xf32>
    %251 = vector.extract_strided_slice %215 {offsets = [7, 0], sizes = [1, 128], strides = [1, 1]} : vector<31x128xf32> to vector<1x128xf32>
    %252 = vector.broadcast %251 : vector<1x128xf32> to vector<16x128xf32>
    %253 = arith.mulf %250, %252 : vector<16x128xf32>
    %254 = arith.addf %249, %253 : vector<16x128xf32>
    %c8 = arith.constant 8 : index
    %c0_102 = arith.constant 0 : index
    %255 = vector.load %arg39[%c8, %c0_102] : memref<46x128xf32, #tpu.memory_space<vmem>>, vector<16x128xf32>
    %256 = vector.extract_strided_slice %215 {offsets = [8, 0], sizes = [1, 128], strides = [1, 1]} : vector<31x128xf32> to vector<1x128xf32>
    %257 = vector.broadcast %256 : vector<1x128xf32> to vector<16x128xf32>
    %258 = arith.mulf %255, %257 : vector<16x128xf32>
    %259 = arith.addf %254, %258 : vector<16x128xf32>
    %c9 = arith.constant 9 : index
    %c0_103 = arith.constant 0 : index
    %260 = vector.load %arg39[%c9, %c0_103] : memref<46x128xf32, #tpu.memory_space<vmem>>, vector<16x128xf32>
    %261 = vector.extract_strided_slice %215 {offsets = [9, 0], sizes = [1, 128], strides = [1, 1]} : vector<31x128xf32> to vector<1x128xf32>
    %262 = vector.broadcast %261 : vector<1x128xf32> to vector<16x128xf32>
    %263 = arith.mulf %260, %262 : vector<16x128xf32>
    %264 = arith.addf %259, %263 : vector<16x128xf32>
    %c10 = arith.constant 10 : index
    %c0_104 = arith.constant 0 : index
    %265 = vector.load %arg39[%c10, %c0_104] : memref<46x128xf32, #tpu.memory_space<vmem>>, vector<16x128xf32>
    %266 = vector.extract_strided_slice %215 {offsets = [10, 0], sizes = [1, 128], strides = [1, 1]} : vector<31x128xf32> to vector<1x128xf32>
    %267 = vector.broadcast %266 : vector<1x128xf32> to vector<16x128xf32>
    %268 = arith.mulf %265, %267 : vector<16x128xf32>
    %269 = arith.addf %264, %268 : vector<16x128xf32>
    %c11 = arith.constant 11 : index
    %c0_105 = arith.constant 0 : index
    %270 = vector.load %arg39[%c11, %c0_105] : memref<46x128xf32, #tpu.memory_space<vmem>>, vector<16x128xf32>
    %271 = vector.extract_strided_slice %215 {offsets = [11, 0], sizes = [1, 128], strides = [1, 1]} : vector<31x128xf32> to vector<1x128xf32>
    %272 = vector.broadcast %271 : vector<1x128xf32> to vector<16x128xf32>
    %273 = arith.mulf %270, %272 : vector<16x128xf32>
    %274 = arith.addf %269, %273 : vector<16x128xf32>
    %c12 = arith.constant 12 : index
    %c0_106 = arith.constant 0 : index
    %275 = vector.load %arg39[%c12, %c0_106] : memref<46x128xf32, #tpu.memory_space<vmem>>, vector<16x128xf32>
    %276 = vector.extract_strided_slice %215 {offsets = [12, 0], sizes = [1, 128], strides = [1, 1]} : vector<31x128xf32> to vector<1x128xf32>
    %277 = vector.broadcast %276 : vector<1x128xf32> to vector<16x128xf32>
    %278 = arith.mulf %275, %277 : vector<16x128xf32>
    %279 = arith.addf %274, %278 : vector<16x128xf32>
    %c13 = arith.constant 13 : index
    %c0_107 = arith.constant 0 : index
    %280 = vector.load %arg39[%c13, %c0_107] : memref<46x128xf32, #tpu.memory_space<vmem>>, vector<16x128xf32>
    %281 = vector.extract_strided_slice %215 {offsets = [13, 0], sizes = [1, 128], strides = [1, 1]} : vector<31x128xf32> to vector<1x128xf32>
    %282 = vector.broadcast %281 : vector<1x128xf32> to vector<16x128xf32>
    %283 = arith.mulf %280, %282 : vector<16x128xf32>
    %284 = arith.addf %279, %283 : vector<16x128xf32>
    %c14 = arith.constant 14 : index
    %c0_108 = arith.constant 0 : index
    %285 = vector.load %arg39[%c14, %c0_108] : memref<46x128xf32, #tpu.memory_space<vmem>>, vector<16x128xf32>
    %286 = vector.extract_strided_slice %215 {offsets = [14, 0], sizes = [1, 128], strides = [1, 1]} : vector<31x128xf32> to vector<1x128xf32>
    %287 = vector.broadcast %286 : vector<1x128xf32> to vector<16x128xf32>
    %288 = arith.mulf %285, %287 : vector<16x128xf32>
    %289 = arith.addf %284, %288 : vector<16x128xf32>
    %c15_109 = arith.constant 15 : index
    %c0_110 = arith.constant 0 : index
    %290 = vector.load %arg39[%c15_109, %c0_110] : memref<46x128xf32, #tpu.memory_space<vmem>>, vector<16x128xf32>
    %291 = vector.extract_strided_slice %215 {offsets = [15, 0], sizes = [1, 128], strides = [1, 1]} : vector<31x128xf32> to vector<1x128xf32>
    %292 = vector.broadcast %291 : vector<1x128xf32> to vector<16x128xf32>
    %293 = arith.mulf %290, %292 : vector<16x128xf32>
    %294 = arith.addf %289, %293 : vector<16x128xf32>
    %c16 = arith.constant 16 : index
    %c0_111 = arith.constant 0 : index
    %295 = vector.load %arg39[%c16, %c0_111] : memref<46x128xf32, #tpu.memory_space<vmem>>, vector<16x128xf32>
    %296 = vector.extract_strided_slice %215 {offsets = [16, 0], sizes = [1, 128], strides = [1, 1]} : vector<31x128xf32> to vector<1x128xf32>
    %297 = vector.broadcast %296 : vector<1x128xf32> to vector<16x128xf32>
    %298 = arith.mulf %295, %297 : vector<16x128xf32>
    %299 = arith.addf %294, %298 : vector<16x128xf32>
    %c17 = arith.constant 17 : index
    %c0_112 = arith.constant 0 : index
    %300 = vector.load %arg39[%c17, %c0_112] : memref<46x128xf32, #tpu.memory_space<vmem>>, vector<16x128xf32>
    %301 = vector.extract_strided_slice %215 {offsets = [17, 0], sizes = [1, 128], strides = [1, 1]} : vector<31x128xf32> to vector<1x128xf32>
    %302 = vector.broadcast %301 : vector<1x128xf32> to vector<16x128xf32>
    %303 = arith.mulf %300, %302 : vector<16x128xf32>
    %304 = arith.addf %299, %303 : vector<16x128xf32>
    %c18 = arith.constant 18 : index
    %c0_113 = arith.constant 0 : index
    %305 = vector.load %arg39[%c18, %c0_113] : memref<46x128xf32, #tpu.memory_space<vmem>>, vector<16x128xf32>
    %306 = vector.extract_strided_slice %215 {offsets = [18, 0], sizes = [1, 128], strides = [1, 1]} : vector<31x128xf32> to vector<1x128xf32>
    %307 = vector.broadcast %306 : vector<1x128xf32> to vector<16x128xf32>
    %308 = arith.mulf %305, %307 : vector<16x128xf32>
    %309 = arith.addf %304, %308 : vector<16x128xf32>
    %c19 = arith.constant 19 : index
    %c0_114 = arith.constant 0 : index
    %310 = vector.load %arg39[%c19, %c0_114] : memref<46x128xf32, #tpu.memory_space<vmem>>, vector<16x128xf32>
    %311 = vector.extract_strided_slice %215 {offsets = [19, 0], sizes = [1, 128], strides = [1, 1]} : vector<31x128xf32> to vector<1x128xf32>
    %312 = vector.broadcast %311 : vector<1x128xf32> to vector<16x128xf32>
    %313 = arith.mulf %310, %312 : vector<16x128xf32>
    %314 = arith.addf %309, %313 : vector<16x128xf32>
    %c20 = arith.constant 20 : index
    %c0_115 = arith.constant 0 : index
    %315 = vector.load %arg39[%c20, %c0_115] : memref<46x128xf32, #tpu.memory_space<vmem>>, vector<16x128xf32>
    %316 = vector.extract_strided_slice %215 {offsets = [20, 0], sizes = [1, 128], strides = [1, 1]} : vector<31x128xf32> to vector<1x128xf32>
    %317 = vector.broadcast %316 : vector<1x128xf32> to vector<16x128xf32>
    %318 = arith.mulf %315, %317 : vector<16x128xf32>
    %319 = arith.addf %314, %318 : vector<16x128xf32>
    %c21 = arith.constant 21 : index
    %c0_116 = arith.constant 0 : index
    %320 = vector.load %arg39[%c21, %c0_116] : memref<46x128xf32, #tpu.memory_space<vmem>>, vector<16x128xf32>
    %321 = vector.extract_strided_slice %215 {offsets = [21, 0], sizes = [1, 128], strides = [1, 1]} : vector<31x128xf32> to vector<1x128xf32>
    %322 = vector.broadcast %321 : vector<1x128xf32> to vector<16x128xf32>
    %323 = arith.mulf %320, %322 : vector<16x128xf32>
    %324 = arith.addf %319, %323 : vector<16x128xf32>
    %c22 = arith.constant 22 : index
    %c0_117 = arith.constant 0 : index
    %325 = vector.load %arg39[%c22, %c0_117] : memref<46x128xf32, #tpu.memory_space<vmem>>, vector<16x128xf32>
    %326 = vector.extract_strided_slice %215 {offsets = [22, 0], sizes = [1, 128], strides = [1, 1]} : vector<31x128xf32> to vector<1x128xf32>
    %327 = vector.broadcast %326 : vector<1x128xf32> to vector<16x128xf32>
    %328 = arith.mulf %325, %327 : vector<16x128xf32>
    %329 = arith.addf %324, %328 : vector<16x128xf32>
    %c23 = arith.constant 23 : index
    %c0_118 = arith.constant 0 : index
    %330 = vector.load %arg39[%c23, %c0_118] : memref<46x128xf32, #tpu.memory_space<vmem>>, vector<16x128xf32>
    %331 = vector.extract_strided_slice %215 {offsets = [23, 0], sizes = [1, 128], strides = [1, 1]} : vector<31x128xf32> to vector<1x128xf32>
    %332 = vector.broadcast %331 : vector<1x128xf32> to vector<16x128xf32>
    %333 = arith.mulf %330, %332 : vector<16x128xf32>
    %334 = arith.addf %329, %333 : vector<16x128xf32>
    %c24 = arith.constant 24 : index
    %c0_119 = arith.constant 0 : index
    %335 = vector.load %arg39[%c24, %c0_119] : memref<46x128xf32, #tpu.memory_space<vmem>>, vector<16x128xf32>
    %336 = vector.extract_strided_slice %215 {offsets = [24, 0], sizes = [1, 128], strides = [1, 1]} : vector<31x128xf32> to vector<1x128xf32>
    %337 = vector.broadcast %336 : vector<1x128xf32> to vector<16x128xf32>
    %338 = arith.mulf %335, %337 : vector<16x128xf32>
    %339 = arith.addf %334, %338 : vector<16x128xf32>
    %c25 = arith.constant 25 : index
    %c0_120 = arith.constant 0 : index
    %340 = vector.load %arg39[%c25, %c0_120] : memref<46x128xf32, #tpu.memory_space<vmem>>, vector<16x128xf32>
    %341 = vector.extract_strided_slice %215 {offsets = [25, 0], sizes = [1, 128], strides = [1, 1]} : vector<31x128xf32> to vector<1x128xf32>
    %342 = vector.broadcast %341 : vector<1x128xf32> to vector<16x128xf32>
    %343 = arith.mulf %340, %342 : vector<16x128xf32>
    %344 = arith.addf %339, %343 : vector<16x128xf32>
    %c26 = arith.constant 26 : index
    %c0_121 = arith.constant 0 : index
    %345 = vector.load %arg39[%c26, %c0_121] : memref<46x128xf32, #tpu.memory_space<vmem>>, vector<16x128xf32>
    %346 = vector.extract_strided_slice %215 {offsets = [26, 0], sizes = [1, 128], strides = [1, 1]} : vector<31x128xf32> to vector<1x128xf32>
    %347 = vector.broadcast %346 : vector<1x128xf32> to vector<16x128xf32>
    %348 = arith.mulf %345, %347 : vector<16x128xf32>
    %349 = arith.addf %344, %348 : vector<16x128xf32>
    %c27 = arith.constant 27 : index
    %c0_122 = arith.constant 0 : index
    %350 = vector.load %arg39[%c27, %c0_122] : memref<46x128xf32, #tpu.memory_space<vmem>>, vector<16x128xf32>
    %351 = vector.extract_strided_slice %215 {offsets = [27, 0], sizes = [1, 128], strides = [1, 1]} : vector<31x128xf32> to vector<1x128xf32>
    %352 = vector.broadcast %351 : vector<1x128xf32> to vector<16x128xf32>
    %353 = arith.mulf %350, %352 : vector<16x128xf32>
    %354 = arith.addf %349, %353 : vector<16x128xf32>
    %c28 = arith.constant 28 : index
    %c0_123 = arith.constant 0 : index
    %355 = vector.load %arg39[%c28, %c0_123] : memref<46x128xf32, #tpu.memory_space<vmem>>, vector<16x128xf32>
    %356 = vector.extract_strided_slice %215 {offsets = [28, 0], sizes = [1, 128], strides = [1, 1]} : vector<31x128xf32> to vector<1x128xf32>
    %357 = vector.broadcast %356 : vector<1x128xf32> to vector<16x128xf32>
    %358 = arith.mulf %355, %357 : vector<16x128xf32>
    %359 = arith.addf %354, %358 : vector<16x128xf32>
    %c29 = arith.constant 29 : index
    %c0_124 = arith.constant 0 : index
    %360 = vector.load %arg39[%c29, %c0_124] : memref<46x128xf32, #tpu.memory_space<vmem>>, vector<16x128xf32>
    %361 = vector.extract_strided_slice %215 {offsets = [29, 0], sizes = [1, 128], strides = [1, 1]} : vector<31x128xf32> to vector<1x128xf32>
    %362 = vector.broadcast %361 : vector<1x128xf32> to vector<16x128xf32>
    %363 = arith.mulf %360, %362 : vector<16x128xf32>
    %364 = arith.addf %359, %363 : vector<16x128xf32>
    %c30 = arith.constant 30 : index
    %c0_125 = arith.constant 0 : index
    %365 = vector.load %arg39[%c30, %c0_125] : memref<46x128xf32, #tpu.memory_space<vmem>>, vector<16x128xf32>
    %366 = vector.extract_strided_slice %215 {offsets = [30, 0], sizes = [1, 128], strides = [1, 1]} : vector<31x128xf32> to vector<1x128xf32>
    %367 = vector.broadcast %366 : vector<1x128xf32> to vector<16x128xf32>
    %368 = arith.mulf %365, %367 : vector<16x128xf32>
    %369 = arith.addf %364, %368 : vector<16x128xf32>
    %c0_126 = arith.constant 0 : index
    %c0_127 = arith.constant 0 : index
    %c0_128 = arith.constant 0 : index
    %370 = vector.load %arg23[%c0_126, %c0_127, %c0_128] : memref<1x1x128xf32, #tpu.memory_space<vmem>>, vector<1x1x128xf32>
    %371 = vector.shape_cast %370 : vector<1x1x128xf32> to vector<1x128xf32>
    %372 = vector.broadcast %371 : vector<1x128xf32> to vector<16x128xf32>
    %373 = arith.mulf %369, %372 : vector<16x128xf32>
    %c0_129 = arith.constant 0 : index
    %c0_130 = arith.constant 0 : index
    %c0_131 = arith.constant 0 : index
    %374 = vector.load %arg24[%c0_129, %c0_130, %c0_131] : memref<1x1x128xf32, #tpu.memory_space<vmem>>, vector<1x1x128xf32>
    %375 = vector.shape_cast %374 : vector<1x1x128xf32> to vector<1x128xf32>
    %376 = vector.broadcast %375 : vector<1x128xf32> to vector<16x128xf32>
    %377 = arith.addf %373, %376 : vector<16x128xf32>
    %cst_132 = arith.constant 0.000000e+00 : f32
    %378 = vector.broadcast %cst_132 : f32 to vector<16x128xf32>
    %379 = arith.subf %378, %377 : vector<16x128xf32>
    %380 = math.exp %379 : vector<16x128xf32>
    %cst_133 = arith.constant 1.000000e+00 : f32
    %381 = vector.broadcast %cst_133 : f32 to vector<16x128xf32>
    %382 = arith.addf %381, %380 : vector<16x128xf32>
    %cst_134 = arith.constant 1.000000e+00 : f32
    %383 = vector.broadcast %cst_134 : f32 to vector<16x128xf32>
    %384 = arith.divf %383, %382 : vector<16x128xf32>
    %385 = arith.mulf %377, %384 : vector<16x128xf32>
    %386 = arith.truncf %385 : vector<16x128xf32> to vector<16x128xbf16>
    %c0_135 = arith.constant 0 : index
    %c0_136 = arith.constant 0 : index
    %c0_137 = arith.constant 0 : index
    %387 = vector.load %arg25[%c0_135, %c0_136, %c0_137] : memref<1x128x128xbf16, #tpu.memory_space<vmem>>, vector<1x128x128xbf16>
    %388 = vector.shape_cast %387 : vector<1x128x128xbf16> to vector<128x128xbf16>
    %cst_138 = arith.constant dense<0.000000e+00> : vector<16x128xf32>
    %389 = tpu.matmul %386, %388, %cst_138 {dimension_numbers = #tpu.dot_dimension_numbers<[1], [0], [0], [1], [0, 0, 1, 1], [], []>} : vector<16x128xbf16>, vector<128x128xbf16>, vector<16x128xf32> -> vector<16x128xf32>
    %c0_139 = arith.constant 0 : index
    %c0_140 = arith.constant 0 : index
    %c0_141 = arith.constant 0 : index
    %390 = vector.load %arg26[%c0_139, %c0_140, %c0_141] : memref<1x1x128xf32, #tpu.memory_space<vmem>>, vector<1x1x128xf32>
    %391 = vector.shape_cast %390 : vector<1x1x128xf32> to vector<1x128xf32>
    %392 = vector.broadcast %391 : vector<1x128xf32> to vector<16x128xf32>
    %393 = arith.addf %389, %392 : vector<16x128xf32>
    %394 = arith.addf %168, %393 : vector<16x128xf32>
    %cst_142 = arith.constant dense<0.000000e+00> : vector<16xf32>
    %395 = vector.multi_reduction <add>, %394, %cst_142 [1] : vector<16x128xf32> to vector<16xf32>
    %396 = vector.shape_cast %395 : vector<16xf32> to vector<16x1xf32>
    %cst_143 = arith.constant 1.250000e-02 : f32
    %397 = vector.broadcast %cst_143 : f32 to vector<16x1xf32>
    %398 = arith.mulf %396, %397 : vector<16x1xf32>
    %399 = vector.broadcast %398 : vector<16x1xf32> to vector<16x128xf32>
    %400 = arith.subf %394, %399 : vector<16x128xf32>
    %401 = vector.broadcast %4 : vector<1x128xf32> to vector<16x128xf32>
    %402 = arith.mulf %400, %401 : vector<16x128xf32>
    %403 = arith.mulf %402, %402 : vector<16x128xf32>
    %cst_144 = arith.constant dense<0.000000e+00> : vector<16xf32>
    %404 = vector.multi_reduction <add>, %403, %cst_144 [1] : vector<16x128xf32> to vector<16xf32>
    %405 = vector.shape_cast %404 : vector<16xf32> to vector<16x1xf32>
    %cst_145 = arith.constant 1.250000e-02 : f32
    %406 = vector.broadcast %cst_145 : f32 to vector<16x1xf32>
    %407 = arith.mulf %405, %406 : vector<16x1xf32>
    %cst_146 = arith.constant 9.99999974E-6 : f32
    %408 = vector.broadcast %cst_146 : f32 to vector<16x1xf32>
    %409 = arith.addf %407, %408 : vector<16x1xf32>
    %410 = math.rsqrt %409 : vector<16x1xf32>
    %411 = vector.broadcast %410 : vector<16x1xf32> to vector<16x128xf32>
    %412 = arith.mulf %402, %411 : vector<16x128xf32>
    %c0_147 = arith.constant 0 : index
    %c0_148 = arith.constant 0 : index
    %c0_149 = arith.constant 0 : index
    %413 = vector.load %arg27[%c0_147, %c0_148, %c0_149] : memref<1x1x128xf32, #tpu.memory_space<vmem>>, vector<1x1x128xf32>
    %414 = vector.shape_cast %413 : vector<1x1x128xf32> to vector<1x128xf32>
    %415 = vector.broadcast %414 : vector<1x128xf32> to vector<16x128xf32>
    %416 = arith.mulf %412, %415 : vector<16x128xf32>
    %c0_150 = arith.constant 0 : index
    %c0_151 = arith.constant 0 : index
    %c0_152 = arith.constant 0 : index
    %417 = vector.load %arg28[%c0_150, %c0_151, %c0_152] : memref<1x1x128xf32, #tpu.memory_space<vmem>>, vector<1x1x128xf32>
    %418 = vector.shape_cast %417 : vector<1x1x128xf32> to vector<1x128xf32>
    %419 = vector.broadcast %418 : vector<1x128xf32> to vector<16x128xf32>
    %420 = arith.addf %416, %419 : vector<16x128xf32>
    %421 = arith.truncf %420 : vector<16x128xf32> to vector<16x128xbf16>
    %c0_153 = arith.constant 0 : index
    %c0_154 = arith.constant 0 : index
    %c0_155 = arith.constant 0 : index
    %422 = vector.load %arg29[%c0_153, %c0_154, %c0_155] : memref<1x128x256xbf16, #tpu.memory_space<vmem>>, vector<1x128x256xbf16>
    %423 = vector.shape_cast %422 : vector<1x128x256xbf16> to vector<128x256xbf16>
    %cst_156 = arith.constant dense<0.000000e+00> : vector<16x256xf32>
    %424 = tpu.matmul %421, %423, %cst_156 {dimension_numbers = #tpu.dot_dimension_numbers<[1], [0], [0], [1], [0, 0, 1, 1], [], []>} : vector<16x128xbf16>, vector<128x256xbf16>, vector<16x256xf32> -> vector<16x256xf32>
    %c0_157 = arith.constant 0 : index
    %c0_158 = arith.constant 0 : index
    %c0_159 = arith.constant 0 : index
    %425 = vector.load %arg30[%c0_157, %c0_158, %c0_159] : memref<1x1x256xf32, #tpu.memory_space<vmem>>, vector<1x1x256xf32>
    %426 = vector.shape_cast %425 : vector<1x1x256xf32> to vector<1x256xf32>
    %427 = vector.broadcast %426 : vector<1x256xf32> to vector<16x256xf32>
    %428 = arith.addf %424, %427 : vector<16x256xf32>
    %cst_160 = arith.constant 0.000000e+00 : f32
    %429 = vector.broadcast %cst_160 : f32 to vector<16x256xf32>
    %430 = arith.subf %429, %428 : vector<16x256xf32>
    %431 = math.exp %430 : vector<16x256xf32>
    %cst_161 = arith.constant 1.000000e+00 : f32
    %432 = vector.broadcast %cst_161 : f32 to vector<16x256xf32>
    %433 = arith.addf %432, %431 : vector<16x256xf32>
    %cst_162 = arith.constant 1.000000e+00 : f32
    %434 = vector.broadcast %cst_162 : f32 to vector<16x256xf32>
    %435 = arith.divf %434, %433 : vector<16x256xf32>
    %436 = arith.mulf %428, %435 : vector<16x256xf32>
    %437 = arith.truncf %436 : vector<16x256xf32> to vector<16x256xbf16>
    %c0_163 = arith.constant 0 : index
    %c0_164 = arith.constant 0 : index
    %c0_165 = arith.constant 0 : index
    %438 = vector.load %arg31[%c0_163, %c0_164, %c0_165] : memref<1x256x128xbf16, #tpu.memory_space<vmem>>, vector<1x256x128xbf16>
    %439 = vector.shape_cast %438 : vector<1x256x128xbf16> to vector<256x128xbf16>
    %cst_166 = arith.constant dense<0.000000e+00> : vector<16x128xf32>
    %440 = tpu.matmul %437, %439, %cst_166 {dimension_numbers = #tpu.dot_dimension_numbers<[1], [0], [0], [1], [0, 0, 1, 1], [], []>} : vector<16x256xbf16>, vector<256x128xbf16>, vector<16x128xf32> -> vector<16x128xf32>
    %c0_167 = arith.constant 0 : index
    %c0_168 = arith.constant 0 : index
    %c0_169 = arith.constant 0 : index
    %441 = vector.load %arg32[%c0_167, %c0_168, %c0_169] : memref<1x1x128xf32, #tpu.memory_space<vmem>>, vector<1x1x128xf32>
    %442 = vector.shape_cast %441 : vector<1x1x128xf32> to vector<1x128xf32>
    %443 = vector.broadcast %442 : vector<1x128xf32> to vector<16x128xf32>
    %444 = arith.addf %440, %443 : vector<16x128xf32>
    %cst_170 = arith.constant 5.000000e-01 : f32
    %445 = vector.broadcast %cst_170 : f32 to vector<16x128xf32>
    %446 = arith.mulf %445, %444 : vector<16x128xf32>
    %447 = arith.addf %394, %446 : vector<16x128xf32>
    %cst_171 = arith.constant dense<0.000000e+00> : vector<16xf32>
    %448 = vector.multi_reduction <add>, %447, %cst_171 [1] : vector<16x128xf32> to vector<16xf32>
    %449 = vector.shape_cast %448 : vector<16xf32> to vector<16x1xf32>
    %cst_172 = arith.constant 1.250000e-02 : f32
    %450 = vector.broadcast %cst_172 : f32 to vector<16x1xf32>
    %451 = arith.mulf %449, %450 : vector<16x1xf32>
    %452 = vector.broadcast %451 : vector<16x1xf32> to vector<16x128xf32>
    %453 = arith.subf %447, %452 : vector<16x128xf32>
    %454 = vector.broadcast %4 : vector<1x128xf32> to vector<16x128xf32>
    %455 = arith.mulf %453, %454 : vector<16x128xf32>
    %456 = arith.mulf %455, %455 : vector<16x128xf32>
    %cst_173 = arith.constant dense<0.000000e+00> : vector<16xf32>
    %457 = vector.multi_reduction <add>, %456, %cst_173 [1] : vector<16x128xf32> to vector<16xf32>
    %458 = vector.shape_cast %457 : vector<16xf32> to vector<16x1xf32>
    %cst_174 = arith.constant 1.250000e-02 : f32
    %459 = vector.broadcast %cst_174 : f32 to vector<16x1xf32>
    %460 = arith.mulf %458, %459 : vector<16x1xf32>
    %cst_175 = arith.constant 9.99999974E-6 : f32
    %461 = vector.broadcast %cst_175 : f32 to vector<16x1xf32>
    %462 = arith.addf %460, %461 : vector<16x1xf32>
    %463 = math.rsqrt %462 : vector<16x1xf32>
    %464 = vector.broadcast %463 : vector<16x1xf32> to vector<16x128xf32>
    %465 = arith.mulf %455, %464 : vector<16x128xf32>
    %c0_176 = arith.constant 0 : index
    %c0_177 = arith.constant 0 : index
    %c0_178 = arith.constant 0 : index
    %466 = vector.load %arg33[%c0_176, %c0_177, %c0_178] : memref<1x1x128xf32, #tpu.memory_space<vmem>>, vector<1x1x128xf32>
    %467 = vector.shape_cast %466 : vector<1x1x128xf32> to vector<1x128xf32>
    %468 = vector.broadcast %467 : vector<1x128xf32> to vector<16x128xf32>
    %469 = arith.mulf %465, %468 : vector<16x128xf32>
    %c0_179 = arith.constant 0 : index
    %c0_180 = arith.constant 0 : index
    %c0_181 = arith.constant 0 : index
    %470 = vector.load %arg34[%c0_179, %c0_180, %c0_181] : memref<1x1x128xf32, #tpu.memory_space<vmem>>, vector<1x1x128xf32>
    %471 = vector.shape_cast %470 : vector<1x1x128xf32> to vector<1x128xf32>
    %472 = vector.broadcast %471 : vector<1x128xf32> to vector<16x128xf32>
    %473 = arith.addf %469, %472 : vector<16x128xf32>
    %c0_182 = arith.constant 0 : index
    %c0_183 = arith.constant 0 : index
    %474 = vector.load %arg38[%c0_182, %c0_183] : memref<16x128xf32, #tpu.memory_space<vmem>>, vector<16x128xf32>
    tpu.vector_store %arg38[%c0_182, %c0_183], %473 {strides = array<i32>} : memref<16x128xf32, #tpu.memory_space<vmem>>, vector<16x128xf32>,
    %c3_i32 = arith.constant 3 : i32
    %475 = arith.cmpi eq, %arg1, %c3_i32 : i32
    %476 = arith.extui %475 : i1 to i32
    %c0_i32_184 = arith.constant 0 : i32
    %477 = arith.cmpi ne, %476, %c0_i32_184 : i32
    scf.if %477 {
      %c0_185 = arith.constant 0 : index
      %c0_186 = arith.constant 0 : index
      %478 = vector.load %arg35[%c0_185, %c0_186] : memref<1x128xf32, #tpu.memory_space<vmem>>, vector<1x128xf32>
      %479 = vector.broadcast %478 : vector<1x128xf32> to vector<16x128xf32>
      %480 = arith.mulf %473, %479 : vector<16x128xf32>
      %cst_187 = arith.constant dense<0.000000e+00> : vector<16xf32>
      %481 = vector.multi_reduction <add>, %480, %cst_187 [1] : vector<16x128xf32> to vector<16xf32>
      %482 = vector.shape_cast %481 : vector<16xf32> to vector<16x1xf32>
      %c0_188 = arith.constant 0 : index
      %c0_189 = arith.constant 0 : index
      %483 = vector.load %arg36[%c0_188, %c0_189] : memref<1x1xf32, #tpu.memory_space<vmem>>, vector<1x1xf32>
      %484 = vector.broadcast %483 : vector<1x1xf32> to vector<16x1xf32>
      %485 = arith.addf %482, %484 : vector<16x1xf32>
      %cst_190 = arith.constant dense<0xFF800000> : vector<1xf32>
      %486 = vector.multi_reduction <maximumf>, %485, %cst_190 [0] : vector<16x1xf32> to vector<1xf32>
      %487 = vector.shape_cast %486 : vector<1xf32> to vector<1x1xf32>
      %488 = vector.broadcast %487 : vector<1x1xf32> to vector<16x1xf32>
      %489 = arith.subf %485, %488 : vector<16x1xf32>
      %490 = math.exp %489 : vector<16x1xf32>
      %cst_191 = arith.constant dense<0.000000e+00> : vector<1xf32>
      %491 = vector.multi_reduction <add>, %490, %cst_191 [0] : vector<16x1xf32> to vector<1xf32>
      %492 = vector.shape_cast %491 : vector<1xf32> to vector<1x1xf32>
      %493 = tpu.reciprocal %492 {approx = true} : vector<1x1xf32> -> vector<1x1xf32>
      %494 = vector.broadcast %493 : vector<1x1xf32> to vector<16x1xf32>
      %495 = arith.mulf %490, %494 : vector<16x1xf32>
      %496 = vector.broadcast %495 : vector<16x1xf32> to vector<16x128xf32>
      %497 = arith.mulf %496, %473 : vector<16x128xf32>
      %cst_192 = arith.constant dense<0.000000e+00> : vector<128xf32>
      %498 = vector.multi_reduction <add>, %497, %cst_192 [0] : vector<16x128xf32> to vector<128xf32>
      %499 = vector.shape_cast %498 : vector<128xf32> to vector<1x128xf32>
      %500 = vector.shape_cast %499 : vector<1x128xf32> to vector<1x1x128xf32>
      %c0_193 = arith.constant 0 : index
      %c0_194 = arith.constant 0 : index
      %c0_195 = arith.constant 0 : index
      %501 = vector.load %arg37[%c0_193, %c0_194, %c0_195] : memref<1x1x128xf32, #tpu.memory_space<vmem>>, vector<1x1x128xf32>
      tpu.vector_store %arg37[%c0_193, %c0_194, %c0_195], %500 {strides = array<i32>} : memref<1x1x128xf32, #tpu.memory_space<vmem>>, vector<1x1x128xf32>,
    } else {
    }
    return
  }
  func.func @transform_0(%arg0: i32, %arg1: i32) -> (i32, i32, i32) {
    %c0_i32 = arith.constant 0 : i32
    %c0_i32_0 = arith.constant 0 : i32
    %c0_i32_1 = arith.constant 0 : i32
    return %arg0, %c0_i32, %c0_i32_0 : i32, i32, i32
  }
  func.func @transform_1(%arg0: i32, %arg1: i32) -> (i32, i32, i32) {
    %c0_i32 = arith.constant 0 : i32
    %c0_i32_0 = arith.constant 0 : i32
    %c0_i32_1 = arith.constant 0 : i32
    return %arg0, %c0_i32, %c0_i32_0 : i32, i32, i32
  }
  func.func @transform_2(%arg0: i32, %arg1: i32) -> (i32, i32) {
    %c0_i32 = arith.constant 0 : i32
    %c0_i32_0 = arith.constant 0 : i32
    %c0_i32_1 = arith.constant 0 : i32
    return %c0_i32, %c0_i32_0 : i32, i32
  }
  func.func @transform_3(%arg0: i32, %arg1: i32) -> (i32, i32) {
    %c0_i32 = arith.constant 0 : i32
    %c0_i32_0 = arith.constant 0 : i32
    %c0_i32_1 = arith.constant 0 : i32
    return %c0_i32, %c0_i32_0 : i32, i32
  }
  func.func @transform_4(%arg0: i32, %arg1: i32) -> (i32, i32, i32) {
    %c0_i32 = arith.constant 0 : i32
    %c0_i32_0 = arith.constant 0 : i32
    %c0_i32_1 = arith.constant 0 : i32
    return %arg1, %c0_i32, %c0_i32_0 : i32, i32, i32
  }
  func.func @transform_5(%arg0: i32, %arg1: i32) -> (i32, i32, i32) {
    %c0_i32 = arith.constant 0 : i32
    %c0_i32_0 = arith.constant 0 : i32
    %c0_i32_1 = arith.constant 0 : i32
    return %arg1, %c0_i32, %c0_i32_0 : i32, i32, i32
  }
  func.func @transform_6(%arg0: i32, %arg1: i32) -> (i32, i32, i32) {
    %c0_i32 = arith.constant 0 : i32
    %c0_i32_0 = arith.constant 0 : i32
    %c0_i32_1 = arith.constant 0 : i32
    return %arg1, %c0_i32, %c0_i32_0 : i32, i32, i32
  }
  func.func @transform_7(%arg0: i32, %arg1: i32) -> (i32, i32, i32) {
    %c0_i32 = arith.constant 0 : i32
    %c0_i32_0 = arith.constant 0 : i32
    %c0_i32_1 = arith.constant 0 : i32
    return %arg1, %c0_i32, %c0_i32_0 : i32, i32, i32
  }
  func.func @transform_8(%arg0: i32, %arg1: i32) -> (i32, i32, i32) {
    %c0_i32 = arith.constant 0 : i32
    %c0_i32_0 = arith.constant 0 : i32
    %c0_i32_1 = arith.constant 0 : i32
    return %arg1, %c0_i32, %c0_i32_0 : i32, i32, i32
  }
  func.func @transform_9(%arg0: i32, %arg1: i32) -> (i32, i32, i32) {
    %c0_i32 = arith.constant 0 : i32
    %c0_i32_0 = arith.constant 0 : i32
    %c0_i32_1 = arith.constant 0 : i32
    return %arg1, %c0_i32, %c0_i32_0 : i32, i32, i32
  }
  func.func @transform_10(%arg0: i32, %arg1: i32) -> (i32, i32, i32) {
    %c0_i32 = arith.constant 0 : i32
    %c0_i32_0 = arith.constant 0 : i32
    %c0_i32_1 = arith.constant 0 : i32
    return %arg1, %c0_i32, %c0_i32_0 : i32, i32, i32
  }
  func.func @transform_11(%arg0: i32, %arg1: i32) -> (i32, i32, i32) {
    %c0_i32 = arith.constant 0 : i32
    %c0_i32_0 = arith.constant 0 : i32
    %c0_i32_1 = arith.constant 0 : i32
    return %arg1, %c0_i32, %c0_i32_0 : i32, i32, i32
  }
  func.func @transform_12(%arg0: i32, %arg1: i32) -> (i32, i32, i32) {
    %c0_i32 = arith.constant 0 : i32
    %c0_i32_0 = arith.constant 0 : i32
    %c0_i32_1 = arith.constant 0 : i32
    return %arg1, %c0_i32, %c0_i32_0 : i32, i32, i32
  }
  func.func @transform_13(%arg0: i32, %arg1: i32) -> (i32, i32, i32) {
    %c0_i32 = arith.constant 0 : i32
    %c0_i32_0 = arith.constant 0 : i32
    %c0_i32_1 = arith.constant 0 : i32
    return %arg1, %c0_i32, %c0_i32_0 : i32, i32, i32
  }
  func.func @transform_14(%arg0: i32, %arg1: i32) -> (i32, i32, i32) {
    %c0_i32 = arith.constant 0 : i32
    %c0_i32_0 = arith.constant 0 : i32
    %c0_i32_1 = arith.constant 0 : i32
    return %arg1, %c0_i32, %c0_i32_0 : i32, i32, i32
  }
  func.func @transform_15(%arg0: i32, %arg1: i32) -> (i32, i32, i32) {
    %c0_i32 = arith.constant 0 : i32
    %c0_i32_0 = arith.constant 0 : i32
    %c0_i32_1 = arith.constant 0 : i32
    return %arg1, %c0_i32, %c0_i32_0 : i32, i32, i32
  }
  func.func @transform_16(%arg0: i32, %arg1: i32) -> (i32, i32, i32) {
    %c0_i32 = arith.constant 0 : i32
    %c0_i32_0 = arith.constant 0 : i32
    %c0_i32_1 = arith.constant 0 : i32
    return %arg1, %c0_i32, %c0_i32_0 : i32, i32, i32
  }
  func.func @transform_17(%arg0: i32, %arg1: i32) -> (i32, i32, i32) {
    %c0_i32 = arith.constant 0 : i32
    %c0_i32_0 = arith.constant 0 : i32
    %c0_i32_1 = arith.constant 0 : i32
    return %arg1, %c0_i32, %c0_i32_0 : i32, i32, i32
  }
  func.func @transform_18(%arg0: i32, %arg1: i32) -> (i32, i32, i32) {
    %c0_i32 = arith.constant 0 : i32
    %c0_i32_0 = arith.constant 0 : i32
    %c0_i32_1 = arith.constant 0 : i32
    return %arg1, %c0_i32, %c0_i32_0 : i32, i32, i32
  }
  func.func @transform_19(%arg0: i32, %arg1: i32) -> (i32, i32, i32) {
    %c0_i32 = arith.constant 0 : i32
    %c0_i32_0 = arith.constant 0 : i32
    %c0_i32_1 = arith.constant 0 : i32
    return %arg1, %c0_i32, %c0_i32_0 : i32, i32, i32
  }
  func.func @transform_20(%arg0: i32, %arg1: i32) -> (i32, i32, i32) {
    %c0_i32 = arith.constant 0 : i32
    %c0_i32_0 = arith.constant 0 : i32
    %c0_i32_1 = arith.constant 0 : i32
    return %arg1, %c0_i32, %c0_i32_0 : i32, i32, i32
  }
  func.func @transform_21(%arg0: i32, %arg1: i32) -> (i32, i32, i32) {
    %c0_i32 = arith.constant 0 : i32
    %c0_i32_0 = arith.constant 0 : i32
    %c0_i32_1 = arith.constant 0 : i32
    return %arg1, %c0_i32, %c0_i32_0 : i32, i32, i32
  }
  func.func @transform_22(%arg0: i32, %arg1: i32) -> (i32, i32, i32) {
    %c0_i32 = arith.constant 0 : i32
    %c0_i32_0 = arith.constant 0 : i32
    %c0_i32_1 = arith.constant 0 : i32
    return %arg1, %c0_i32, %c0_i32_0 : i32, i32, i32
  }
  func.func @transform_23(%arg0: i32, %arg1: i32) -> (i32, i32, i32) {
    %c0_i32 = arith.constant 0 : i32
    %c0_i32_0 = arith.constant 0 : i32
    %c0_i32_1 = arith.constant 0 : i32
    return %arg1, %c0_i32, %c0_i32_0 : i32, i32, i32
  }
  func.func @transform_24(%arg0: i32, %arg1: i32) -> (i32, i32, i32) {
    %c0_i32 = arith.constant 0 : i32
    %c0_i32_0 = arith.constant 0 : i32
    %c0_i32_1 = arith.constant 0 : i32
    return %arg1, %c0_i32, %c0_i32_0 : i32, i32, i32
  }
  func.func @transform_25(%arg0: i32, %arg1: i32) -> (i32, i32, i32) {
    %c0_i32 = arith.constant 0 : i32
    %c0_i32_0 = arith.constant 0 : i32
    %c0_i32_1 = arith.constant 0 : i32
    return %arg1, %c0_i32, %c0_i32_0 : i32, i32, i32
  }
  func.func @transform_26(%arg0: i32, %arg1: i32) -> (i32, i32, i32) {
    %c0_i32 = arith.constant 0 : i32
    %c0_i32_0 = arith.constant 0 : i32
    %c0_i32_1 = arith.constant 0 : i32
    return %arg1, %c0_i32, %c0_i32_0 : i32, i32, i32
  }
  func.func @transform_27(%arg0: i32, %arg1: i32) -> (i32, i32, i32) {
    %c0_i32 = arith.constant 0 : i32
    %c0_i32_0 = arith.constant 0 : i32
    %c0_i32_1 = arith.constant 0 : i32
    return %arg1, %c0_i32, %c0_i32_0 : i32, i32, i32
  }
  func.func @transform_28(%arg0: i32, %arg1: i32) -> (i32, i32, i32) {
    %c0_i32 = arith.constant 0 : i32
    %c0_i32_0 = arith.constant 0 : i32
    %c0_i32_1 = arith.constant 0 : i32
    return %arg1, %c0_i32, %c0_i32_0 : i32, i32, i32
  }
  func.func @transform_29(%arg0: i32, %arg1: i32) -> (i32, i32, i32) {
    %c0_i32 = arith.constant 0 : i32
    %c0_i32_0 = arith.constant 0 : i32
    %c0_i32_1 = arith.constant 0 : i32
    return %arg1, %c0_i32, %c0_i32_0 : i32, i32, i32
  }
  func.func @transform_30(%arg0: i32, %arg1: i32) -> (i32, i32, i32) {
    %c0_i32 = arith.constant 0 : i32
    %c0_i32_0 = arith.constant 0 : i32
    %c0_i32_1 = arith.constant 0 : i32
    return %arg1, %c0_i32, %c0_i32_0 : i32, i32, i32
  }
  func.func @transform_31(%arg0: i32, %arg1: i32) -> (i32, i32, i32) {
    %c0_i32 = arith.constant 0 : i32
    %c0_i32_0 = arith.constant 0 : i32
    %c0_i32_1 = arith.constant 0 : i32
    return %arg1, %c0_i32, %c0_i32_0 : i32, i32, i32
  }
  func.func @transform_32(%arg0: i32, %arg1: i32) -> (i32, i32, i32) {
    %c0_i32 = arith.constant 0 : i32
    %c0_i32_0 = arith.constant 0 : i32
    %c0_i32_1 = arith.constant 0 : i32
    return %arg1, %c0_i32, %c0_i32_0 : i32, i32, i32
  }
  func.func @transform_33(%arg0: i32, %arg1: i32) -> (i32, i32) {
    %c0_i32 = arith.constant 0 : i32
    %c0_i32_0 = arith.constant 0 : i32
    %c0_i32_1 = arith.constant 0 : i32
    return %c0_i32, %c0_i32_0 : i32, i32
  }
  func.func @transform_34(%arg0: i32, %arg1: i32) -> (i32, i32) {
    %c0_i32 = arith.constant 0 : i32
    %c0_i32_0 = arith.constant 0 : i32
    %c0_i32_1 = arith.constant 0 : i32
    return %c0_i32, %c0_i32_0 : i32, i32
  }
  func.func @transform_35(%arg0: i32, %arg1: i32) -> (i32, i32, i32) {
    %c0_i32 = arith.constant 0 : i32
    %c0_i32_0 = arith.constant 0 : i32
    %c0_i32_1 = arith.constant 0 : i32
    return %arg0, %c0_i32, %c0_i32_0 : i32, i32, i32
  }
}

</mosaic_0001>

<bundles_post_ra>
// kernel: classifier_forward.3
= control target key start
LH: loop header
LB: loop body
LE: loop exit
PB: predicated region body
PF: predicated region fallthrough
CT: control target
= control target key end

     0   :  { %v797_v1 = vmov 0.0   ;;  %vm798_vm0 = vmmov 0   ;;  %s1008_s0 = inlined_call_operand.vmem [shape: f32[2,128], index: 0, kind: input, shape index: {}]   ;;  %s1009_s1 = inlined_call_operand.vmem [shape: bf16[128,128], index: 1, kind: input, shape index: {}]   ;;  %s1010_s2 = inlined_call_operand.vmem [shape: f32[1,128], index: 2, kind: input, shape index: {}]   ;;  %s1011_s3 = inlined_call_operand.vmem [shape: bf16[128,640], index: 3, kind: input, shape index: {}]   ;;  %s1012_s4 = inlined_call_operand.vmem [shape: f32[1,640], index: 4, kind: input, shape index: {}]   ;;  %s1013_s5 = inlined_call_operand.hbm [shape: f32[2,640], index: 5, kind: output, shape index: {}]  }
   0x1   :  { %v707_v0 = vld [vmem:[%s1009_s1 + $0x38] sm:$0xff]   ;;  %662 = vmatprep.subr.bf16.mxu0 %v797_v1  ;;  %v708_v2 = vld [vmem:[%s1009_s1 + $0x30] sm:$0xff]   ;;  %678 = vmatprep.mubr.msk.bf16.mxu0 %vm798_vm0, %v797_v1  ;;  %v709_v3 = vld [vmem:[%s1009_s1 + $0x28] sm:$0xff]  }
   0x2   :  { %663 = vmatpush3.bf16.msra.mxu0 %v707_v0  ;;  %v710_v4 = vld [vmem:[%s1009_s1 + $0x20] sm:$0xff]   ;;  %v711_v5 = vld [vmem:[%s1009_s1 + $0x18] sm:$0xff]   ;;  %v712_v6 = vld [vmem:[%s1009_s1 + $0x10] sm:$0xff]  }
   0x3   :  { %664 = vmatprep.subr.bf16.mxu0 %v797_v1  ;;  %v713_v7 = vld [vmem:[%s1009_s1 + $0x8] sm:$0xff]  }
   0x6   :  { %665 = vmatpush3.bf16.msra.mxu0 %v708_v2 }
   0x7   :  { %666 = vmatprep.subr.bf16.mxu0 %v797_v1 }
   0xa   :  { %667 = vmatpush3.bf16.msra.mxu0 %v709_v3 }
   0xb   :  { %668 = vmatprep.subr.bf16.mxu0 %v797_v1 }
   0xe   :  { %669 = vmatpush3.bf16.msra.mxu0 %v710_v4 }
   0xf   :  { %670 = vmatprep.subr.bf16.mxu0 %v797_v1 }
  0x12   :  { %671 = vmatpush3.bf16.msra.mxu0 %v711_v5 }
  0x13   :  { %672 = vmatprep.subr.bf16.mxu0 %v797_v1 }
  0x16   :  { %673 = vmatpush3.bf16.msra.mxu0 %v712_v6 }
  0x17   :  { %674 = vmatprep.subr.bf16.mxu0 %v797_v1 }
  0x18   :  { %10 = vsyncpa [#allocation3], 0  ;;  %v714_v8 = vld [vmem:[%s1009_s1] sm:$0xff]   ;;  %v715_v11 = vld [vmem:[%s1011_s3 + $0x11c] ss:$20 sps:$4 sm:$0xff]   ;;  %v799_v41 = vmov 0   ;;  %v192_v0 = vlaneseq }
  0x19   :  { %v22_v9 = vld [vmem:[%s1008_s0] sm:$0x3]  ;;  %v717_v12 = vld [vmem:[%s1011_s3 + $0x118] ss:$20 sps:$4 sm:$0xff]   ;;  %425 = vmatprep.subr.bf16.mxu1 %v715_v11  ;;  %v721_v15 = vld [vmem:[%s1011_s3 + $0xf4] ss:$20 sps:$4 sm:$0xff]   ;;  %457 = vmatprep.mubr.bf16.mxu1 %v799_v41 }
  0x1a   :  { %675 = vmatpush3.bf16.msra.mxu0 %v713_v7  ;;  %v23_v10 = vpack.c.bf16 %v22_v9, %v22_v9  ;;  %v720_v13 = vld [vmem:[%s1011_s3 + $0x124] ss:$20 sps:$4 sm:$0xff]   ;;  %v718_v14 = vld [vmem:[%s1011_s3 + $0x120] ss:$20 sps:$4 sm:$0xff]   ;;  %426 = vmatpush1.bf16.msra.mxu1 %v717_v12  ;;  %v726_v17 = vld [vmem:[%s1011_s3 + $0xfc] ss:$20 sps:$4 sm:$0xff]  }
  0x1b   :  { %676 = vmatprep.subr.bf16.mxu0 %v797_v1  ;;  %v723_v16 = vld [vmem:[%s1011_s3 + $0xf0] ss:$20 sps:$4 sm:$0xff]   ;;  %427 = vmatprep.subr.bf16.mxu1 %v721_v15  ;;  %v724_v18 = vld [vmem:[%s1011_s3 + $0xf8] ss:$20 sps:$4 sm:$0xff]   ;;  %v729_v20 = vld [vmem:[%s1011_s3 + $0xc8] ss:$20 sps:$4 sm:$0xff]  }
  0x1c   :  { %v727_v19 = vld [vmem:[%s1011_s3 + $0xcc] ss:$20 sps:$4 sm:$0xff]   ;;  %v732_v21 = vld [vmem:[%s1011_s3 + $0xd4] ss:$20 sps:$4 sm:$0xff]   ;;  %v730_v22 = vld [vmem:[%s1011_s3 + $0xd0] ss:$20 sps:$4 sm:$0xff]  }
  0x1d   :  { %v733_v23 = vld [vmem:[%s1011_s3 + $0xa4] ss:$20 sps:$4 sm:$0xff]   ;;  %v735_v24 = vld [vmem:[%s1011_s3 + $0xa0] ss:$20 sps:$4 sm:$0xff]   ;;  %v736_v26 = vld [vmem:[%s1011_s3 + $0xa8] ss:$20 sps:$4 sm:$0xff]  }
  0x1e   :  { %677 = vmatpush3.bf16.msra.mxu0 %v714_v8  ;;  %428 = vmatpush1.bf16.msra.mxu1 %v723_v16  ;;  %v738_v25 = vld [vmem:[%s1011_s3 + $0xac] ss:$20 sps:$4 sm:$0xff]   ;;  %v739_v27 = vld [vmem:[%s1011_s3 + $0x7c] ss:$20 sps:$4 sm:$0xff]   ;;  %v744_v29 = vld [vmem:[%s1011_s3 + $0x84] ss:$20 sps:$4 sm:$0xff]  }
  0x1f   :  { %466 = vmatprep.subr.bf16.mxu0 %v720_v13  ;;  %429 = vmatprep.subr.bf16.mxu1 %v727_v19  ;;  %v741_v28 = vld [vmem:[%s1011_s3 + $0x78] ss:$20 sps:$4 sm:$0xff]   ;;  %v742_v30 = vld [vmem:[%s1011_s3 + $0x80] ss:$20 sps:$4 sm:$0xff]   ;;  %v747_v32 = vld [vmem:[%s1011_s3 + $0x50] ss:$20 sps:$4 sm:$0xff]  }
  0x20   :  { %v745_v31 = vld [vmem:[%s1011_s3 + $0x54] ss:$20 sps:$4 sm:$0xff]   ;;  %v748_v33 = vld [vmem:[%s1011_s3 + $0x58] ss:$20 sps:$4 sm:$0xff]   ;;  %v750_v34 = vld [vmem:[%s1011_s3 + $0x5c] ss:$20 sps:$4 sm:$0xff]  }
  0x21   :  { %679 = vmatmul.mubr.bf16.vlgmr.msra.gmra.mxu0 %v23_v10  ;;  %v751_v35 = vld [vmem:[%s1011_s3 + $0x2c] ss:$20 sps:$4 sm:$0xff]   ;;  %v756_v36 = vld [vmem:[%s1011_s3 + $0x34] ss:$20 sps:$4 sm:$0xff]   ;;  %v754_v38 = vld [vmem:[%s1011_s3 + $0x30] ss:$20 sps:$4 sm:$0xff]  }
  0x22   :  { %467 = vmatpush1.bf16.msra.mxu0 %v718_v14  ;;  %430 = vmatpush1.bf16.msra.mxu1 %v729_v20  ;;  %v753_v37 = vld [vmem:[%s1011_s3 + $0x28] ss:$20 sps:$4 sm:$0xff]   ;;  %v757_v39 = vld [vmem:[%s1011_s3 + $0x4] ss:$20 sps:$4 sm:$0xff]   ;;  %v762_v40 = vld [vmem:[%s1011_s3 + $0xc] ss:$20 sps:$4 sm:$0xff]  }
  0x23   :  { %468 = vmatprep.subr.bf16.mxu0 %v726_v17  ;;  %431 = vmatprep.subr.bf16.mxu1 %v733_v23  ;;  %v759_v42 = vld [vmem:[%s1011_s3] ss:$20 sps:$4 sm:$0xff]   ;;  %v760_v43 = vld [vmem:[%s1011_s3 + $0x8] ss:$20 sps:$4 sm:$0xff]   ;;  %v765_v58 = vld [vmem:[%s1011_s3 + $0xd8] ss:$20 sps:$4 sm:$0xff]  }
  0x24   :  { %498 = vmatprep.mubr.bf16.mxu0 %v799_v41  ;;  %v594_v44 = vld [vmem:[%s1010_s2] ss:$0 sm:$0xff]  ;;  %v763_v55 = vld [vmem:[%s1011_s3 + $0x128] ss:$20 sps:$4 sm:$0xff]   ;;  %v766_v59 = vld [vmem:[%s1011_s3 + $0xb0] ss:$20 sps:$4 sm:$0xff]  }
  0x25   :  { %v764_v57 = vld [vmem:[%s1011_s3 + $0x100] ss:$20 sps:$4 sm:$0xff]   ;;  %v767_v60 = vld [vmem:[%s1011_s3 + $0x88] ss:$20 sps:$4 sm:$0xff]   ;;  %v769_v62 = vld [vmem:[%s1011_s3 + $0x38] ss:$20 sps:$4 sm:$0xff]  }
  0x26   :  { %469 = vmatpush1.bf16.msra.mxu0 %v724_v18  ;;  %432 = vmatpush1.bf16.msra.mxu1 %v735_v24  ;;  %v768_v61 = vld [vmem:[%s1011_s3 + $0x60] ss:$20 sps:$4 sm:$0xff]   ;;  %v770_v63 = vld [vmem:[%s1011_s3 + $0x10] ss:$20 sps:$4 sm:$0xff]   ;;  %v193_v2 = vshrl.u32 %v192_v0, 7  ;;  %s801_s3 = smov [#allocation2]  }
  0x27   :  { %470 = vmatprep.subr.bf16.mxu0 %v732_v21  ;;  %433 = vmatprep.subr.bf16.mxu1 %v739_v27  ;;  %v800_v3 = vmov 1983009808   ;;  %v190_v9 = vld [vmem:[%s1012_s4] sm:$0x1f]  ;;  %s586_s4 = sshll.u32 %s801_s3, 4  ;;  %s587_s4 = int_to_ptr.vmem [resolvable:$true] %s586_s4 }
  0x28   :  { %v555_v4 = vunpack.c.l.s4 %v800_v3  ;;  %v194_v5 = vsub.s32 0, %v193_v2  ;;  %v202_v6 = vsub.s32 2, %v193_v2  ;;  %v198_v7 = vsub.s32 1, %v193_v2  ;;  %s775_s13 = scalar_lea.vmem %s587_s4, 160  ;;  %p780_p1 = scmp.lt.s32.totalorder %s587_s4, %s587_s4 }
  0x29   :  { %v206_v8 = vsub.s32 3, %v193_v2  ;;  %p776_p0 = scmp.ne.s32.totalorder %s587_s4, %s775_s13  ;;  %p781_p2 = scmp.lt.s32.totalorder %s775_s13, %s775_s13 }
  0x2a   :  { %471 = vmatpush1.bf16.msra.mxu0 %v730_v22  ;;  %434 = vmatpush1.bf16.msra.mxu1 %v741_v28  ;;  %v556_v10 = vunpack.c.0.s8 %v555_v4  ;;  %v195_v11 = vrot.slane %v190_v9, %v194_v5  ;;  %v203_v12 = vrot.slane %v190_v9, %v202_v6  ;;  %v199_v13 = vrot.slane %v190_v9, %v198_v7 }
  0x2b   :  { %472 = vmatprep.subr.bf16.mxu0 %v738_v25  ;;  %435 = vmatprep.subr.bf16.mxu1 %v745_v31  ;;  %v207_v14 = vrot.slane %v190_v9, %v206_v8  ;;  %p782_p3 = por %p781_p2, %p780_p1 }
  0x2c   :  { %v559_v17 = vsub.s32 %v556_v10, %v193_v2 }
  0x2d   :  { %p783_p4 = pnand %p782_p3, %p776_p0 }
  0x2e   :  { %473 = vmatpush1.bf16.msra.mxu0 %v736_v26  ;;  %436 = vmatpush1.bf16.msra.mxu1 %v747_v32  ;;  %v210_v32 = vsub.s32 4, %v193_v2 }
  0x2f   :  { %474 = vmatprep.subr.bf16.mxu0 %v744_v29  ;;  %437 = vmatprep.subr.bf16.mxu1 %v751_v35 }
  0x32   :  { %475 = vmatpush1.bf16.msra.mxu0 %v742_v30  ;;  %438 = vmatpush1.bf16.msra.mxu1 %v753_v37 }
  0x33   :  { %476 = vmatprep.subr.bf16.mxu0 %v750_v34  ;;  %439 = vmatprep.subr.bf16.mxu1 %v757_v39 }
  0x36   :  { %477 = vmatpush1.bf16.msra.mxu0 %v748_v33  ;;  %440 = vmatpush1.bf16.msra.mxu1 %v759_v42  ;;  %v211_v33 = vrot.slane %v190_v9, %v210_v32 }
  0x37   :  { %478 = vmatprep.subr.bf16.mxu0 %v756_v36  ;;  %682 = vmatprep.subr.bf16.mxu1 %v797_v1 }
  0x3a   :  { %479 = vmatpush1.bf16.msra.mxu0 %v754_v38 }
  0x3b   :  { %480 = vmatprep.subr.bf16.mxu0 %v762_v40 }
  0x3e   :  { %481 = vmatpush1.bf16.msra.mxu0 %v760_v43 }
  0xe1   :  { %v129_v45 = vpop.f32.mrf.mxu0 }
  0xe2   :  { %v130_v46 = vadd.f32 %v594_v44, %v129_v45 }
  0xe3   :  { %v680_v47 = vpop.f32.mrf.mxu0 }
  0xe4   :  { %v135_v48 = vsub.f32 0.0, %v130_v46 }
  0xe5   :  { %v132_v49 = vpop.f32.mrf.mxu0 }
  0xe6   :  { %v136_v50 = vmul.f32 1.442695, %v135_v48 }
  0xe7   :  { %v681_v51 = vpop.f32.mrf.mxu0 }
  0xe8   :  { %771 = vpow2.f32 %v136_v50 }
  0xf5   :  { %v772_v52 = vpop.eup %771 }
  0xf6   :  { %v138_v53 = vadd.f32 1.0, %v772_v52 }
  0xf8   :  { %773 = vrcp.f32 %v138_v53 }
 0x105   :  { %v774_v54 = vpop.eup %773 }
 0x106   :  { %v141_v56 = vpack.c.bf16 %v774_v54, %v774_v54 }
 0x108   :  { %458 = vmatmul.mubr.bf16.vlgmr.msra.gmra.mxu1 %v141_v56  ;;  %499 = vmatmul.mubr.bf16.vlgmr.msra.gmra.mxu0 %v141_v56 }
 0x109   :  { %683 = vmatpush3.bf16.msra.mxu1 %v763_v55  ;;  %698 = vmatprep.mubr.msk.bf16.mxu1 %vm798_vm0, %v797_v1 }
 0x10a   :  { %684 = vmatprep.subr.bf16.mxu1 %v797_v1 }
 0x10d   :  { %685 = vmatpush3.bf16.msra.mxu1 %v764_v57 }
 0x10e   :  { %686 = vmatprep.subr.bf16.mxu1 %v797_v1 }
 0x111   :  { %687 = vmatpush3.bf16.msra.mxu1 %v765_v58 }
 0x112   :  { %688 = vmatprep.subr.bf16.mxu1 %v797_v1 }
 0x115   :  { %689 = vmatpush3.bf16.msra.mxu1 %v766_v59 }
 0x116   :  { %690 = vmatprep.subr.bf16.mxu1 %v797_v1 }
 0x119   :  { %691 = vmatpush3.bf16.msra.mxu1 %v767_v60 }
 0x11a   :  { %692 = vmatprep.subr.bf16.mxu1 %v797_v1 }
 0x11d   :  { %693 = vmatpush3.bf16.msra.mxu1 %v768_v61 }
 0x11e   :  { %694 = vmatprep.subr.bf16.mxu1 %v797_v1 }
 0x121   :  { %695 = vmatpush3.bf16.msra.mxu1 %v769_v62 }
 0x122   :  { %696 = vmatprep.subr.bf16.mxu1 %v797_v1 }
 0x125   :  { %697 = vmatpush3.bf16.msra.mxu1 %v770_v63 }
 0x128   :  { %699 = vmatmul.mubr.bf16.vlgmr.msra.gmra.mxu1 %v141_v56 }
 0x1c8   :  { %v459_v1 = vpop.f32.mrf.mxu1  ;;  %v500_v15 = vpop.f32.mrf.mxu0 }
 0x1c9   :  { %v460_v19 = vadd.f32 %v459_v1, %v195_v11  ;;  %v501_v20 = vadd.f32 %v500_v15, %v203_v12 }
 0x1ca   :  { %v461_v16 = vpop.f32.mrf.mxu1  ;;  %v502_v18 = vpop.f32.mrf.mxu0 }
 0x1cb   :  { %v462_v21 = vadd.f32 %v461_v16, %v199_v13  ;;  %v503_v22 = vadd.f32 %v502_v18, %v207_v14 }
 0x1cc   :  { %v463_v23 = vpop.f32.mrf.mxu1  ;;  %v504_v24 = vpop.f32.mrf.mxu0 }
 0x1cd   :  { %v552_v25 = vcombine.low %v460_v19, %v462_v21  ;;  %v553_v26 = vcombine.low %v501_v20, %v503_v22 }
 0x1ce   :  { %v464_v27 = vpop.f32.mrf.mxu1  ;;  %v505_v28 = vpop.f32.mrf.mxu0 }
 0x1cf   :  { %v560_v29 = vrot.slane %v552_v25, %v559_v17  ;;  %v567_v30 = vrot.slane %v553_v26, %v559_v17 }
 0x1d1   :  { %v568_v31 = vcombine.low %v560_v29, %v567_v30 }
 0x1d3   :  { %578 = vst [vmem:[#allocation2] sm:$0xff] %v568_v31 }
 0x1e8   :  { %v541_v34 = vpop.f32.mrf.mxu1 }
 0x1e9   :  { %v542_v35 = vadd.f32 %v541_v34, %v211_v33 }
 0x1ea   :  { %v700_v36 = vpop.f32.mrf.mxu1 }
 0x1eb   :  { %643 = vst.sshfl [vmem:[#allocation2 + $0x8] sm:$0x3 pattern:$0x76325410] %v542_v35 }
 0x1ec   :  { %v544_v37 = vpop.f32.mrf.mxu1 }
 0x1ed   :  { %786 = shalt.err (!%p783_p4)
}
 0x1ee   :  { %589 = dma.vmem_to_hbm [thread:$0]  %s587_s4, 160, %s1013_s5, [#allocation3]   ;;  %v701_v38 = vpop.f32.mrf.mxu1 }
 0x1ef   :  { %795 = dma.done.wait [#allocation3], 160  }
 0x1f0   :  { %796 = vsyncadd [#allocation3], 4294967136 }
 0x1f1   :  { %593 = vsyncpa [#allocation3], 1 }

// kernel: classifier_forward.2
= control target key start
LH: loop header
LB: loop body
LE: loop exit
PB: predicated region body
PF: predicated region fallthrough
CT: control target
= control target key end

     0   :  { %s6716_s6 = smov 1   ;;  %s6717_s10 = smov 2   ;;  %s8124_s0 = inlined_call_operand.smem [shape: u32[36], index: -1, kind: input, shape index: {}] }
   0x1   :  { %s6797_s5 = sld [smem:[%s8124_s0]]   ;;  %s6718_s14 = smov 3  }
   0x2   :  { %s6802_s9 = sld [smem:[%s8124_s0 + %s6716_s6]]   ;;  %s6719_s18 = smov 4  }
   0x3   :  { %s6807_s13 = sld [smem:[%s8124_s0 + %s6717_s10]]   ;;  %s6720_s22 = smov 5  }
   0x4   :  { %s6812_s17 = sld [smem:[%s8124_s0 + %s6718_s14]]   ;;  %s6721_s26 = smov 6  }
   0x5   :  { %s6817_s21 = sld [smem:[%s8124_s0 + %s6719_s18]]   ;;  %s6722_s30 = smov 7  }
   0x6   :  { %s6822_s25 = sld [smem:[%s8124_s0 + %s6720_s22]]   ;;  %s6723_s4 = smov 8  }
   0x7   :  { %8195 = sst [smem:[#allocation59_spill]] %s6797_s5  ;;  %s6724_s10 = smov 9  }
   0x8   :  { %8196 = sst [smem:[#allocation60_spill]] %s6802_s9  ;;  %s6725_s15 = smov 10  }
   0x9   :  { %8197 = sst [smem:[#allocation61_spill]] %s6807_s13  ;;  %s6726_s20 = smov 11  }
   0xa   :  { %8198 = sst [smem:[#allocation62_spill]] %s6812_s17  ;;  %s6728_s1 = smov 13  }
   0xb   :  { %8199 = sst [smem:[#allocation63_spill]] %s6817_s21  ;;  %s6729_s7 = smov 14  }
   0xc   :  { %8200 = sst [smem:[#allocation64_spill]] %s6822_s25  ;;  %s6731_s22 = smov 16  }
   0xd   :  { %s6827_s29 = sld [smem:[%s8124_s0 + %s6721_s26]]   ;;  %s6727_s26 = smov 12  }
   0xe   :  { %s6832_s3 = sld [smem:[%s8124_s0 + %s6722_s30]]   ;;  %s6732_s28 = smov 17  }
   0xf   :  { %s6837_s8 = sld [smem:[%s8124_s0 + %s6723_s4]]   ;;  %s6750_s16 = smov 35  }
  0x10   :  { %s6842_s14 = sld [smem:[%s8124_s0 + %s6724_s10]]  }
  0x11   :  { %s6847_s19 = sld [smem:[%s8124_s0 + %s6725_s15]]   ;;  %s6730_s15 = smov 15  }
  0x12   :  { %s6852_s24 = sld [smem:[%s8124_s0 + %s6726_s20]]  }
  0x13   :  { %8201 = sst [smem:[#allocation65_spill]] %s6827_s29 }
  0x14   :  { %8202 = sst [smem:[#allocation66_spill]] %s6832_s3 }
  0x15   :  { %8203 = sst [smem:[#allocation67_spill]] %s6837_s8 }
  0x16   :  { %8204 = sst [smem:[#allocation68_spill]] %s6842_s14 }
  0x17   :  { %8205 = sst [smem:[#allocation69_spill]] %s6847_s19 }
  0x18   :  { %8206 = sst [smem:[#allocation70_spill]] %s6852_s24 }
  0x19   :  { %s6857_s30 = sld [smem:[%s8124_s0 + %s6727_s26]]  }
  0x1a   :  { %s6862_s6 = sld [smem:[%s8124_s0 + %s6728_s1]]  }
  0x1b   :  { %s6867_s12 = sld [smem:[%s8124_s0 + %s6729_s7]]   ;;  %s6733_s7 = smov 18  }
  0x1c   :  { %s6872_s20 = sld [smem:[%s8124_s0 + %s6730_s15]]   ;;  %s6734_s15 = smov 19  }
  0x1d   :  { %s6877_s27 = sld [smem:[%s8124_s0 + %s6731_s22]]   ;;  %s6735_s22 = smov 20  }
  0x1e   :  { %s6882_s4 = sld [smem:[%s8124_s0 + %s6732_s28]]   ;;  %s6736_s28 = smov 21  }
  0x1f   :  { %8207 = sst [smem:[#allocation71_spill]] %s6857_s30 }
  0x20   :  { %8208 = sst [smem:[#allocation72_spill]] %s6862_s6 }
  0x21   :  { %8209 = sst [smem:[#allocation73_spill]] %s6867_s12 }
  0x22   :  { %8210 = sst [smem:[#allocation74_spill]] %s6872_s20 }
  0x23   :  { %8211 = sst [smem:[#allocation75_spill]] %s6877_s27 }
  0x24   :  { %8212 = sst [smem:[#allocation76_spill]] %s6882_s4 }
  0x25   :  { %s6887_s13 = sld [smem:[%s8124_s0 + %s6733_s7]]   ;;  %s6737_s7 = smov 22  }
  0x26   :  { %s6892_s12 = sld [smem:[%s8124_s0 + %s6734_s15]]   ;;  %s6738_s15 = smov 23  }
  0x27   :  { %s6897_s6 = sld [smem:[%s8124_s0 + %s6735_s22]]   ;;  %s6739_s22 = smov 24  }
  0x28   :  { %s6902_s3 = sld [smem:[%s8124_s0 + %s6736_s28]]   ;;  %s6740_s28 = smov 25  }
  0x29   :  { %s6907_s5 = sld [smem:[%s8124_s0 + %s6737_s7]]   ;;  %s6741_s7 = smov 26  }
  0x2a   :  { %s6922_s9 = sld [smem:[%s8124_s0 + %s6740_s28]]   ;;  %s6744_s28 = smov 29  }
  0x2b   :  { %8213 = sst [smem:[#allocation77_spill]] %s6887_s13 }
  0x2c   :  { %8214 = sst [smem:[#allocation78_spill]] %s6892_s12 }
  0x2d   :  { %8215 = sst [smem:[#allocation79_spill]] %s6897_s6 }
  0x2e   :  { %8216 = sst [smem:[#allocation80_spill]] %s6902_s3 }
  0x2f   :  { %8217 = sst [smem:[#allocation81_spill]] %s6907_s5 }
  0x30   :  { %s6912_s12 = sld [smem:[%s8124_s0 + %s6738_s15]]   ;;  %s6742_s15 = smov 27  }
  0x31   :  { %s6917_s6 = sld [smem:[%s8124_s0 + %s6739_s22]]   ;;  %s6743_s22 = smov 28  }
  0x32   :  { %8220 = sst [smem:[#allocation84_spill]] %s6922_s9 }
  0x33   :  { %s6927_s5 = sld [smem:[%s8124_s0 + %s6741_s7]]   ;;  %s6745_s7 = smov 30  }
  0x34   :  { %s6932_s13 = sld [smem:[%s8124_s0 + %s6742_s15]]   ;;  %s6746_s15 = smov 31  }
  0x35   :  { %s6942_s27 = sld [smem:[%s8124_s0 + %s6744_s28]]   ;;  %s6748_s28 = smov 33  }
  0x36   :  { %8218 = sst [smem:[#allocation82_spill]] %s6912_s12 }
  0x37   :  { %8219 = sst [smem:[#allocation83_spill]] %s6917_s6 }
  0x38   :  { %s6937_s6 = sld [smem:[%s8124_s0 + %s6743_s22]]   ;;  %s6747_s22 = smov 32  }
  0x39   :  { %8221 = sst [smem:[#allocation85_spill]] %s6927_s5 }
  0x3a   :  { %8222 = sst [smem:[#allocation86_spill]] %s6932_s13 }
  0x3b   :  { %8224 = sst [smem:[#allocation88_spill]] %s6942_s27 }
  0x3c   :  { %s6947_s5 = sld [smem:[%s8124_s0 + %s6745_s7]]   ;;  %s6749_s7 = smov 34  }
  0x3d   :  { %s6952_s30 = sld [smem:[%s8124_s0 + %s6746_s15]]  }
  0x3e   :  { %8223 = sst [smem:[#allocation87_spill]] %s6937_s6 }
  0x3f   :  { %s6957_s6 = sld [smem:[%s8124_s0 + %s6747_s22]]  }
  0x40   :  { %s6962_s19 = sld [smem:[%s8124_s0 + %s6748_s28]]  }
  0x41   :  { %s6970_s8 = sld [smem:[%s8124_s0 + %s6750_s16]]  }
  0x42   :  { %8225 = sst [smem:[#allocation89_spill]] %s6947_s5 }
  0x43   :  { %8226 = sst [smem:[#allocation90_spill]] %s6952_s30 }
  0x44   :  { %s5061_s5 = sld [smem:[%s8124_s0 + %s6749_s7]]  }
  0x45   :  { %8227 = sst [smem:[#allocation91_spill]] %s6957_s6 }
  0x46   :  { %8228 = sst [smem:[#allocation92_spill]] %s6962_s19 }
  0x47   :  { %8229 = sst [smem:[#allocation93_spill]] %s6970_s8 }
  0x4a   :  { %v76_v0 = vstv %s5061_s5 }
  0x4b   :  { %77 = vst [vmem:[#allocation4] sm:$0x1] %v76_v0 }
  0x4c   :  { %78 = vsyncpa [#allocation6], 0 }
  0x4d   :  { %79 = vsyncpa [#allocation8], 0 }
  0x4e   :  { %81 = vsyncpa [#allocation8 + $0x1], 0 }
  0x4f   :  { %82 = vsyncpa [#allocation11], 0 }
  0x50   :  { %84 = vsyncpa [#allocation11 + $0x1], 0 }
  0x51   :  { %85 = vsyncpa [#allocation14], 0 }
  0x52   :  { %87 = vsyncpa [#allocation14 + $0x1], 0 }
  0x53   :  { %88 = vsyncpa [#allocation17], 0 }
  0x54   :  { %90 = vsyncpa [#allocation17 + $0x1], 0 }
  0x55   :  { %91 = vsyncpa [#allocation20], 0 }
  0x56   :  { %93 = vsyncpa [#allocation20 + $0x1], 0 }
  0x57   :  { %94 = vsyncpa [#allocation23], 0 }
  0x58   :  { %96 = vsyncpa [#allocation23 + $0x1], 0 }
  0x59   :  { %97 = vsyncpa [#allocation26], 0 }
  0x5a   :  { %99 = vsyncpa [#allocation26 + $0x1], 0 }
  0x5b   :  { %100 = vsyncpa [#allocation29], 0 }
  0x5c   :  { %102 = vsyncpa [#allocation29 + $0x1], 0 }
  0x5d   :  { %103 = vsyncpa [#allocation32], 0 }
  0x5e   :  { %105 = vsyncpa [#allocation32 + $0x1], 0 }
  0x5f   :  { %106 = vsyncpa [#allocation35], 0 }
  0x60   :  { %108 = vsyncpa [#allocation35 + $0x1], 0 }
  0x61   :  { %109 = vsyncpa [#allocation38], 0 }
  0x62   :  { %111 = vsyncpa [#allocation38 + $0x1], 0 }
  0x63   :  { %112 = vsyncpa [#allocation41], 0 }
  0x64   :  { %114 = vsyncpa [#allocation41 + $0x1], 0 }
  0x65   :  { %115 = vsyncpa [#allocation44], 0  ;;  %s6972_s0 = smov 0   ;;  %s6974_s5 = smov 0  }
  0x66   :  { %s6976_s22 = smov 0   ;;  %s6978_s23 = smov 0  }
  0x67   :  { %s6980_s26 = smov 0   ;;  %s6982_s28 = smov 0  }
  0x68   :  { %s6984_s1 = smov 0   ;;  %s6986_s2 = smov 0  }
  0x69 LB: > { %s8230_s30 = sld [smem:[#allocation90_spill]]  ;;  %s130_s10 = sadd.s32 1, %s6706_s28  ;;  %s6706_s28 = sphi %s6982_s28, %s8343_s28   ;;  %s6702_s26 = sphi %s6980_s26, %s8342_s26   ;;  %s6698_s23 = sphi %s6978_s23, %s8341_s23   ;;  %s6694_s22 = sphi %s6976_s22, %s8340_s22   ;;  %s6690_s5 = sphi %s6974_s5, %s8339_s5   ;;  %s6686_s0 = sphi %s6972_s0, %s8338_s0   ;;  %s6714_s2 = sphi %s6986_s2, %s121_s2   ;;  %s6710_s1 = sphi %s6984_s1, %s8344_s1  }
  0x6a   : > { %s8231_s27 = sld [smem:[#allocation88_spill]]  ;;  %p131_p0 = scmp.ge.s32.totalorder %s130_s10, 4 }
  0x6b   : > { %s8232_s25 = sld [smem:[#allocation64_spill]]  ;;  %s133_s11 = sadd.s32 1, %s6710_s1 }
  0x6c   : > { %s8233_s24 = sld [smem:[#allocation70_spill]]  ;;  %s234_s16 = sadd.s32 1, %s6694_s22 }
  0x6d   : > { %s8234_s20 = sld [smem:[#allocation74_spill]]  ;;  %p241_p1 = scmp.ne.s32.totalorder %s6694_s22, %s6690_s5 }
  0x6e   : > { %s8235_s14 = sld [smem:[#allocation68_spill]]  ;;  %s8346_s10 = smov (%p131_p0, %s130_s10), 0 }
  0x6f   : > { %s8236_s6 = sld [smem:[#allocation91_spill]]  ;;  %s8348_s11 = smov (!%p131_p0, %s133_s11), %s6710_s1 }
  0x70   : > { %s8237_s13 = sld [smem:[#allocation86_spill]]  ;;  %s231_s15 = ssub.s32 %s6706_s28, %s8346_s10 }
  0x71   : > { %s8238_s12 = sld [smem:[#allocation82_spill]]  ;;  %p242_p2 = scmp.eq.s32.totalorder %s6714_s2, 0 }
  0x72   : > { %s8239_s9 = sld [smem:[#allocation84_spill]]  ;;  %p135_p3 = scmp.ge.s32.totalorder %s8348_s11, 2 }
  0x73   : > { %s8240_s4 = sld [smem:[#allocation76_spill]]  ;;  %p232_p4 = scmp.eq.s32.totalorder %s231_s15, 0 }
  0x74   : > { %s8241_s3 = sld [smem:[#allocation80_spill]]  ;;  %p7022_p5 = por %p242_p2, %p241_p1 }
  0x75   : > { %s8242_s29 = sld [smem:[#allocation65_spill]]  ;;  %p247_p6 = scmp.ne.s32.totalorder %s6690_s5, %s6686_s0 }
  0x76   : > { %s8243_s21 = sld [smem:[#allocation63_spill]]  ;;  %s8350_s11 = smov (%p135_p3, %s8348_s11), 0 }
  0x77   : > { %8244 = sst [smem:[#allocation94_spill]] %s6690_s5  ;;  %s8255_s8 = sadd.s32 4294967295, %s6714_s2  }
  0x78   : > { %8245 = sst [smem:[#allocation95_spill]] %s6694_s22  ;;  %p7034_p7 = scmp.eq.s32.totalorder %s8255_s8, 0 }
  0x79   : > { %8246 = sst [smem:[#allocation96_spill]] %s6698_s23  ;;  %p5065_p8 = scmp.ge.s32.totalorder %s6714_s2, 1 }
  0x7a   : > { %8247 = sst [smem:[#allocation97_spill]] %s6702_s26  ;;  %p1054_p9 = scmp.lt.s32.totalorder %s6714_s2, 9 }
  0x7b   : > { %8248 = sst [smem:[#allocation98_spill]] %s6706_s28  ;;  %p7042_p10 = por %p7034_p7, %p247_p6 }
  0x7c   : > { %8249 = sst [smem:[#allocation99_spill]] %s6710_s1  ;;  %p7046_p11 = pnand %p5065_p8, %p1054_p9 }
  0x7d   : > { %8250 = sst [smem:[#allocation100_spill]] %s6714_s2  ;;  %s6752_s8 = smov [#allocation43]  }
  0x7e   : > { %8251 = sst [smem:[#allocation101_spill]] %s8346_s10  ;;  %p5544_p12 = pneg %p7046_p11 }
  0x7f   : > { %s8252_s18 = scalar_select %p7022_p5, 1, 0 }
  0x80   : > { %8253 = sst [smem:[#allocation102_spill]] %s8350_s11  ;;  %s1081_s10 = sshll.u32 %s6752_s8, 4  ;;  %s1082_s10 = int_to_ptr.vmem [resolvable:$true] %s1081_s10 }
  0x81   : > { %s7030_s7 = scalar_select %p232_p4, %s6694_s22, %s234_s16  }
  0x82   : > { %s8256_s23 = scalar_select %p7034_p7, 1, 0 }
  0x83   : > { %8254 = sst [smem:[#allocation103_spill]] %s7030_s7  ;;  %s6751_s16 = smov [#allocation5]  }
  0x84   : > { %8257 = sst [smem:[#allocation104_spill]] %s8256_s23  ;;  %s1070_s11 = sshll.u32 %s6751_s16, 4  ;;  %s1071_s11 = int_to_ptr.vmem [resolvable:$true] %s1070_s11 }
  0x85   : > { %s8258_s15 = scalar_select %p7042_p10, 1, 0 }
  0x86   : > { %s8260_s0 = scalar_select %p7046_p11, 1, 0 }
  0x87   : > { %8259 = sst [smem:[#allocation105_spill]] %s8258_s15  ;;  %p7054_p13 = pnand %p5544_p12, %p7034_p7 }
  0x88   : > { %s5931_s7 = scalar_lea.vmem %s1071_s11, 16  ;;  %s5938_s16 = scalar_lea.vmem %s1071_s11, 32 }
  0x89   : > { %p5922_p0 = pneg %p7054_p13  ;;  %p5932_p1 = scmp.ne.s32.totalorder %s1071_s11, %s5931_s7 }
  0x8a   : > { %p5939_p4 = scmp.lt.s32.totalorder %s1071_s11, %s1071_s11  ;;  %p5940_p6 = scmp.lt.s32.totalorder %s5938_s16, %s5931_s7 }
  0x8b   : > { %p5934_p2 = pnand %p5932_p1, %p5922_p0 }
  0x8c   : > { %p5941_p8 = por %p5940_p6, %p5939_p4 }
  0x8d   : > { %p5935_p3 = pneg %p5934_p2 }
  0x8f   : > { %p5942_p9 = pnand %p5941_p8, %p5935_p3 }
  0x91   : > { %5945 = shalt.err (!%p5942_p9)
}
  0x92   : > { %s8262_s17 = sld [smem:[#allocation62_spill]]  ;;  %s5957_s8 = scalar_lea.vmem %s1082_s10, 16 }
  0x93   : > { %p5958_p12 = scmp.ne.s32.totalorder %s1082_s10, %s5957_s8  ;;  %s5964_s26 = scalar_lea.vmem %s1082_s10, 32 }
  0x94   : > { %p5965_p1 = scmp.lt.s32.totalorder %s1082_s10, %s1082_s10  ;;  %p5966_p2 = scmp.lt.s32.totalorder %s5964_s26, %s5957_s8 }
  0x95   : > { %p5960_p10 = pnand %p5958_p12, %p5922_p0 }
  0x96   : > { %p5967_p11 = por %p5966_p2, %p5965_p1 }
  0x97   : > { %p5961_p7 = pneg %p5960_p10 }
  0x98   : > { %5547 = dma.hbm_to_vmem [thread:$0]  (!%p7054_p13), %s8262_s17, 16, %s1071_s11, [#allocation6]  }
  0x99   : > { %p5968_p5 = pnand %p5967_p11, %p5961_p7 }
  0x9b   : > { %5971 = shalt.err (!%p5968_p5)
}
  0x9c   : > { %s8263_s19 = sld [smem:[#allocation92_spill]]  ;;  %p5068_p3 = scmp.ge.s32.totalorder %s6714_s2, 8 }
  0x9d   : > { %s7074_s7 = sand.u32 (!%p5068_p3), 1, %s6714_s2   ;;  %s7077_s26 = sand.u32 (!%p5068_p3), 1, %s6694_s22  }
  0x9e   : > { %1091 = sbr.rel (%p5068_p3) target bundleno = 757 (0x2f5), region = 32  ;;  %s7080_s11 = sshll.u32 (!%p5068_p3), %s6706_s28, 4 }
  0x9f   : > { %s1112_s1 = scalar_lea.vmem (!%p5068_p3), [#allocation7], %s7077_s26  ;;  %s1117_s16 = scalar_lea.hbm (!%p5068_p3), %s8243_s21, %s7080_s11 }
  0xa0   : > { %s5972_s17 = scalar_lea.hbm (!%p5068_p3), %s1117_s16, 16  ;;  %p8264_p7 = scmp.ne.s32.totalorder (!%p5068_p3), %s8252_s18, 0 }
  0xa1   : > { %p5973_p5 = scmp.ne.s32.totalorder (!%p5068_p3), %s1117_s16, %s5972_s17 }
  0xa2   : > { %5550 = dma.hbm_to_vmem [thread:$0]  (!%p7054_p13), %s8263_s19, 16, %s1082_s10, [#allocation44]  }
  0xa3   : > { %s1119_s10 = sshll.u32 %s1112_s1, 4  ;;  %p5974_p10 = pnand %p5973_p5, %p8264_p7  ;;  %s1120_s10 = int_to_ptr.vmem [resolvable:$true] %s1119_s10 }
  0xa4   : > { %s5976_s19 = scalar_lea.hbm %s8243_s21, 64  ;;  %p5977_p13 = scmp.lt.s32.totalorder %s1117_s16, %s8243_s21 }
  0xa5   : > { %p5975_p11 = pneg %p5974_p10  ;;  %p5978_p0 = scmp.lt.s32.totalorder %s5976_s19, %s5972_s17 }
  0xa7   : > { %p5979_p4 = por %p5978_p0, %p5977_p13 }
  0xa9   : > { %p5980_p6 = pnand %p5979_p4, %p5975_p11 }
  0xab   : > { %5983 = shalt.err (!%p5980_p6)
}
  0xac   : > { %s5984_s22 = scalar_lea.vmem %s1120_s10, 16  ;;  %s6753_s1 = smov [#allocation7]  }
  0xad   : > { %p5985_p8 = scmp.ne.s32.totalorder %s1120_s10, %s5984_s22  ;;  %s5988_s15 = sshll.u32 %s6753_s1, 4  ;;  %s5989_s15 = int_to_ptr.vmem [resolvable:$false] %s5988_s15 }
  0xae   : > { %s5990_s8 = scalar_lea.vmem %s5989_s15, 32  ;;  %p5991_p1 = scmp.lt.s32.totalorder %s1120_s10, %s5989_s15 }
  0xaf   : > { %p5986_p9 = pnand %p5985_p8, %p8264_p7  ;;  %p5992_p2 = scmp.lt.s32.totalorder %s5990_s8, %s5984_s22 }
  0xb1   : > { %p5987_p12 = pneg %p5986_p9  ;;  %p5993_p3 = por %p5992_p2, %p5991_p1 }
  0xb3   : > { %p5994_p5 = pnand %p5993_p3, %p5987_p12 }
  0xb5   : > { %5997 = shalt.err (!%p5994_p5)
}
  0xb6   : > { %s8265_s17 = scalar_lea.sflag [#allocation8], %s7074_s7  ;;  %s7097_s19 = sshll.u32 %s7077_s26, 7 }
  0xb7   : > { %5492 = dma.hbm_to_vmem [thread:$0]  (%p8264_p7), %s1117_s16, 16, %s1120_s10, %s8265_s17  }
  0xb8   : > { %s7100_s15 = sshll.u32 %s6706_s28, 11  ;;  %s1147_s8 = scalar_lea.vmem [#allocation10], %s7097_s19 }
  0xb9   : > { %s7104_s22 = scalar_lea.hbm %s8242_s29, %s7100_s15  ;;  %s1154_s1 = sshll.u32 %s1147_s8, 4  ;;  %s7107_s1 = int_to_ptr.vmem [resolvable:$true] %s1154_s1 }
  0xba   : > { %s5998_s5 = scalar_lea.hbm %s7104_s22, 2048  ;;  %s6002_s10 = scalar_lea.hbm %s8242_s29, 8192 }
  0xbb   : > { %p5999_p10 = scmp.ne.s32.totalorder %s7104_s22, %s5998_s5  ;;  %p6003_p0 = scmp.lt.s32.totalorder %s7104_s22, %s8242_s29 }
  0xbc   : > { %p6004_p4 = scmp.lt.s32.totalorder %s6002_s10, %s5998_s5 }
  0xbd   : > { %p6000_p11 = pnand %p5999_p10, %p8264_p7 }
  0xbe   : > { %p6005_p6 = por %p6004_p4, %p6003_p0 }
  0xbf   : > { %p6001_p13 = pneg %p6000_p11 }
  0xc1   : > { %p6006_p8 = pnand %p6005_p6, %p6001_p13 }
  0xc3   : > { %6009 = shalt.err (!%p6006_p8)
}
  0xc4   : > { %s6010_s16 = scalar_lea.vmem %s7107_s1, 2048  ;;  %s6754_s17 = smov [#allocation10]  }
  0xc5   : > { %p6011_p9 = scmp.ne.s32.totalorder %s7107_s1, %s6010_s16  ;;  %s6014_s8 = sshll.u32 %s6754_s17, 4  ;;  %s6015_s8 = int_to_ptr.vmem [resolvable:$false] %s6014_s8 }
  0xc6   : > { %s6016_s21 = scalar_lea.vmem %s6015_s8, 4096  ;;  %p6017_p2 = scmp.lt.s32.totalorder %s7107_s1, %s6015_s8 }
  0xc7   : > { %p6012_p12 = pnand %p6011_p9, %p8264_p7  ;;  %p6018_p3 = scmp.lt.s32.totalorder %s6016_s21, %s6010_s16 }
  0xc9   : > { %p6013_p1 = pneg %p6012_p12  ;;  %p6019_p5 = por %p6018_p3, %p6017_p2 }
  0xcb   : > { %p6020_p10 = pnand %p6019_p5, %p6013_p1 }
  0xcd   : > { %6023 = shalt.err (!%p6020_p10)
}
  0xce   : > { %s8158_s5 = smov 128   ;;  %s8160_s10 = smov 8  }
  0xcf   : > { %s8266_s21 = scalar_lea.sflag [#allocation11], %s7074_s7  ;;  %s7133_s16 = scalar_lea.hbm %s8235_s14, %s7080_s11 }
  0xd0   : > { %5494 = dma.hbm_to_vmem [thread:$0]  (%p8264_p7), %s7104_s22, 2048, %s7107_s1, %s8266_s21, %s8158_s5, %s8158_s5, %s8160_s10  }
  0xd1   : > { %s1195_s17 = scalar_lea.vmem [#allocation13], %s7077_s26  ;;  %s8154_s29 = scalar_lea.sflag [#allocation14], %s7074_s7 }
  0xd2   : > { %s1202_s8 = sshll.u32 %s1195_s17, 4  ;;  %s6024_s2 = scalar_lea.hbm %s7133_s16, 16  ;;  %s1203_s8 = int_to_ptr.vmem [resolvable:$true] %s1202_s8 }
  0xd3   : > { %p6025_p11 = scmp.ne.s32.totalorder %s7133_s16, %s6024_s2  ;;  %s6028_s23 = scalar_lea.hbm %s8235_s14, 64 }
  0xd4   : > { %p6029_p4 = scmp.lt.s32.totalorder %s7133_s16, %s8235_s14  ;;  %p6030_p6 = scmp.lt.s32.totalorder %s6028_s23, %s6024_s2 }
  0xd5   : > { %p6026_p13 = pnand %p6025_p11, %p8264_p7 }
  0xd6   : > { %p6031_p8 = por %p6030_p6, %p6029_p4 }
  0xd7   : > { %p6027_p0 = pneg %p6026_p13 }
  0xd9   : > { %p6032_p9 = pnand %p6031_p8, %p6027_p0 }
  0xdb   : > { %6035 = shalt.err (!%p6032_p9)
}
  0xdc   : > { %s6036_s22 = scalar_lea.vmem %s1203_s8, 16  ;;  %s6757_s1 = smov [#allocation13]  }
  0xdd   : > { %p6037_p12 = scmp.ne.s32.totalorder %s1203_s8, %s6036_s22  ;;  %s6040_s21 = sshll.u32 %s6757_s1, 4  ;;  %s6041_s21 = int_to_ptr.vmem [resolvable:$false] %s6040_s21 }
  0xde   : > { %s6042_s17 = scalar_lea.vmem %s6041_s21, 32  ;;  %p6043_p3 = scmp.lt.s32.totalorder %s1203_s8, %s6041_s21 }
  0xdf   : > { %p6038_p1 = pnand %p6037_p12, %p8264_p7  ;;  %p6044_p5 = scmp.lt.s32.totalorder %s6042_s17, %s6036_s22 }
  0xe1   : > { %p6039_p2 = pneg %p6038_p1  ;;  %p6045_p10 = por %p6044_p5, %p6043_p3 }
  0xe3   : > { %p6046_p11 = pnand %p6045_p10, %p6039_p2 }
  0xe5   : > { %6049 = shalt.err (!%p6046_p11)
}
  0xe6   : > { %5496 = dma.hbm_to_vmem [thread:$0]  (%p8264_p7), %s7133_s16, 16, %s1203_s8, %s8154_s29  }
  0xe7   : > { %s7153_s23 = scalar_lea.hbm %s8233_s24, %s7080_s11  ;;  %s1229_s2 = scalar_lea.vmem [#allocation16], %s7077_s26 }
  0xe8   : > { %s1236_s22 = sshll.u32 %s1229_s2, 4  ;;  %s8155_s1 = scalar_lea.sflag [#allocation17], %s7074_s7  ;;  %s1237_s22 = int_to_ptr.vmem [resolvable:$true] %s1236_s22 }
  0xe9   : > { %s6050_s21 = scalar_lea.hbm %s7153_s23, 16  ;;  %s6054_s17 = scalar_lea.hbm %s8233_s24, 64 }
  0xea   : > { %p6051_p13 = scmp.ne.s32.totalorder %s7153_s23, %s6050_s21  ;;  %p6055_p6 = scmp.lt.s32.totalorder %s7153_s23, %s8233_s24 }
  0xeb   : > { %p6056_p8 = scmp.lt.s32.totalorder %s6054_s17, %s6050_s21 }
  0xec   : > { %p6052_p0 = pnand %p6051_p13, %p8264_p7 }
  0xed   : > { %p6057_p9 = por %p6056_p8, %p6055_p6 }
  0xee   : > { %p6053_p4 = pneg %p6052_p0 }
  0xf0   : > { %p6058_p12 = pnand %p6057_p9, %p6053_p4 }
  0xf2   : > { %6061 = shalt.err (!%p6058_p12)
}
  0xf3   : > { %s6062_s16 = scalar_lea.vmem %s1237_s22, 16  ;;  %s6758_s8 = smov [#allocation16]  }
  0xf4   : > { %p6063_p1 = scmp.ne.s32.totalorder %s1237_s22, %s6062_s16  ;;  %s6066_s2 = sshll.u32 %s6758_s8, 4  ;;  %s6067_s2 = int_to_ptr.vmem [resolvable:$false] %s6066_s2 }
  0xf5   : > { %s6068_s29 = scalar_lea.vmem %s6067_s2, 32  ;;  %p6069_p5 = scmp.lt.s32.totalorder %s1237_s22, %s6067_s2 }
  0xf6   : > { %p6064_p2 = pnand %p6063_p1, %p8264_p7  ;;  %p6070_p10 = scmp.lt.s32.totalorder %s6068_s29, %s6062_s16 }
  0xf8   : > { %p6065_p3 = pneg %p6064_p2  ;;  %p6071_p11 = por %p6070_p10, %p6069_p5 }
  0xfa   : > { %p6072_p13 = pnand %p6071_p11, %p6065_p3 }
  0xfc   : > { %6075 = shalt.err (!%p6072_p13)
}
  0xfd   : > { %5498 = dma.hbm_to_vmem [thread:$0]  (%p8264_p7), %s7153_s23, 16, %s1237_s22, %s8155_s1  }
  0xfe   : > { %s7173_s21 = scalar_lea.hbm %s8234_s20, %s7080_s11  ;;  %s1282_s29 = scalar_lea.vmem [#allocation19], %s7077_s26 }
  0xff   : > { %s1289_s17 = sshll.u32 %s1282_s29, 4  ;;  %s8156_s16 = scalar_lea.sflag [#allocation20], %s7074_s7  ;;  %s1290_s17 = int_to_ptr.vmem [resolvable:$true] %s1289_s17 }
 0x100   : > { %s6076_s8 = scalar_lea.hbm %s7173_s21, 16  ;;  %s6080_s2 = scalar_lea.hbm %s8234_s20, 64 }
 0x101   : > { %p6077_p0 = scmp.ne.s32.totalorder %s7173_s21, %s6076_s8  ;;  %p6081_p8 = scmp.lt.s32.totalorder %s7173_s21, %s8234_s20 }
 0x102   : > { %p6082_p9 = scmp.lt.s32.totalorder %s6080_s2, %s6076_s8 }
 0x103   : > { %p6078_p4 = pnand %p6077_p0, %p8264_p7 }
 0x104   : > { %p6083_p12 = por %p6082_p9, %p6081_p8 }
 0x105   : > { %p6079_p6 = pneg %p6078_p4 }
 0x107   : > { %p6084_p1 = pnand %p6083_p12, %p6079_p6 }
 0x109   : > { %6087 = shalt.err (!%p6084_p1)
}
 0x10a   : > { %s6088_s23 = scalar_lea.vmem %s1290_s17, 16  ;;  %s6759_s22 = smov [#allocation19]  }
 0x10b   : > { %p6089_p2 = scmp.ne.s32.totalorder %s1290_s17, %s6088_s23  ;;  %s6092_s29 = sshll.u32 %s6759_s22, 4  ;;  %s6093_s29 = int_to_ptr.vmem [resolvable:$false] %s6092_s29 }
 0x10c   : > { %s6094_s1 = scalar_lea.vmem %s6093_s29, 32  ;;  %p6095_p10 = scmp.lt.s32.totalorder %s1290_s17, %s6093_s29 }
 0x10d   : > { %p6090_p3 = pnand %p6089_p2, %p8264_p7  ;;  %p6096_p11 = scmp.lt.s32.totalorder %s6094_s1, %s6088_s23 }
 0x10f   : > { %p6091_p5 = pneg %p6090_p3  ;;  %p6097_p13 = por %p6096_p11, %p6095_p10 }
 0x111   : > { %p6098_p0 = pnand %p6097_p13, %p6091_p5 }
 0x113   : > { %6101 = shalt.err (!%p6098_p0)
}
 0x114   : > { %5500 = dma.hbm_to_vmem [thread:$0]  (%p8264_p7), %s7173_s21, 16, %s1290_s17, %s8156_s16  }
 0x115   : > { %s7193_s8 = scalar_lea.hbm %s8240_s4, %s7080_s11  ;;  %s1316_s1 = scalar_lea.vmem [#allocation22], %s7077_s26 }
 0x116   : > { %s1323_s2 = sshll.u32 %s1316_s1, 4  ;;  %s8157_s23 = scalar_lea.sflag [#allocation23], %s7074_s7  ;;  %s1324_s2 = int_to_ptr.vmem [resolvable:$true] %s1323_s2 }
 0x117   : > { %s6102_s22 = scalar_lea.hbm %s7193_s8, 16  ;;  %s6106_s29 = scalar_lea.hbm %s8240_s4, 64 }
 0x118   : > { %p6103_p4 = scmp.ne.s32.totalorder %s7193_s8, %s6102_s22  ;;  %p6107_p9 = scmp.lt.s32.totalorder %s7193_s8, %s8240_s4 }
 0x119   : > { %p6108_p12 = scmp.lt.s32.totalorder %s6106_s29, %s6102_s22 }
 0x11a   : > { %p6104_p6 = pnand %p6103_p4, %p8264_p7 }
 0x11b   : > { %p6109_p1 = por %p6108_p12, %p6107_p9 }
 0x11c   : > { %p6105_p8 = pneg %p6104_p6 }
 0x11e   : > { %p6110_p2 = pnand %p6109_p1, %p6105_p8 }
 0x120   : > { %6113 = shalt.err (!%p6110_p2)
}
 0x121   : > { %s6114_s21 = scalar_lea.vmem %s1324_s2, 16  ;;  %s6760_s17 = smov [#allocation22]  }
 0x122   : > { %p6115_p3 = scmp.ne.s32.totalorder %s1324_s2, %s6114_s21  ;;  %s6118_s1 = sshll.u32 %s6760_s17, 4  ;;  %s6119_s1 = int_to_ptr.vmem [resolvable:$false] %s6118_s1 }
 0x123   : > { %s6120_s16 = scalar_lea.vmem %s6119_s1, 32  ;;  %p6121_p11 = scmp.lt.s32.totalorder %s1324_s2, %s6119_s1 }
 0x124   : > { %p6116_p5 = pnand %p6115_p3, %p8264_p7  ;;  %p6122_p13 = scmp.lt.s32.totalorder %s6120_s16, %s6114_s21 }
 0x126   : > { %p6117_p10 = pneg %p6116_p5  ;;  %p6123_p0 = por %p6122_p13, %p6121_p11 }
 0x128   : > { %p6124_p4 = pnand %p6123_p0, %p6117_p10 }
 0x12a   : > { %6127 = shalt.err (!%p6124_p4)
}
 0x12b   : > { %5502 = dma.hbm_to_vmem [thread:$0]  (%p8264_p7), %s7193_s8, 16, %s1324_s2, %s8157_s23  }
 0x12c   : > { %s7213_s22 = scalar_lea.hbm %s8241_s3, %s7080_s11  ;;  %s1369_s16 = scalar_lea.vmem [#allocation25], %s7077_s26 }
 0x12d   : > { %s1376_s29 = sshll.u32 %s1369_s16, 4  ;;  %s8162_s21 = scalar_lea.sflag [#allocation26], %s7074_s7  ;;  %s1377_s29 = int_to_ptr.vmem [resolvable:$true] %s1376_s29 }
 0x12e   : > { %s6128_s17 = scalar_lea.hbm %s7213_s22, 16  ;;  %s6132_s1 = scalar_lea.hbm %s8241_s3, 64 }
 0x12f   : > { %p6129_p6 = scmp.ne.s32.totalorder %s7213_s22, %s6128_s17  ;;  %p6133_p12 = scmp.lt.s32.totalorder %s7213_s22, %s8241_s3 }
 0x130   : > { %p6134_p1 = scmp.lt.s32.totalorder %s6132_s1, %s6128_s17 }
 0x131   : > { %p6130_p8 = pnand %p6129_p6, %p8264_p7 }
 0x132   : > { %p6135_p2 = por %p6134_p1, %p6133_p12 }
 0x133   : > { %p6131_p9 = pneg %p6130_p8 }
 0x135   : > { %p6136_p3 = pnand %p6135_p2, %p6131_p9 }
 0x137   : > { %6139 = shalt.err (!%p6136_p3)
}
 0x138   : > { %s6140_s8 = scalar_lea.vmem %s1377_s29, 16  ;;  %s6761_s2 = smov [#allocation25]  }
 0x139   : > { %p6141_p5 = scmp.ne.s32.totalorder %s1377_s29, %s6140_s8  ;;  %s6144_s16 = sshll.u32 %s6761_s2, 4  ;;  %s6145_s16 = int_to_ptr.vmem [resolvable:$false] %s6144_s16 }
 0x13a   : > { %s6146_s23 = scalar_lea.vmem %s6145_s16, 32  ;;  %p6147_p13 = scmp.lt.s32.totalorder %s1377_s29, %s6145_s16 }
 0x13b   : > { %p6142_p10 = pnand %p6141_p5, %p8264_p7  ;;  %p6148_p0 = scmp.lt.s32.totalorder %s6146_s23, %s6140_s8 }
 0x13d   : > { %p6143_p11 = pneg %p6142_p10  ;;  %p6149_p4 = por %p6148_p0, %p6147_p13 }
 0x13f   : > { %p6150_p6 = pnand %p6149_p4, %p6143_p11 }
 0x141   : > { %6153 = shalt.err (!%p6150_p6)
}
 0x142   : > { %5504 = dma.hbm_to_vmem [thread:$0]  (%p8264_p7), %s7213_s22, 16, %s1377_s29, %s8162_s21  }
 0x143   : > { %s5089_s17 = sshll.u32 %s7077_s26, 6  ;;  %s5285_s1 = sshll.u32 %s6706_s28, 10 }
 0x144   : > { %s7234_s2 = scalar_lea.hbm %s8238_s12, %s5285_s1  ;;  %s1404_s23 = scalar_lea.vmem [#allocation28], %s5089_s17 }
 0x145   : > { %s1411_s8 = sshll.u32 %s1404_s23, 4  ;;  %s8163_s16 = scalar_lea.sflag [#allocation29], %s7074_s7  ;;  %s7236_s8 = int_to_ptr.vmem [resolvable:$true] %s1411_s8 }
 0x146   : > { %s6154_s5 = scalar_lea.hbm %s7234_s2, 1024  ;;  %s6158_s10 = scalar_lea.hbm %s8238_s12, 4096 }
 0x147   : > { %p6155_p8 = scmp.ne.s32.totalorder %s7234_s2, %s6154_s5  ;;  %p6159_p1 = scmp.lt.s32.totalorder %s7234_s2, %s8238_s12 }
 0x148   : > { %p6160_p2 = scmp.lt.s32.totalorder %s6158_s10, %s6154_s5 }
 0x149   : > { %p6156_p9 = pnand %p6155_p8, %p8264_p7 }
 0x14a   : > { %p6161_p3 = por %p6160_p2, %p6159_p1 }
 0x14b   : > { %p6157_p12 = pneg %p6156_p9 }
 0x14d   : > { %p6162_p5 = pnand %p6161_p3, %p6157_p12 }
 0x14f   : > { %6165 = shalt.err (!%p6162_p5)
}
 0x150   : > { %s6166_s22 = scalar_lea.vmem %s7236_s8, 1024  ;;  %s6762_s29 = smov [#allocation28]  }
 0x151   : > { %p6167_p10 = scmp.ne.s32.totalorder %s7236_s8, %s6166_s22  ;;  %s6170_s17 = sshll.u32 %s6762_s29, 4  ;;  %s6171_s17 = int_to_ptr.vmem [resolvable:$false] %s6170_s17 }
 0x152   : > { %s6172_s1 = scalar_lea.vmem %s6171_s17, 2048  ;;  %p6173_p0 = scmp.lt.s32.totalorder %s7236_s8, %s6171_s17 }
 0x153   : > { %p6168_p11 = pnand %p6167_p10, %p8264_p7  ;;  %p6174_p4 = scmp.lt.s32.totalorder %s6172_s1, %s6166_s22 }
 0x155   : > { %p6169_p13 = pneg %p6168_p11  ;;  %p6175_p6 = por %p6174_p4, %p6173_p0 }
 0x157   : > { %p6176_p8 = pnand %p6175_p6, %p6169_p13 }
 0x159   : > { %6179 = shalt.err (!%p6176_p8)
}
 0x15a   : > { %s8165_s5 = smov 64   ;;  %s8167_s10 = smov 4  }
 0x15b   : > { %5506 = dma.hbm_to_vmem [thread:$0]  (%p8264_p7), %s7234_s2, 1024, %s7236_s8, %s8163_s16, %s8165_s5, %s8165_s5, %s8167_s10  }
 0x15c   : > { %s7262_s23 = scalar_lea.hbm %s8239_s9, %s7080_s11  ;;  %s1441_s22 = scalar_lea.vmem [#allocation31], %s7077_s26 }
 0x15d   : > { %s1448_s29 = sshll.u32 %s1441_s22, 4  ;;  %s8164_s17 = scalar_lea.sflag [#allocation32], %s7074_s7  ;;  %s1449_s29 = int_to_ptr.vmem [resolvable:$true] %s1448_s29 }
 0x15e   : > { %s6180_s1 = scalar_lea.hbm %s7262_s23, 16  ;;  %s6184_s21 = scalar_lea.hbm %s8239_s9, 64 }
 0x15f   : > { %p6181_p9 = scmp.ne.s32.totalorder %s7262_s23, %s6180_s1  ;;  %p6185_p2 = scmp.lt.s32.totalorder %s7262_s23, %s8239_s9 }
 0x160   : > { %p6186_p3 = scmp.lt.s32.totalorder %s6184_s21, %s6180_s1 }
 0x161   : > { %p6182_p12 = pnand %p6181_p9, %p8264_p7 }
 0x162   : > { %p6187_p5 = por %p6186_p3, %p6185_p2 }
 0x163   : > { %p6183_p1 = pneg %p6182_p12 }
 0x165   : > { %p6188_p10 = pnand %p6187_p5, %p6183_p1 }
 0x167   : > { %6191 = shalt.err (!%p6188_p10)
}
 0x168   : > { %s6192_s2 = scalar_lea.vmem %s1449_s29, 16  ;;  %s6765_s8 = smov [#allocation31]  }
 0x169   : > { %p6193_p11 = scmp.ne.s32.totalorder %s1449_s29, %s6192_s2  ;;  %s6196_s22 = sshll.u32 %s6765_s8, 4  ;;  %s6197_s22 = int_to_ptr.vmem [resolvable:$false] %s6196_s22 }
 0x16a   : > { %s6198_s16 = scalar_lea.vmem %s6197_s22, 32  ;;  %p6199_p4 = scmp.lt.s32.totalorder %s1449_s29, %s6197_s22 }
 0x16b   : > { %p6194_p13 = pnand %p6193_p11, %p8264_p7  ;;  %p6200_p6 = scmp.lt.s32.totalorder %s6198_s16, %s6192_s2 }
 0x16d   : > { %p6195_p0 = pneg %p6194_p13  ;;  %p6201_p8 = por %p6200_p6, %p6199_p4 }
 0x16f   : > { %p6202_p9 = pnand %p6201_p8, %p6195_p0 }
 0x171   : > { %6205 = shalt.err (!%p6202_p9)
}
 0x172   : > { %5508 = dma.hbm_to_vmem [thread:$0]  (%p8264_p7), %s7262_s23, 16, %s1449_s29, %s8164_s17  }
 0x173   : > { %s7282_s21 = scalar_lea.hbm %s8237_s13, %s7100_s15  ;;  %s1476_s16 = scalar_lea.vmem [#allocation34], %s7097_s19 }
 0x174   : > { %s1483_s1 = sshll.u32 %s1476_s16, 4  ;;  %s8169_s2 = scalar_lea.sflag [#allocation35], %s7074_s7  ;;  %s7285_s1 = int_to_ptr.vmem [resolvable:$true] %s1483_s1 }
 0x175   : > { %s6206_s8 = scalar_lea.hbm %s7282_s21, 2048  ;;  %s6210_s22 = scalar_lea.hbm %s8237_s13, 8192 }
 0x176   : > { %p6207_p12 = scmp.ne.s32.totalorder %s7282_s21, %s6206_s8  ;;  %p6211_p3 = scmp.lt.s32.totalorder %s7282_s21, %s8237_s13 }
 0x177   : > { %p6212_p5 = scmp.lt.s32.totalorder %s6210_s22, %s6206_s8 }
 0x178   : > { %p6208_p1 = pnand %p6207_p12, %p8264_p7 }
 0x179   : > { %p6213_p10 = por %p6212_p5, %p6211_p3 }
 0x17a   : > { %p6209_p2 = pneg %p6208_p1 }
 0x17c   : > { %p6214_p11 = pnand %p6213_p10, %p6209_p2 }
 0x17e   : > { %6217 = shalt.err (!%p6214_p11)
}
 0x17f   : > { %s6218_s23 = scalar_lea.vmem %s7285_s1, 2048  ;;  %s6766_s29 = smov [#allocation34]  }
 0x180   : > { %p6219_p13 = scmp.ne.s32.totalorder %s7285_s1, %s6218_s23  ;;  %s6222_s16 = sshll.u32 %s6766_s29, 4  ;;  %s6223_s16 = int_to_ptr.vmem [resolvable:$false] %s6222_s16 }
 0x181   : > { %s6224_s17 = scalar_lea.vmem %s6223_s16, 4096  ;;  %p6225_p6 = scmp.lt.s32.totalorder %s7285_s1, %s6223_s16 }
 0x182   : > { %p6220_p0 = pnand %p6219_p13, %p8264_p7  ;;  %p6226_p8 = scmp.lt.s32.totalorder %s6224_s17, %s6218_s23 }
 0x184   : > { %p6221_p4 = pneg %p6220_p0  ;;  %p6227_p9 = por %p6226_p8, %p6225_p6 }
 0x186   : > { %p6228_p12 = pnand %p6227_p9, %p6221_p4 }
 0x188   : > { %6231 = shalt.err (!%p6228_p12)
}
 0x189   : > { %s8267_s8 = smov 8   ;;  %s8268_s22 = smov 128  }
 0x18a   : > { %5510 = dma.hbm_to_vmem [thread:$0]  (%p8264_p7), %s7282_s21, 2048, %s7285_s1, %s8169_s2, %s8268_s22, %s8268_s22, %s8267_s8  }
 0x18b   : > { %s7311_s17 = scalar_lea.hbm %s8231_s27, %s7100_s15  ;;  %s1516_s23 = scalar_lea.vmem [#allocation37], %s7097_s19 }
 0x18c   : > { %s1523_s29 = sshll.u32 %s1516_s23, 4  ;;  %s8172_s16 = scalar_lea.sflag [#allocation38], %s7074_s7  ;;  %s7314_s29 = int_to_ptr.vmem [resolvable:$true] %s1523_s29 }
 0x18d   : > { %s6232_s5 = scalar_lea.hbm %s7311_s17, 2048  ;;  %s6236_s10 = scalar_lea.hbm %s8231_s27, 8192 }
 0x18e   : > { %p6233_p1 = scmp.ne.s32.totalorder %s7311_s17, %s6232_s5  ;;  %p6237_p5 = scmp.lt.s32.totalorder %s7311_s17, %s8231_s27 }
 0x18f   : > { %p6238_p10 = scmp.lt.s32.totalorder %s6236_s10, %s6232_s5 }
 0x190   : > { %p6234_p2 = pnand %p6233_p1, %p8264_p7 }
 0x191   : > { %p6239_p11 = por %p6238_p10, %p6237_p5 }
 0x192   : > { %p6235_p3 = pneg %p6234_p2 }
 0x194   : > { %p6240_p13 = pnand %p6239_p11, %p6235_p3 }
 0x196   : > { %6243 = shalt.err (!%p6240_p13)
}
 0x197   : > { %s6244_s21 = scalar_lea.vmem %s7314_s29, 2048  ;;  %s6767_s1 = smov [#allocation37]  }
 0x198   : > { %p6245_p0 = scmp.ne.s32.totalorder %s7314_s29, %s6244_s21  ;;  %s6248_s23 = sshll.u32 %s6767_s1, 4  ;;  %s6249_s23 = int_to_ptr.vmem [resolvable:$false] %s6248_s23 }
 0x199   : > { %s6250_s2 = scalar_lea.vmem %s6249_s23, 4096  ;;  %p6251_p8 = scmp.lt.s32.totalorder %s7314_s29, %s6249_s23 }
 0x19a   : > { %p6246_p4 = pnand %p6245_p0, %p8264_p7  ;;  %p6252_p9 = scmp.lt.s32.totalorder %s6250_s2, %s6244_s21 }
 0x19c   : > { %p6247_p6 = pneg %p6246_p4  ;;  %p6253_p12 = por %p6252_p9, %p6251_p8 }
 0x19e   : > { %p6254_p1 = pnand %p6253_p12, %p6247_p6 }
 0x1a0   : > { %6257 = shalt.err (!%p6254_p1)
}
 0x1a1   : > { %s8269_s5 = smov 4   ;;  %s8270_s10 = smov 64  }
 0x1a2   : > { %5512 = dma.hbm_to_vmem [thread:$0]  (%p8264_p7), %s7311_s17, 2048, %s7314_s29, %s8172_s16, %s8270_s10, %s8270_s10, %s8269_s5  }
 0x1a3   : > { %s7340_s2 = scalar_lea.hbm %s8230_s30, %s7080_s11  ;;  %s1553_s21 = scalar_lea.vmem [#allocation40], %s7077_s26 }
 0x1a4   : > { %s1560_s1 = sshll.u32 %s1553_s21, 4  ;;  %s8173_s23 = scalar_lea.sflag [#allocation41], %s7074_s7  ;;  %s1561_s1 = int_to_ptr.vmem [resolvable:$true] %s1560_s1 }
 0x1a5   : > { %s6258_s3 = scalar_lea.hbm %s7340_s2, 16  ;;  %s6262_s4 = scalar_lea.hbm %s8230_s30, 64 }
 0x1a6   : > { %p6259_p2 = scmp.ne.s32.totalorder %s7340_s2, %s6258_s3  ;;  %p6263_p10 = scmp.lt.s32.totalorder %s7340_s2, %s8230_s30 }
 0x1a7   : > { %p6264_p11 = scmp.lt.s32.totalorder %s6262_s4, %s6258_s3 }
 0x1a8   : > { %p6260_p3 = pnand %p6259_p2, %p8264_p7 }
 0x1a9   : > { %p6265_p13 = por %p6264_p11, %p6263_p10 }
 0x1aa   : > { %p6261_p5 = pneg %p6260_p3 }
 0x1ac   : > { %p6266_p0 = pnand %p6265_p13, %p6261_p5 }
 0x1ae   : > { %6269 = shalt.err (!%p6266_p0)
}
 0x1af   : > { %s6270_s17 = scalar_lea.vmem %s1561_s1, 16  ;;  %s6768_s29 = smov [#allocation40]  }
 0x1b0   : > { %p6271_p4 = scmp.ne.s32.totalorder %s1561_s1, %s6270_s17  ;;  %s6274_s21 = sshll.u32 %s6768_s29, 4  ;;  %s6275_s21 = int_to_ptr.vmem [resolvable:$false] %s6274_s21 }
 0x1b1   : > { %s6276_s16 = scalar_lea.vmem %s6275_s21, 32  ;;  %p6277_p9 = scmp.lt.s32.totalorder %s1561_s1, %s6275_s21 }
 0x1b2   : > { %p6272_p6 = pnand %p6271_p4, %p8264_p7  ;;  %p6278_p12 = scmp.lt.s32.totalorder %s6276_s16, %s6270_s17 }
 0x1b4   : > { %p6273_p8 = pneg %p6272_p6  ;;  %p6279_p1 = por %p6278_p12, %p6277_p9 }
 0x1b6   : > { %p6280_p2 = pnand %p6279_p1, %p6273_p8 }
 0x1b8   : > { %6283 = shalt.err (!%p6280_p2)
}
 0x1b9   : > { %5514 = dma.hbm_to_vmem [thread:$0]  (%p8264_p7), %s7340_s2, 16, %s1561_s1, %s8173_s23  }
 0x1ba   : > { %s1134_s3 = scalar_lea.hbm %s8232_s25, %s7080_s11  ;;  %s1129_s4 = scalar_lea.vmem [#allocation9], %s7077_s26 }
 0x1bb   : > { %s1136_s29 = sshll.u32 %s1129_s4, 4  ;;  %s6284_s16 = scalar_lea.hbm %s1134_s3, 16  ;;  %s1137_s29 = int_to_ptr.vmem [resolvable:$true] %s1136_s29 }
 0x1bc   : > { %p6285_p3 = scmp.ne.s32.totalorder %s1134_s3, %s6284_s16  ;;  %s6288_s17 = scalar_lea.hbm %s8232_s25, 64 }
 0x1bd   : > { %p6289_p11 = scmp.lt.s32.totalorder %s1134_s3, %s8232_s25  ;;  %p6290_p13 = scmp.lt.s32.totalorder %s6288_s17, %s6284_s16 }
 0x1be   : > { %p6286_p5 = pnand %p6285_p3, %p8264_p7 }
 0x1bf   : > { %p6291_p0 = por %p6290_p13, %p6289_p11 }
 0x1c0   : > { %p6287_p10 = pneg %p6286_p5 }
 0x1c2   : > { %p6292_p4 = pnand %p6291_p0, %p6287_p10 }
 0x1c4   : > { %6295 = shalt.err (!%p6292_p4)
}
 0x1c5   : > { %s6296_s21 = scalar_lea.vmem %s1137_s29, 16  ;;  %s6769_s2 = smov [#allocation9]  }
 0x1c6   : > { %p6297_p6 = scmp.ne.s32.totalorder %s1137_s29, %s6296_s21  ;;  %s6300_s1 = sshll.u32 %s6769_s2, 4  ;;  %s6301_s1 = int_to_ptr.vmem [resolvable:$false] %s6300_s1 }
 0x1c7   : > { %s6302_s4 = scalar_lea.vmem %s6301_s1, 32  ;;  %p6303_p12 = scmp.lt.s32.totalorder %s1137_s29, %s6301_s1 }
 0x1c8   : > { %p6298_p8 = pnand %p6297_p6, %p8264_p7  ;;  %p6304_p1 = scmp.lt.s32.totalorder %s6302_s4, %s6296_s21 }
 0x1ca   : > { %p6299_p9 = pneg %p6298_p8  ;;  %p6305_p2 = por %p6304_p1, %p6303_p12 }
 0x1cc   : > { %p6306_p3 = pnand %p6305_p2, %p6299_p9 }
 0x1ce   : > { %6309 = shalt.err (!%p6306_p3)
}
 0x1cf   : > { %s8271_s16 = scalar_lea.sflag [#allocation8], %s7074_s7  ;;  %s8272_s17 = sld [smem:[#allocation67_spill]] }
 0x1d0   : > { %5493 = dma.hbm_to_vmem [thread:$0]  (%p8264_p7), %s1134_s3, 16, %s1137_s29, %s8271_s16  }
 0x1d1   : > { %s1175_s21 = scalar_lea.vmem [#allocation12], %s7097_s19 }
 0x1d2   : > { %s1182_s2 = sshll.u32 %s1175_s21, 4  ;;  %s1183_s2 = int_to_ptr.vmem [resolvable:$true] %s1182_s2 }
 0x1d5   : > { %s7373_s23 = scalar_lea.hbm %s8272_s17, %s7100_s15  ;;  %s6314_s4 = scalar_lea.hbm %s8272_s17, 8192 }
 0x1d6   : > { %s6310_s1 = scalar_lea.hbm %s7373_s23, 2048  ;;  %p6315_p13 = scmp.lt.s32.totalorder %s7373_s23, %s8272_s17 }
 0x1d7   : > { %p6311_p5 = scmp.ne.s32.totalorder %s7373_s23, %s6310_s1  ;;  %p6316_p0 = scmp.lt.s32.totalorder %s6314_s4, %s6310_s1 }
 0x1d9   : > { %p6312_p10 = pnand %p6311_p5, %p8264_p7  ;;  %p6317_p4 = por %p6316_p0, %p6315_p13 }
 0x1db   : > { %p6313_p11 = pneg %p6312_p10 }
 0x1dd   : > { %p6318_p6 = pnand %p6317_p4, %p6313_p11 }
 0x1df   : > { %6321 = shalt.err (!%p6318_p6)
}
 0x1e0   : > { %s6322_s3 = scalar_lea.vmem %s1183_s2, 2048  ;;  %s6770_s29 = smov [#allocation12]  }
 0x1e1   : > { %p6323_p8 = scmp.ne.s32.totalorder %s1183_s2, %s6322_s3  ;;  %s6326_s16 = sshll.u32 %s6770_s29, 4  ;;  %s6327_s16 = int_to_ptr.vmem [resolvable:$false] %s6326_s16 }
 0x1e2   : > { %s6328_s21 = scalar_lea.vmem %s6327_s16, 4096  ;;  %p6329_p1 = scmp.lt.s32.totalorder %s1183_s2, %s6327_s16 }
 0x1e3   : > { %p6324_p9 = pnand %p6323_p8, %p8264_p7  ;;  %p6330_p2 = scmp.lt.s32.totalorder %s6328_s21, %s6322_s3 }
 0x1e5   : > { %p6325_p12 = pneg %p6324_p9  ;;  %p6331_p3 = por %p6330_p2, %p6329_p1 }
 0x1e7   : > { %p6332_p5 = pnand %p6331_p3, %p6325_p12 }
 0x1e9   : > { %6335 = shalt.err (!%p6332_p5)
}
 0x1ea   : > { %s8273_s1 = scalar_lea.sflag [#allocation11], %s7074_s7  ;;  %s8274_s4 = sld [smem:[#allocation69_spill]] }
 0x1eb   : > { %5495 = dma.hbm_to_vmem [thread:$0]  (%p8264_p7), %s7373_s23, 2048, %s1183_s2, %s8273_s1, %s8270_s10, %s8270_s10, %s8269_s5  }
 0x1ec   : > { %s1212_s29 = scalar_lea.vmem [#allocation15], %s7077_s26  ;;  %s5484_s21 = smul.u32 192, %s7077_s26 }
 0x1ed   : > { %s1219_s16 = sshll.u32 %s1212_s29, 4  ;;  %s1220_s16 = int_to_ptr.vmem [resolvable:$true] %s1219_s16 }
 0x1f0   : > { %s7395_s3 = scalar_lea.hbm %s8274_s4, %s7080_s11  ;;  %s6340_s12 = scalar_lea.hbm %s8274_s4, 64 }
 0x1f1   : > { %s6336_s9 = scalar_lea.hbm %s7395_s3, 16  ;;  %p6341_p0 = scmp.lt.s32.totalorder %s7395_s3, %s8274_s4 }
 0x1f2   : > { %p6337_p10 = scmp.ne.s32.totalorder %s7395_s3, %s6336_s9  ;;  %p6342_p4 = scmp.lt.s32.totalorder %s6340_s12, %s6336_s9 }
 0x1f4   : > { %p6338_p11 = pnand %p6337_p10, %p8264_p7  ;;  %p6343_p6 = por %p6342_p4, %p6341_p0 }
 0x1f6   : > { %p6339_p13 = pneg %p6338_p11 }
 0x1f8   : > { %p6344_p8 = pnand %p6343_p6, %p6339_p13 }
 0x1fa   : > { %6347 = shalt.err (!%p6344_p8)
}
 0x1fb   : > { %s6348_s5 = scalar_lea.vmem %s1220_s16, 16  ;;  %s6771_s10 = smov [#allocation15]  }
 0x1fc   : > { %p6349_p9 = scmp.ne.s32.totalorder %s1220_s16, %s6348_s5  ;;  %s6352_s23 = sshll.u32 %s6771_s10, 4  ;;  %s6353_s23 = int_to_ptr.vmem [resolvable:$false] %s6352_s23 }
 0x1fd   : > { %s6354_s2 = scalar_lea.vmem %s6353_s23, 32  ;;  %p6355_p2 = scmp.lt.s32.totalorder %s1220_s16, %s6353_s23 }
 0x1fe   : > { %p6350_p12 = pnand %p6349_p9, %p8264_p7  ;;  %p6356_p3 = scmp.lt.s32.totalorder %s6354_s2, %s6348_s5 }
 0x200   : > { %p6351_p1 = pneg %p6350_p12  ;;  %p6357_p5 = por %p6356_p3, %p6355_p2 }
 0x202   : > { %p6358_p10 = pnand %p6357_p5, %p6351_p1 }
 0x204   : > { %6361 = shalt.err (!%p6358_p10)
}
 0x205   : > { %s8275_s9 = scalar_lea.sflag [#allocation14], %s7074_s7  ;;  %s8276_s12 = sld [smem:[#allocation71_spill]] }
 0x206   : > { %5497 = dma.hbm_to_vmem [thread:$0]  (%p8264_p7), %s7395_s3, 16, %s1220_s16, %s8275_s9  }
 0x207   : > { %s5485_s1 = smul.u32 3072, %s6706_s28  ;;  %s1247_s29 = scalar_lea.vmem [#allocation18], %s5484_s21 }
 0x208   : > { %s1254_s10 = sshll.u32 %s1247_s29, 4  ;;  %s7417_s10 = int_to_ptr.vmem [resolvable:$true] %s1254_s10 }
 0x20b   : > { %s7415_s4 = scalar_lea.hbm %s8276_s12, %s5485_s1  ;;  %s6366_s23 = scalar_lea.hbm %s8276_s12, 12288 }
 0x20c   : > { %s6362_s5 = scalar_lea.hbm %s7415_s4, 3072  ;;  %p6367_p4 = scmp.lt.s32.totalorder %s7415_s4, %s8276_s12 }
 0x20d   : > { %p6363_p11 = scmp.ne.s32.totalorder %s7415_s4, %s6362_s5  ;;  %p6368_p6 = scmp.lt.s32.totalorder %s6366_s23, %s6362_s5 }
 0x20f   : > { %p6364_p13 = pnand %p6363_p11, %p8264_p7  ;;  %p6369_p8 = por %p6368_p6, %p6367_p4 }
 0x211   : > { %p6365_p0 = pneg %p6364_p13 }
 0x213   : > { %p6370_p9 = pnand %p6369_p8, %p6365_p0 }
 0x215   : > { %6373 = shalt.err (!%p6370_p9)
}
 0x216   : > { %s6374_s3 = scalar_lea.vmem %s7417_s10, 3072  ;;  %s6772_s16 = smov [#allocation18]  }
 0x217   : > { %p6375_p12 = scmp.ne.s32.totalorder %s7417_s10, %s6374_s3  ;;  %s6378_s21 = sshll.u32 %s6772_s16, 4  ;;  %s6379_s21 = int_to_ptr.vmem [resolvable:$false] %s6378_s21 }
 0x218   : > { %s6380_s2 = scalar_lea.vmem %s6379_s21, 6144  ;;  %p6381_p3 = scmp.lt.s32.totalorder %s7417_s10, %s6379_s21 }
 0x219   : > { %p6376_p1 = pnand %p6375_p12, %p8264_p7  ;;  %p6382_p5 = scmp.lt.s32.totalorder %s6380_s2, %s6374_s3 }
 0x21b   : > { %p6377_p2 = pneg %p6376_p1  ;;  %p6383_p10 = por %p6382_p5, %p6381_p3 }
 0x21d   : > { %p6384_p11 = pnand %p6383_p10, %p6377_p2 }
 0x21f   : > { %6387 = shalt.err (!%p6384_p11)
}
 0x220   : > { %s6773_s9 = smov 192   ;;  %s8277_s1 = sld [smem:[#allocation75_spill]] }
 0x221   : > { %s6774_s5 = smov 12   ;;  %s8279_s23 = scalar_lea.sflag [#allocation17], %s7074_s7 }
 0x222   : > { %5499 = dma.hbm_to_vmem [thread:$0]  (%p8264_p7), %s7415_s4, 3072, %s7417_s10, %s8279_s23, %s6773_s9, %s6773_s9, %s6774_s5  }
 0x223   : > { %s1299_s3 = scalar_lea.vmem [#allocation21], %s7077_s26 }
 0x224   : > { %s1306_s21 = sshll.u32 %s1299_s3, 4  ;;  %s1307_s21 = int_to_ptr.vmem [resolvable:$true] %s1306_s21 }
 0x226   : > { %s8278_s29 = smov %s8277_s1  ;;  %s1304_s16 = scalar_lea.hbm %s8277_s1, %s7080_s11 }
 0x227   : > { %s6388_s2 = scalar_lea.hbm %s1304_s16, 16  ;;  %s6392_s12 = scalar_lea.hbm %s8278_s29, 64 }
 0x228   : > { %p6389_p13 = scmp.ne.s32.totalorder %s1304_s16, %s6388_s2  ;;  %p6393_p6 = scmp.lt.s32.totalorder %s1304_s16, %s8278_s29 }
 0x229   : > { %p6394_p8 = scmp.lt.s32.totalorder %s6392_s12, %s6388_s2 }
 0x22a   : > { %p6390_p0 = pnand %p6389_p13, %p8264_p7 }
 0x22b   : > { %p6395_p9 = por %p6394_p8, %p6393_p6 }
 0x22c   : > { %p6391_p4 = pneg %p6390_p0 }
 0x22e   : > { %p6396_p12 = pnand %p6395_p9, %p6391_p4 }
 0x230   : > { %6399 = shalt.err (!%p6396_p12)
}
 0x231   : > { %s6400_s13 = scalar_lea.vmem %s1307_s21, 16  ;;  %s6775_s4 = smov [#allocation21]  }
 0x232   : > { %p6401_p1 = scmp.ne.s32.totalorder %s1307_s21, %s6400_s13  ;;  %s6404_s10 = sshll.u32 %s6775_s4, 4  ;;  %s6405_s10 = int_to_ptr.vmem [resolvable:$false] %s6404_s10 }
 0x233   : > { %s6406_s9 = scalar_lea.vmem %s6405_s10, 32  ;;  %p6407_p5 = scmp.lt.s32.totalorder %s1307_s21, %s6405_s10 }
 0x234   : > { %p6402_p2 = pnand %p6401_p1, %p8264_p7  ;;  %p6408_p10 = scmp.lt.s32.totalorder %s6406_s9, %s6400_s13 }
 0x236   : > { %p6403_p3 = pneg %p6402_p2  ;;  %p6409_p11 = por %p6408_p10, %p6407_p5 }
 0x238   : > { %p6410_p13 = pnand %p6409_p11, %p6403_p3 }
 0x23a   : > { %6413 = shalt.err (!%p6410_p13)
}
 0x23b   : > { %s8280_s12 = scalar_lea.sflag [#allocation20], %s7074_s7  ;;  %s8281_s1 = sld [smem:[#allocation77_spill]] }
 0x23c   : > { %5501 = dma.hbm_to_vmem [thread:$0]  (%p8264_p7), %s1304_s16, 16, %s1307_s21, %s8280_s12  }
 0x23d   : > { %s1334_s13 = scalar_lea.vmem [#allocation24], %s7097_s19 }
 0x23e   : > { %s1341_s23 = sshll.u32 %s1334_s13, 4  ;;  %s1342_s23 = int_to_ptr.vmem [resolvable:$true] %s1341_s23 }
 0x241   : > { %s8282_s3 = smov %s8281_s1  ;;  %s7452_s5 = scalar_lea.hbm %s8281_s1, %s7100_s15 }
 0x242   : > { %s6414_s2 = scalar_lea.hbm %s7452_s5, 2048  ;;  %s6418_s4 = scalar_lea.hbm %s8282_s3, 8192 }
 0x243   : > { %p6415_p0 = scmp.ne.s32.totalorder %s7452_s5, %s6414_s2  ;;  %p6419_p8 = scmp.lt.s32.totalorder %s7452_s5, %s8282_s3 }
 0x244   : > { %p6420_p9 = scmp.lt.s32.totalorder %s6418_s4, %s6414_s2 }
 0x245   : > { %p6416_p4 = pnand %p6415_p0, %p8264_p7 }
 0x246   : > { %p6421_p12 = por %p6420_p9, %p6419_p8 }
 0x247   : > { %p6417_p6 = pneg %p6416_p4 }
 0x249   : > { %p6422_p1 = pnand %p6421_p12, %p6417_p6 }
 0x24b   : > { %6425 = shalt.err (!%p6422_p1)
}
 0x24c   : > { %s6426_s16 = scalar_lea.vmem %s1342_s23, 2048  ;;  %s6776_s19 = smov [#allocation24]  }
 0x24d   : > { %p6427_p2 = scmp.ne.s32.totalorder %s1342_s23, %s6426_s16  ;;  %s6430_s15 = sshll.u32 %s6776_s19, 4  ;;  %s6431_s15 = int_to_ptr.vmem [resolvable:$false] %s6430_s15 }
 0x24e   : > { %s6432_s21 = scalar_lea.vmem %s6431_s15, 4096  ;;  %p6433_p10 = scmp.lt.s32.totalorder %s1342_s23, %s6431_s15 }
 0x24f   : > { %p6428_p3 = pnand %p6427_p2, %p8264_p7  ;;  %p6434_p11 = scmp.lt.s32.totalorder %s6432_s21, %s6426_s16 }
 0x251   : > { %p6429_p5 = pneg %p6428_p3  ;;  %p6435_p13 = por %p6434_p11, %p6433_p10 }
 0x253   : > { %p6436_p0 = pnand %p6435_p13, %p6429_p5 }
 0x255   : > { %6439 = shalt.err (!%p6436_p0)
}
 0x256   : > { %s8283_s10 = scalar_lea.sflag [#allocation23], %s7074_s7  ;;  %s8284_s9 = sld [smem:[#allocation81_spill]] }
 0x257   : > { %5503 = dma.hbm_to_vmem [thread:$0]  (%p8264_p7), %s7452_s5, 2048, %s1342_s23, %s8283_s10, %s8268_s22, %s8268_s22, %s8267_s8  }
 0x258   : > { %s1386_s1 = scalar_lea.vmem [#allocation27], %s7077_s26 }
 0x259   : > { %s1393_s13 = sshll.u32 %s1386_s1, 4  ;;  %s1394_s13 = int_to_ptr.vmem [resolvable:$true] %s1393_s13 }
 0x25c   : > { %s1391_s12 = scalar_lea.hbm %s8284_s9, %s7080_s11  ;;  %s6444_s4 = scalar_lea.hbm %s8284_s9, 64 }
 0x25d   : > { %s6440_s2 = scalar_lea.hbm %s1391_s12, 16  ;;  %p6445_p9 = scmp.lt.s32.totalorder %s1391_s12, %s8284_s9 }
 0x25e   : > { %p6441_p4 = scmp.ne.s32.totalorder %s1391_s12, %s6440_s2  ;;  %p6446_p12 = scmp.lt.s32.totalorder %s6444_s4, %s6440_s2 }
 0x260   : > { %p6442_p6 = pnand %p6441_p4, %p8264_p7  ;;  %p6447_p1 = por %p6446_p12, %p6445_p9 }
 0x262   : > { %p6443_p8 = pneg %p6442_p6 }
 0x264   : > { %p6448_p2 = pnand %p6447_p1, %p6443_p8 }
 0x266   : > { %6451 = shalt.err (!%p6448_p2)
}
 0x267   : > { %s6452_s16 = scalar_lea.vmem %s1394_s13, 16  ;;  %s6777_s8 = smov [#allocation27]  }
 0x268   : > { %p6453_p3 = scmp.ne.s32.totalorder %s1394_s13, %s6452_s16  ;;  %s6456_s22 = sshll.u32 %s6777_s8, 4  ;;  %s6457_s22 = int_to_ptr.vmem [resolvable:$false] %s6456_s22 }
 0x269   : > { %s6458_s5 = scalar_lea.vmem %s6457_s22, 32  ;;  %p6459_p11 = scmp.lt.s32.totalorder %s1394_s13, %s6457_s22 }
 0x26a   : > { %p6454_p5 = pnand %p6453_p3, %p8264_p7  ;;  %p6460_p13 = scmp.lt.s32.totalorder %s6458_s5, %s6452_s16 }
 0x26c   : > { %p6455_p10 = pneg %p6454_p5  ;;  %p6461_p0 = por %p6460_p13, %p6459_p11 }
 0x26e   : > { %p6462_p4 = pnand %p6461_p0, %p6455_p10 }
 0x270   : > { %6465 = shalt.err (!%p6462_p4)
}
 0x271   : > { %s8285_s23 = scalar_lea.sflag [#allocation26], %s7074_s7  ;;  %s8286_s19 = sld [smem:[#allocation83_spill]] }
 0x272   : > { %5505 = dma.hbm_to_vmem [thread:$0]  (%p8264_p7), %s1391_s12, 16, %s1394_s13, %s8285_s23  }
 0x273   : > { %s1424_s21 = scalar_lea.vmem [#allocation30], %s7077_s26 }
 0x274   : > { %s1431_s10 = sshll.u32 %s1424_s21, 4  ;;  %s1432_s10 = int_to_ptr.vmem [resolvable:$true] %s1431_s10 }
 0x277   : > { %s1429_s15 = scalar_lea.hbm %s8286_s19, %s7080_s11  ;;  %s6470_s2 = scalar_lea.hbm %s8286_s19, 64 }
 0x278   : > { %s6466_s1 = scalar_lea.hbm %s1429_s15, 16  ;;  %p6471_p12 = scmp.lt.s32.totalorder %s1429_s15, %s8286_s19 }
 0x279   : > { %p6467_p6 = scmp.ne.s32.totalorder %s1429_s15, %s6466_s1  ;;  %p6472_p1 = scmp.lt.s32.totalorder %s6470_s2, %s6466_s1 }
 0x27b   : > { %p6468_p8 = pnand %p6467_p6, %p8264_p7  ;;  %p6473_p2 = por %p6472_p1, %p6471_p12 }
 0x27d   : > { %p6469_p9 = pneg %p6468_p8 }
 0x27f   : > { %p6474_p3 = pnand %p6473_p2, %p6469_p9 }
 0x281   : > { %6477 = shalt.err (!%p6474_p3)
}
 0x282   : > { %s6478_s4 = scalar_lea.vmem %s1432_s10, 16  ;;  %s6778_s12 = smov [#allocation30]  }
 0x283   : > { %p6479_p5 = scmp.ne.s32.totalorder %s1432_s10, %s6478_s4  ;;  %s6482_s13 = sshll.u32 %s6778_s12, 4  ;;  %s6483_s13 = int_to_ptr.vmem [resolvable:$false] %s6482_s13 }
 0x284   : > { %s6484_s16 = scalar_lea.vmem %s6483_s13, 32  ;;  %p6485_p13 = scmp.lt.s32.totalorder %s1432_s10, %s6483_s13 }
 0x285   : > { %p6480_p10 = pnand %p6479_p5, %p8264_p7  ;;  %p6486_p0 = scmp.lt.s32.totalorder %s6484_s16, %s6478_s4 }
 0x287   : > { %p6481_p11 = pneg %p6480_p10  ;;  %p6487_p4 = por %p6486_p0, %p6485_p13 }
 0x289   : > { %p6488_p6 = pnand %p6487_p4, %p6481_p11 }
 0x28b   : > { %6491 = shalt.err (!%p6488_p6)
}
 0x28c   : > { %s8287_s8 = scalar_lea.sflag [#allocation29], %s7074_s7  ;;  %s8288_s22 = sld [smem:[#allocation85_spill]] }
 0x28d   : > { %5507 = dma.hbm_to_vmem [thread:$0]  (%p8264_p7), %s1429_s15, 16, %s1432_s10, %s8287_s8  }
 0x28e   : > { %s1458_s23 = scalar_lea.vmem [#allocation33], %s7077_s26  ;;  %s5098_s2 = sshll.u32 %s7077_s26, 1 }
 0x28f   : > { %s1465_s1 = sshll.u32 %s1458_s23, 4  ;;  %s1466_s1 = int_to_ptr.vmem [resolvable:$true] %s1465_s1 }
 0x292   : > { %s8289_s21 = smov %s8288_s22  ;;  %s7500_s5 = scalar_lea.hbm %s8288_s22, %s7080_s11 }
 0x293   : > { %s6492_s4 = scalar_lea.hbm %s7500_s5, 16  ;;  %s6496_s12 = scalar_lea.hbm %s8289_s21, 64 }
 0x294   : > { %p6493_p8 = scmp.ne.s32.totalorder %s7500_s5, %s6492_s4  ;;  %p6497_p1 = scmp.lt.s32.totalorder %s7500_s5, %s8289_s21 }
 0x295   : > { %p6498_p2 = scmp.lt.s32.totalorder %s6496_s12, %s6492_s4 }
 0x296   : > { %p6494_p9 = pnand %p6493_p8, %p8264_p7 }
 0x297   : > { %p6499_p3 = por %p6498_p2, %p6497_p1 }
 0x298   : > { %p6495_p12 = pneg %p6494_p9 }
 0x29a   : > { %p6500_p5 = pnand %p6499_p3, %p6495_p12 }
 0x29c   : > { %6503 = shalt.err (!%p6500_p5)
}
 0x29d   : > { %s6504_s15 = scalar_lea.vmem %s1466_s1, 16  ;;  %s6779_s10 = smov [#allocation33]  }
 0x29e   : > { %p6505_p10 = scmp.ne.s32.totalorder %s1466_s1, %s6504_s15  ;;  %s6508_s13 = sshll.u32 %s6779_s10, 4  ;;  %s6509_s13 = int_to_ptr.vmem [resolvable:$false] %s6508_s13 }
 0x29f   : > { %s6510_s16 = scalar_lea.vmem %s6509_s13, 32  ;;  %p6511_p0 = scmp.lt.s32.totalorder %s1466_s1, %s6509_s13 }
 0x2a0   : > { %p6506_p11 = pnand %p6505_p10, %p8264_p7  ;;  %p6512_p4 = scmp.lt.s32.totalorder %s6510_s16, %s6504_s15 }
 0x2a2   : > { %p6507_p13 = pneg %p6506_p11  ;;  %p6513_p6 = por %p6512_p4, %p6511_p0 }
 0x2a4   : > { %p6514_p8 = pnand %p6513_p6, %p6507_p13 }
 0x2a6   : > { %6517 = shalt.err (!%p6514_p8)
}
 0x2a7   : > { %s8290_s8 = scalar_lea.sflag [#allocation32], %s7074_s7  ;;  %s8291_s22 = sld [smem:[#allocation87_spill]] }
 0x2a8   : > { %5509 = dma.hbm_to_vmem [thread:$0]  (%p8264_p7), %s7500_s5, 16, %s1466_s1, %s8290_s8  }
 0x2a9   : > { %s5287_s23 = sshll.u32 %s6706_s28, 5  ;;  %s1497_s10 = scalar_lea.vmem [#allocation36], %s5098_s2 }
 0x2aa   : > { %s1505_s3 = sshll.u32 %s1497_s10, 4  ;;  %s1506_s3 = int_to_ptr.vmem [resolvable:$true] %s1505_s3 }
 0x2ad   : > { %s8292_s4 = smov %s8291_s22  ;;  %s1503_s12 = scalar_lea.hbm %s8291_s22, %s5287_s23 }
 0x2ae   : > { %s6518_s15 = scalar_lea.hbm %s1503_s12, 32  ;;  %s6522_s13 = scalar_lea.hbm %s8292_s4, 128 }
 0x2af   : > { %p6519_p9 = scmp.ne.s32.totalorder %s1503_s12, %s6518_s15  ;;  %p6523_p2 = scmp.lt.s32.totalorder %s1503_s12, %s8292_s4 }
 0x2b0   : > { %p6524_p3 = scmp.lt.s32.totalorder %s6522_s13, %s6518_s15 }
 0x2b1   : > { %p6520_p12 = pnand %p6519_p9, %p8264_p7 }
 0x2b2   : > { %p6525_p5 = por %p6524_p3, %p6523_p2 }
 0x2b3   : > { %p6521_p1 = pneg %p6520_p12 }
 0x2b5   : > { %p6526_p10 = pnand %p6525_p5, %p6521_p1 }
 0x2b7   : > { %6529 = shalt.err (!%p6526_p10)
}
 0x2b8   : > { %s6530_s16 = scalar_lea.vmem %s1506_s3, 32  ;;  %s6780_s5 = smov [#allocation36]  }
 0x2b9   : > { %p6531_p11 = scmp.ne.s32.totalorder %s1506_s3, %s6530_s16  ;;  %s6534_s1 = sshll.u32 %s6780_s5, 4  ;;  %s6535_s1 = int_to_ptr.vmem [resolvable:$false] %s6534_s1 }
 0x2ba   : > { %s6536_s2 = scalar_lea.vmem %s6535_s1, 64  ;;  %p6537_p4 = scmp.lt.s32.totalorder %s1506_s3, %s6535_s1 }
 0x2bb   : > { %p6532_p13 = pnand %p6531_p11, %p8264_p7  ;;  %p6538_p6 = scmp.lt.s32.totalorder %s6536_s2, %s6530_s16 }
 0x2bd   : > { %p6533_p0 = pneg %p6532_p13  ;;  %p6539_p8 = por %p6538_p6, %p6537_p4 }
 0x2bf   : > { %p6540_p9 = pnand %p6539_p8, %p6533_p0 }
 0x2c1   : > { %6543 = shalt.err (!%p6540_p9)
}
 0x2c2   : > { %s8293_s8 = scalar_lea.sflag [#allocation35], %s7074_s7  ;;  %s8294_s22 = sld [smem:[#allocation89_spill]] }
 0x2c3   : > { %5511 = dma.hbm_to_vmem [thread:$0]  (%p8264_p7), %s1503_s12, 32, %s1506_s3, %s8293_s8  }
 0x2c4   : > { %s1536_s15 = scalar_lea.vmem [#allocation39], %s7077_s26 }
 0x2c5   : > { %s1543_s13 = sshll.u32 %s1536_s15, 4  ;;  %s1544_s13 = int_to_ptr.vmem [resolvable:$true] %s1543_s13 }
 0x2c8   : > { %s8295_s10 = smov %s8294_s22  ;;  %s1541_s23 = scalar_lea.hbm %s8294_s22, %s7080_s11 }
 0x2c9   : > { %s6544_s5 = scalar_lea.hbm %s1541_s23, 16  ;;  %s6548_s16 = scalar_lea.hbm %s8295_s10, 64 }
 0x2ca   : > { %p6545_p12 = scmp.ne.s32.totalorder %s1541_s23, %s6544_s5  ;;  %p6549_p3 = scmp.lt.s32.totalorder %s1541_s23, %s8295_s10 }
 0x2cb   : > { %p6550_p5 = scmp.lt.s32.totalorder %s6548_s16, %s6544_s5 }
 0x2cc   : > { %p6546_p1 = pnand %p6545_p12, %p8264_p7 }
 0x2cd   : > { %p6551_p10 = por %p6550_p5, %p6549_p3 }
 0x2ce   : > { %p6547_p2 = pneg %p6546_p1 }
 0x2d0   : > { %p6552_p11 = pnand %p6551_p10, %p6547_p2 }
 0x2d2   : > { %6555 = shalt.err (!%p6552_p11)
}
 0x2d3   : > { %s6556_s1 = scalar_lea.vmem %s1544_s13, 16  ;;  %s6781_s3 = smov [#allocation39]  }
 0x2d4   : > { %p6557_p13 = scmp.ne.s32.totalorder %s1544_s13, %s6556_s1  ;;  %s6560_s12 = sshll.u32 %s6781_s3, 4  ;;  %s6561_s12 = int_to_ptr.vmem [resolvable:$false] %s6560_s12 }
 0x2d5   : > { %s6562_s2 = scalar_lea.vmem %s6561_s12, 32  ;;  %p6563_p6 = scmp.lt.s32.totalorder %s1544_s13, %s6561_s12 }
 0x2d6   : > { %p6558_p0 = pnand %p6557_p13, %p8264_p7  ;;  %p6564_p8 = scmp.lt.s32.totalorder %s6562_s2, %s6556_s1 }
 0x2d8   : > { %p6559_p4 = pneg %p6558_p0  ;;  %p6565_p9 = por %p6564_p8, %p6563_p6 }
 0x2da   : > { %p6566_p12 = pnand %p6565_p9, %p6559_p4 }
 0x2dc   : > { %6569 = shalt.err (!%p6566_p12)
}
 0x2dd   : > { %s8296_s8 = scalar_lea.sflag [#allocation38], %s7074_s7  ;;  %s1575_s22 = scalar_lea.hbm %s8236_s6, %s7080_s11 }
 0x2de   : > { %5513 = dma.hbm_to_vmem [thread:$0]  (%p8264_p7), %s1541_s23, 16, %s1544_s13, %s8296_s8  }
 0x2df   : > { %s1570_s15 = scalar_lea.vmem [#allocation42], %s7077_s26  ;;  %s6570_s16 = scalar_lea.hbm %s1575_s22, 16 }
 0x2e0   : > { %s1577_s5 = sshll.u32 %s1570_s15, 4  ;;  %p6571_p1 = scmp.ne.s32.totalorder %s1575_s22, %s6570_s16  ;;  %s1578_s5 = int_to_ptr.vmem [resolvable:$true] %s1577_s5 }
 0x2e1   : > { %s6574_s1 = scalar_lea.hbm %s8236_s6, 64  ;;  %p6575_p5 = scmp.lt.s32.totalorder %s1575_s22, %s8236_s6 }
 0x2e2   : > { %p6572_p2 = pnand %p6571_p1, %p8264_p7  ;;  %p6576_p10 = scmp.lt.s32.totalorder %s6574_s1, %s6570_s16 }
 0x2e4   : > { %p6573_p3 = pneg %p6572_p2  ;;  %p6577_p11 = por %p6576_p10, %p6575_p5 }
 0x2e6   : > { %p6578_p13 = pnand %p6577_p11, %p6573_p3 }
 0x2e8   : > { %6581 = shalt.err (!%p6578_p13)
}
 0x2e9   : > { %s6582_s3 = scalar_lea.vmem %s1578_s5, 16  ;;  %s6782_s26 = smov [#allocation42]  }
 0x2ea   : > { %p6583_p0 = scmp.ne.s32.totalorder %s1578_s5, %s6582_s3  ;;  %s6586_s11 = sshll.u32 %s6782_s26, 4  ;;  %s6587_s11 = int_to_ptr.vmem [resolvable:$false] %s6586_s11 }
 0x2eb   : > { %s6588_s23 = scalar_lea.vmem %s6587_s11, 32  ;;  %p6589_p8 = scmp.lt.s32.totalorder %s1578_s5, %s6587_s11 }
 0x2ec   : > { %p6584_p4 = pnand %p6583_p0, %p8264_p7  ;;  %p6590_p9 = scmp.lt.s32.totalorder %s6588_s23, %s6582_s3 }
 0x2ee   : > { %p6585_p6 = pneg %p6584_p4  ;;  %p6591_p12 = por %p6590_p9, %p6589_p8 }
 0x2f0   : > { %p6592_p1 = pnand %p6591_p12, %p6585_p6 }
 0x2f2   : > { %6595 = shalt.err (!%p6592_p1)
}
 0x2f3   : > { %s8297_s13 = scalar_lea.sflag [#allocation41], %s7074_s7 }
 0x2f4   : > { %5515 = dma.hbm_to_vmem [thread:$0]  (%p8264_p7), %s1575_s22, 16, %s1578_s5, %s8297_s13  }
 0x2f5 PF: > { %p8298_p2 = scmp.ne.s32.totalorder %s8260_s0, 0 }
 0x2f6   : > { %s8299_s12 = sld [smem:[#allocation104_spill]] (!%p8298_p2) }
 0x2f7   : > { %1586 = sbr.rel (%p8298_p2) target bundleno = 5558 (0x15b6), region = 160 }
 0x2fc   : > { %p8300_p3 = scmp.ne.s32.totalorder %s8299_s12, 0 }
 0x2fe   : > { %6629 = dma.done.wait (%p8300_p3), [#allocation6], 16  }
 0x2ff   : > { %6631 = vsyncadd (%p8300_p3), [#allocation6], 4294967280  ;;  %s8301_s2 = sld [smem:[#allocation100_spill]] }
 0x300   : > { %s8303_s15 = sld [smem:[#allocation94_spill]] }
 0x301   : > { %s8304_s16 = sld [smem:[#allocation105_spill]] }
 0x305   : > { %s8302_s8 = sadd.s32 4294967295, %s8301_s2  }
 0x306   : > { %s7564_s1 = sand.u32 1, %s8302_s8   ;;  %s7567_s18 = sand.u32 1, %s8303_s15  }
 0x307   : > { %s1593_s7 = scalar_lea.sflag [#allocation8], %s7564_s1  ;;  %p8305_p7 = scmp.ne.s32.totalorder %s8304_s16, 0 }
 0x309   : > { %6633 = dma.done.wait (%p8305_p7), %s1593_s7, 32  }
 0x30a   : > { %6635 = vsyncadd (%p8305_p7), %s1593_s7, 4294967264  ;;  %s7576_s0 = sshll.u32 %s7567_s18, 7  ;;  %s1609_s3 = scalar_lea.sflag [#allocation11], %s7564_s1 }
 0x30b   : > { %s7581_s26 = scalar_lea.vmem [#allocation10], %s7576_s0 }
 0x30c   : > { %6637 = dma.done.wait (%p8305_p7), %s1609_s3, 4096  }
 0x30d   : > { %6639 = vsyncadd (%p8305_p7), %s1609_s3, 4294963200  ;;  %s7588_s11 = scalar_lea.vmem [#allocation12], %s7576_s0  ;;  %s1627_s23 = scalar_lea.sflag [#allocation14], %s7564_s1 }
 0x30e   : > { %6641 = dma.done.wait (%p8305_p7), %s1627_s23, 32  }
 0x30f   : > { %6643 = vsyncadd (%p8305_p7), %s1627_s23, 4294967264  ;;  %s1643_s8 = scalar_lea.sflag [#allocation17], %s7564_s1 }
 0x310   : > { %6645 = dma.done.wait (%p8305_p7), %s1643_s8, 3088  }
 0x311   : > { %6647 = vsyncadd (%p8305_p7), %s1643_s8, 4294964208  ;;  %s5486_s7 = smul.u32 192, %s7567_s18  ;;  %s1660_s23 = scalar_lea.sflag [#allocation20], %s7564_s1 }
 0x313   : > { %s7604_s3 = scalar_lea.vmem [#allocation18], %s5486_s7 }
 0x314   : > { %6649 = dma.done.wait (%p8305_p7), %s1660_s23, 32  }
 0x315   : > { %6651 = vsyncadd (%p8305_p7), %s1660_s23, 4294967264  ;;  %s1676_s8 = scalar_lea.sflag [#allocation23], %s7564_s1 }
 0x316   : > { %6653 = dma.done.wait (%p8305_p7), %s1676_s8, 2064  }
 0x317   : > { %6655 = vsyncadd (%p8305_p7), %s1676_s8, 4294965232  ;;  %s7620_s7 = scalar_lea.vmem [#allocation24], %s7576_s0  ;;  %s1693_s13 = scalar_lea.sflag [#allocation26], %s7564_s1 }
 0x318   : > { %6657 = dma.done.wait (%p8305_p7), %s1693_s13, 32  }
 0x319   : > { %6659 = vsyncadd (%p8305_p7), %s1693_s13, 4294967264  ;;  %s5112_s2 = sshll.u32 %s7567_s18, 6  ;;  %s1709_s8 = scalar_lea.sflag [#allocation29], %s7564_s1 }
 0x31a   : > { %s7631_s5 = scalar_lea.vmem [#allocation28], %s5112_s2 }
 0x31b   : > { %6661 = dma.done.wait (%p8305_p7), %s1709_s8, 1040  }
 0x31c   : > { %6663 = vsyncadd (%p8305_p7), %s1709_s8, 4294966256  ;;  %s1726_s13 = scalar_lea.sflag [#allocation32], %s7564_s1 }
 0x31d   : > { %6665 = dma.done.wait (%p8305_p7), %s1726_s13, 32  }
 0x31e   : > { %6667 = vsyncadd (%p8305_p7), %s1726_s13, 4294967264  ;;  %s1742_s15 = scalar_lea.sflag [#allocation35], %s7564_s1  ;;  %s7647_s4 = scalar_lea.vmem [#allocation34], %s7576_s0 }
 0x31f   : > { %6669 = dma.done.wait (%p8305_p7), %s1742_s15, 2080  }
 0x320   : > { %6671 = vsyncadd (%p8305_p7), %s1742_s15, 4294965216  ;;  %s5114_s8 = sshll.u32 %s7567_s18, 1  ;;  %s1760_s13 = scalar_lea.sflag [#allocation38], %s7564_s1 }
 0x321   : > { %s7654_s22 = scalar_lea.vmem [#allocation36], %s5114_s8  ;;  %s7658_s23 = scalar_lea.vmem [#allocation37], %s7576_s0 }
 0x322   : > { %6673 = dma.done.wait (%p8305_p7), %s1760_s13, 2064  }
 0x323   : > { %6675 = vsyncadd (%p8305_p7), %s1760_s13, 4294965232  ;;  %s1777_s2 = scalar_lea.sflag [#allocation41], %s7564_s1 }
 0x324   : > { %6677 = dma.done.wait (%p8305_p7), %s1777_s2, 32  }
 0x325   : > { %6679 = vsyncadd (%p8305_p7), %s1777_s2, 4294967264 }
 0x326   : > { %6681 = dma.done.wait (%p8300_p3), [#allocation44], 16  }
 0x327   : > { %6683 = vsyncadd (%p8300_p3), [#allocation44], 4294967280  ;;  %s8306_s8 = sld [smem:[#allocation97_spill]]  ;;  %v2039_v1 = vlaneseq  ;;  %v6783_v3 = vmov 0.0  }
 0x328   : > { %s8307_s13 = sld [smem:[#allocation96_spill]] }
 0x329   : > { %s8309_s1 = sld [smem:[#allocation59_spill]]  ;;  %v7682_v2 = vand.u32 127, %v2039_v1 }
 0x32a   : > { %s8310_s6 = sld [smem:[#allocation66_spill]] }
 0x32b   : > { %s8311_s9 = sld [smem:[#allocation78_spill]]  ;;  %vm2041_vm0 = vcmp.lt.s32.totalorder %v7682_v2, 80 }
 0x32c   : > { %s8312_s16 = sld [smem:[#allocation72_spill]]  ;;  %v7693_v4 = vsel %vm2041_vm0, 1.0, %v6783_v3 }
 0x32d   : > { %p2005_p5 = scmp.lt.s32.totalorder %s8306_s8, 1  ;;  %s8313_s2 = sld [smem:[#allocation73_spill]] }
 0x32e   : > { %p2013_p10 = scmp.lt.s32.totalorder %s8307_s13, 3  ;;  %s8314_s12 = sld [smem:[#allocation93_spill]] }
 0x32f   : > { %s8352_s8 = smov (!%p2005_p5, %s8306_s8), 1  ;;  %s8315_s10 = sld [smem:[#allocation79_spill]] }
 0x330   : > { %s2014_s0 = scalar_select %p2013_p10, %s8307_s13, 3 }
 0x331   : > { %s5289_s14 = sshll.u32 %s8352_s8, 4  ;;  %p5126_p11 = scmp.ne.s32.totalorder %s8307_s13, 0 }
 0x332   : > { %s7690_s19 = scalar_lea.vmem %s8309_s1, %s5289_s14  ;;  %s5119_s20 = sshll.u32 %s2014_s0, 1 }
 0x333   : > { %s7696_s21 = scalar_lea.vmem %s8310_s6, %s5119_s20  ;;  %s5487_s24 = smul.u32 3, %s2014_s0 }
 0x334   : > { %s5290_s25 = sshll.u32 %s2014_s0, 6  ;;  %s7699_s27 = scalar_lea.vmem %s8311_s9, %s5119_s20 }
 0x335   : > { %s7702_s29 = scalar_lea.vmem %s8312_s16, %s5487_s24  ;;  %s7705_s30 = scalar_lea.vmem %s8313_s2, %s5290_s25 }
 0x336   : > { %s5291_s15 = sshll.u32 %s2014_s0, 5  ;;  %s2037_s17 = scalar_lea.vmem %s8314_s12, %s8352_s8 }
 0x337   : > { %s7710_s28 = scalar_lea.vmem %s8315_s10, %s5291_s15  ;;  %2047 = sbr.rel (%p5126_p11) target bundleno = 1062 (0x426), region = 268 }
 0x338   : > { %s8316_s14 = sld [smem:[#allocation61_spill]] (!%p5126_p11) }
 0x33c   : > { %v6784_v6 = vmov 0.0   ;;  %vm6785_vm1 = vmmov 0   ;;  %v2048_v14 = vld [vmem:[%s7690_s19] sm:$0xff]  ;;  %v2049_v15 = vld [vmem:[%s7690_s19 + $0x8] sm:$0xff] }
 0x33d   : > { %5380 = vmatprep.subr.bf16.mxu0 %v6784_v6  ;;  %2165 = vst [vmem:[#allocation3] sm:$0xff] %v6784_v6  ;;  %2166 = vst [vmem:[#allocation3 + $0x8] sm:$0x7f] %v6784_v6  ;;  %5396 = vmatprep.mubr.msk.bf16.mxu0 %vm6785_vm1, %v6784_v6  ;;  %v2050_v16 = vpack.c.bf16 %v2049_v15, %v2048_v14  ;;  %v5127_v17 = vld [vmem:[#allocation5] ss:$0 sm:$0xff] }
 0x33e   : > { %v5668_v5 = vld [vmem:[%s8316_s14 + $0x38] sm:$0xff]   ;;  %2167 = vst [vmem:[#allocation3 + $0x1f] sm:$0xff] %v6784_v6  ;;  %2168 = vst [vmem:[#allocation3 + $0x27] sm:$0x7f] %v6784_v6  ;;  %v5669_v7 = vld [vmem:[%s8316_s14 + $0x30] sm:$0xff]  }
 0x33f   : > { %5381 = vmatpush3.bf16.msra.mxu0 %v5668_v5  ;;  %v5670_v8 = vld [vmem:[%s8316_s14 + $0x28] sm:$0xff]   ;;  %v5671_v9 = vld [vmem:[%s8316_s14 + $0x20] sm:$0xff]   ;;  %v5672_v10 = vld [vmem:[%s8316_s14 + $0x18] sm:$0xff]  }
 0x340   : > { %5382 = vmatprep.subr.bf16.mxu0 %v6784_v6  ;;  %v5673_v11 = vld [vmem:[%s8316_s14 + $0x10] sm:$0xff]   ;;  %v5674_v12 = vld [vmem:[%s8316_s14 + $0x8] sm:$0xff]   ;;  %v5675_v13 = vld [vmem:[%s8316_s14] sm:$0xff]  }
 0x343   : > { %5383 = vmatpush3.bf16.msra.mxu0 %v5669_v7 }
 0x344   : > { %5384 = vmatprep.subr.bf16.mxu0 %v6784_v6 }
 0x347   : > { %5385 = vmatpush3.bf16.msra.mxu0 %v5670_v8 }
 0x348   : > { %5386 = vmatprep.subr.bf16.mxu0 %v6784_v6 }
 0x34b   : > { %5387 = vmatpush3.bf16.msra.mxu0 %v5671_v9 }
 0x34c   : > { %5388 = vmatprep.subr.bf16.mxu0 %v6784_v6 }
 0x34f   : > { %5389 = vmatpush3.bf16.msra.mxu0 %v5672_v10 }
 0x350   : > { %5390 = vmatprep.subr.bf16.mxu0 %v6784_v6 }
 0x353   : > { %5391 = vmatpush3.bf16.msra.mxu0 %v5673_v11 }
 0x354   : > { %5392 = vmatprep.subr.bf16.mxu0 %v6784_v6 }
 0x357   : > { %5393 = vmatpush3.bf16.msra.mxu0 %v5674_v12 }
 0x358   : > { %5394 = vmatprep.subr.bf16.mxu0 %v6784_v6 }
 0x35b   : > { %5395 = vmatpush3.bf16.msra.mxu0 %v5675_v13 }
 0x35e   : > { %5397 = vmatmul.mubr.bf16.vlgmr.msra.gmra.mxu0 %v2050_v16 }
 0x41e   : > { %v2156_v18 = vpop.f32.mrf.mxu0 }
 0x41f   : > { %v2157_v19 = vadd.f32 %v5127_v17, %v2156_v18 }
 0x420   : > { %v5398_v20 = vpop.f32.mrf.mxu0 }
 0x421   : > { %2163 = vst [vmem:[#allocation2] sm:$0xff] %v2157_v19 }
 0x422   : > { %v2159_v21 = vpop.f32.mrf.mxu0 }
 0x423   : > { %v2160_v22 = vadd.f32 %v5127_v17, %v2159_v21 }
 0x424   : > { %v5399_v23 = vpop.f32.mrf.mxu0 }
 0x425   : > { %2164 = vst [vmem:[#allocation2 + $0x8] sm:$0xff] %v2160_v22 }
 0x426 PF: > { %v5676_v26 = vld [vmem:[%s7581_s26 + $0x74] ss:$8 sps:$4 sm:$0xff]   ;;  %v5678_v27 = vld [vmem:[%s7581_s26 + $0x70] ss:$8 sps:$4 sm:$0xff]   ;;  %v5679_v38 = vld [vmem:[%s7581_s26 + $0x64] ss:$8 sps:$4 sm:$0xff]  }
 0x427   : > { %2322 = vmatprep.subr.bf16.mxu0 %v5676_v26  ;;  %v5681_v39 = vld [vmem:[%s7581_s26 + $0x60] ss:$8 sps:$4 sm:$0xff]   ;;  %v5682_v40 = vld [vmem:[%s7581_s26 + $0x54] ss:$8 sps:$4 sm:$0xff]   ;;  %v5684_v41 = vld [vmem:[%s7581_s26 + $0x50] ss:$8 sps:$4 sm:$0xff]  }
 0x428   : > { %v7723_v24 = vld [vmem:[#allocation2] sm:$0xff]  ;;  %2323 = vmatpush1.bf16.msra.mxu0 %v5678_v27  ;;  %v5685_v42 = vld [vmem:[%s7581_s26 + $0x44] ss:$8 sps:$4 sm:$0xff]   ;;  %v6786_v47 = vmov 0   ;;  %s8317_s25 = scalar_lea.vmem [#allocation7], %s7567_s18  ;;  %s8318_s24 = scalar_lea.vmem [#allocation9], %s7567_s18 }
 0x429   : > { %2171 = vadd.xlane.f32.xlu0 %v7723_v24  ;;  %2324 = vmatprep.subr.bf16.mxu0 %v5679_v38  ;;  %v5687_v43 = vld [vmem:[%s7581_s26 + $0x40] ss:$8 sps:$4 sm:$0xff]   ;;  %v5688_v44 = vld [vmem:[%s7581_s26 + $0x34] ss:$8 sps:$4 sm:$0xff]   ;;  %v5690_v45 = vld [vmem:[%s7581_s26 + $0x30] ss:$8 sps:$4 sm:$0xff]  }
 0x42a   : > { %v5691_v46 = vld [vmem:[%s7581_s26 + $0x24] ss:$8 sps:$4 sm:$0xff]   ;;  %2354 = vmatprep.mubr.bf16.mxu0 %v6786_v47  ;;  %v5693_v48 = vld [vmem:[%s7581_s26 + $0x20] ss:$8 sps:$4 sm:$0xff]   ;;  %v5694_v49 = vld [vmem:[%s7581_s26 + $0x14] ss:$8 sps:$4 sm:$0xff]  }
 0x42b   : > { %v5696_v50 = vld [vmem:[%s7581_s26 + $0x10] ss:$8 sps:$4 sm:$0xff]   ;;  %v5697_v51 = vld [vmem:[%s7581_s26 + $0x4] ss:$8 sps:$4 sm:$0xff]   ;;  %v5699_v52 = vld [vmem:[%s7581_s26] ss:$8 sps:$4 sm:$0xff]  }
 0x42c   : > { %v7725_v25 = vld [vmem:[#allocation2 + $0x8] sm:$0xff]  ;;  %2325 = vmatpush1.bf16.msra.mxu0 %v5681_v39  ;;  %v5136_v61 = vld [vmem:[%s8317_s25] ss:$0 sm:$0xff]  ;;  %v5702_v12 = vld [vmem:[%s7588_s11 + $0x70] sm:$0xff]   ;;  %s8319_s6 = scalar_lea.vmem [#allocation13], %s7567_s18  ;;  %vm6787_vm2 = vmmov 0  }
 0x42d   : > { %2173 = vadd.xlane.f32.xlu0 %v7725_v25  ;;  %2326 = vmatprep.subr.bf16.mxu0 %v5682_v40  ;;  %v5137_v5 = vld [vmem:[%s8318_s24] ss:$0 sm:$0xff]  ;;  %v5703_v13 = vld [vmem:[%s7588_s11 + $0x30] sm:$0xff]   ;;  %v5704_v14 = vld [vmem:[%s7588_s11 + $0x68] sm:$0xff]   ;;  %s8320_s20 = scalar_lea.vmem [#allocation15], %s7567_s18  ;;  %s8321_s9 = scalar_lea.vmem [#allocation16], %s7567_s18 }
 0x42e   : > { %v5700_v10 = vld [vmem:[%s7588_s11 + $0x78] sm:$0xff]   ;;  %v5705_v15 = vld [vmem:[%s7588_s11 + $0x28] sm:$0xff]   ;;  %v5706_v16 = vld [vmem:[%s7588_s11 + $0x60] sm:$0xff]   ;;  %vm2881_vm3 = vcmp.lt.s32.totalorder %v7682_v2, 64  ;;  %vm2963_vm4 = vcmp.ge.s32.totalorder %v7682_v2, 64  ;;  %vm2936_vm5 = vcmask 130048  }
 0x42f   : > { %v5701_v11 = vld [vmem:[%s7588_s11 + $0x38] sm:$0xff]   ;;  %5301 = vmatprep.subr.bf16.mxu1 %v5700_v10  ;;  %v5707_v17 = vld [vmem:[%s7588_s11 + $0x20] sm:$0xff]   ;;  %v5710_v20 = vld [vmem:[%s7588_s11 + $0x50] sm:$0xff]   ;;  %s8326_s10 = scalar_lea.vmem [#allocation22], %s7567_s18  ;;  %s8330_s26 = scalar_lea.vmem [#allocation31], %s7567_s18 }
 0x430   : > { %2327 = vmatpush1.bf16.msra.mxu0 %v5684_v41  ;;  %5302 = vmatpush3.bf16.msra.mxu1 %v5701_v11  ;;  %v5708_v18 = vld [vmem:[%s7588_s11 + $0x58] sm:$0xff]   ;;  %v5711_v21 = vld [vmem:[%s7588_s11 + $0x10] sm:$0xff]   ;;  %v5712_v22 = vld [vmem:[%s7588_s11 + $0x48] sm:$0xff]  }
 0x431   : > { %2328 = vmatprep.subr.bf16.mxu0 %v5685_v42  ;;  %5303 = vmatprep.subr.bf16.mxu1 %v5702_v12  ;;  %v5709_v19 = vld [vmem:[%s7588_s11 + $0x18] sm:$0xff]   ;;  %v5713_v23 = vld [vmem:[%s7588_s11 + $0x8] sm:$0xff]   ;;  %v5714_v26 = vld [vmem:[%s7588_s11 + $0x40] sm:$0xff]  }
 0x432   : > { %v5715_v27 = vld [vmem:[%s7588_s11] sm:$0xff]   ;;  %s8333_s11 = scalar_lea.vmem [#allocation40], %s7567_s18 }
 0x434   : > { %2329 = vmatpush1.bf16.msra.mxu0 %v5687_v43  ;;  %5304 = vmatpush3.bf16.msra.mxu1 %v5703_v13 }
 0x435   : > { %2330 = vmatprep.subr.bf16.mxu0 %v5688_v44  ;;  %5305 = vmatprep.subr.bf16.mxu1 %v5704_v14 }
 0x438   : > { %2331 = vmatpush1.bf16.msra.mxu0 %v5690_v45  ;;  %5306 = vmatpush3.bf16.msra.mxu1 %v5705_v15 }
 0x439   : > { %2332 = vmatprep.subr.bf16.mxu0 %v5691_v46  ;;  %5307 = vmatprep.subr.bf16.mxu1 %v5706_v16 }
 0x43c   : > { %2333 = vmatpush1.bf16.msra.mxu0 %v5693_v48  ;;  %5308 = vmatpush3.bf16.msra.mxu1 %v5707_v17 }
 0x43d   : > { %2334 = vmatprep.subr.bf16.mxu0 %v5694_v49  ;;  %5309 = vmatprep.subr.bf16.mxu1 %v5708_v18 }
 0x440   : > { %2335 = vmatpush1.bf16.msra.mxu0 %v5696_v50  ;;  %5310 = vmatpush3.bf16.msra.mxu1 %v5709_v19 }
 0x441   : > { %2336 = vmatprep.subr.bf16.mxu0 %v5697_v51  ;;  %5311 = vmatprep.subr.bf16.mxu1 %v5710_v20 }
 0x444   : > { %2337 = vmatpush1.bf16.msra.mxu0 %v5699_v52  ;;  %5312 = vmatpush3.bf16.msra.mxu1 %v5711_v21  ;;  %v5716_v21 = vld [vmem:[%s7604_s3 + $0xa8] ss:$12 sps:$4 sm:$0xff]  }
 0x445   : > { %5313 = vmatprep.subr.bf16.mxu1 %v5712_v22  ;;  %v5718_v22 = vld [vmem:[%s7604_s3 + $0xac] ss:$12 sps:$4 sm:$0xff]  }
 0x446   : > { %2795 = vmatprep.subr.bf16.mxu0 %v5718_v22 }
 0x448   : > { %5314 = vmatpush3.bf16.msra.mxu1 %v5713_v23  ;;  %v5719_v23 = vld [vmem:[%s7604_s3 + $0xb0] ss:$12 sps:$4 sm:$0xff]  }
 0x449   : > { %5315 = vmatprep.subr.bf16.mxu1 %v5714_v26 }
 0x44c   : > { %5316 = vmatpush3.bf16.msra.mxu1 %v5715_v27 }
 0x44d   : > { %5400 = vmatprep.subr.bf16.mxu1 %v6783_v3 }
 0x4b2   : > { %v2172_v28 = vpop.xlane.xlu0 %2171 }
 0x4b3   : > { %v2175_v29 = vmul.f32 0.0125, %v2172_v28  ;;  %v7773_v28 = vshrl.u32 %v2039_v1, 7 }
 0x4b5   : > { %v2177_v30 = vsub.f32 %v7723_v24, %v2175_v29  ;;  %v7776_v29 = vsub.s32 0, %v7773_v28 }
 0x4b6   : > { %v2174_v31 = vpop.xlane.xlu0 %2173 }
 0x4b7   : > { %v2176_v32 = vmul.f32 0.0125, %v2174_v31  ;;  %v2179_v33 = vmul.f32 %v7693_v4, %v2177_v30  ;;  %v2230_v30 = vld [vmem:[%s7696_s21] sm:$0x3]  ;;  %v7780_v31 = vsub.s32 1, %v7773_v28  ;;  %s8325_s21 = scalar_lea.vmem [#allocation21], %s7567_s18 }
 0x4b9   : > { %v2178_v34 = vsub.f32 %v7725_v25, %v2176_v32  ;;  %v2181_v35 = vmul.f32 %v2179_v33, %v2179_v33  ;;  %v2235_v32 = vrot.slane %v2230_v30, %v7776_v29 }
 0x4bb   : > { %v2180_v36 = vmul.f32 %v7693_v4, %v2178_v34  ;;  %2183 = vadd.xlane.f32.xlu1 %v2181_v35 }
 0x4bd   : > { %v2182_v37 = vmul.f32 %v2180_v36, %v2180_v36 }
 0x4bf   : > { %2185 = vadd.xlane.f32.xlu1 %v2182_v37 }
 0x544   : > { %v2184_v53 = vpop.xlane.xlu1 %2183 }
 0x545   : > { %v2187_v54 = vmul.f32 0.0125, %v2184_v53 }
 0x547   : > { %v2189_v55 = vadd.f32 1e-05, %v2187_v54 }
 0x548   : > { %v2186_v56 = vpop.xlane.xlu1 %2185 }
 0x549   : > { %5828 = vrsqrt.f32 %v2189_v55  ;;  %v2188_v57 = vmul.f32 0.0125, %v2186_v56 }
 0x54b   : > { %v2190_v58 = vadd.f32 1e-05, %v2188_v57 }
 0x54d   : > { %5830 = vrsqrt.f32 %v2190_v58 }
 0x556   : > { %v5829_v59 = vpop.eup %5828 }
 0x557   : > { %v2193_v60 = vmul.f32 %v5829_v59, %v2179_v33  ;;  %v2239_v33 = vrot.slane %v2230_v30, %v7780_v31 }
 0x559   : > { %v2202_v0 = vmul.f32 %v5136_v61, %v2193_v60 }
 0x55a   : > { %v5831_v62 = vpop.eup %5830 }
 0x55b   : > { %v2194_v63 = vmul.f32 %v5831_v62, %v2180_v36  ;;  %v2211_v7 = vadd.f32 %v5137_v5, %v2202_v0 }
 0x55d   : > { %v2203_v6 = vmul.f32 %v5136_v61, %v2194_v63 }
 0x55f   : > { %v2212_v8 = vadd.f32 %v5137_v5, %v2203_v6 }
 0x561   : > { %v2213_v9 = vpack.c.bf16 %v2212_v8, %v2211_v7 }
 0x563   : > { %2355 = vmatmul.mubr.bf16.vlgmr.msra.gmra.mxu0 %v2213_v9  ;;  %v5154_v9 = vld [vmem:[%s8319_s6] ss:$0 sm:$0xff] }
 0x564   : > { %2827 = vmatprep.mubr.bf16.mxu0 %v6786_v47  ;;  %2796 = vmatpush1.bf16.msra.mxu0 %v5716_v21  ;;  %v5197_v21 = vsel %vm2881_vm3, 1.0, %v6783_v3 }
 0x623   : > { %v2356_v34 = vpop.f32.mrf.mxu0 }
 0x624   : > { %v2357_v35 = vadd.f32 %v2356_v34, %v2235_v32 }
 0x625   : > { %v2358_v36 = vpop.f32.mrf.mxu0 }
 0x626   : > { %v2365_v37 = vsub.f32 0.0, %v2357_v35  ;;  %v2359_v38 = vadd.f32 %v2358_v36, %v2239_v33 }
 0x627   : > { %v2360_v39 = vpop.f32.mrf.mxu0 }
 0x628   : > { %v2369_v40 = vmul.f32 1.442695, %v2365_v37  ;;  %v2366_v1 = vsub.f32 0.0, %v2359_v38  ;;  %v2361_v41 = vadd.f32 %v2360_v39, %v2235_v32  ;;  %v5722_v37 = vld [vmem:[%s7604_s3 + $0x94] ss:$12 sps:$4 sm:$0xff]  }
 0x629   : > { %v2362_v42 = vpop.f32.mrf.mxu0  ;;  %v5723_v39 = vld [vmem:[%s7604_s3 + $0x98] ss:$12 sps:$4 sm:$0xff]   ;;  %2797 = vmatprep.subr.bf16.mxu0 %v5722_v37 }
 0x62a   : > { %v2371_v43 = vmul.f32 1.442695, %v2366_v1  ;;  %v2367_v44 = vsub.f32 0.0, %v2361_v41  ;;  %v2363_v45 = vadd.f32 %v2362_v42, %v2239_v33  ;;  %5832 = vpow2.f32 %v2369_v40  ;;  %v5726_v40 = vld [vmem:[%s7604_s3 + $0x7c] ss:$12 sps:$4 sm:$0xff]  }
 0x62b   : > { %v5724_v1 = vld [vmem:[%s7604_s3 + $0x78] ss:$12 sps:$4 sm:$0xff]   ;;  %v5728_v42 = vld [vmem:[%s7604_s3 + $0x60] ss:$12 sps:$4 sm:$0xff]  }
 0x62c   : > { %5834 = vpow2.f32 %v2371_v43  ;;  %v2373_v46 = vmul.f32 1.442695, %v2367_v44  ;;  %v2368_v48 = vsub.f32 0.0, %v2363_v45  ;;  %v5730_v43 = vld [vmem:[%s7604_s3 + $0x64] ss:$12 sps:$4 sm:$0xff]  }
 0x62d   : > { %v5731_v44 = vld [vmem:[%s7604_s3 + $0x68] ss:$12 sps:$4 sm:$0xff]  }
 0x62e   : > { %5836 = vpow2.f32 %v2373_v46  ;;  %v2375_v49 = vmul.f32 1.442695, %v2368_v48  ;;  %v5732_v46 = vld [vmem:[%s7604_s3 + $0x48] ss:$12 sps:$4 sm:$0xff]   ;;  %v5735_v48 = vld [vmem:[%s7604_s3 + $0x50] ss:$12 sps:$4 sm:$0xff]  }
 0x630   : > { %5838 = vpow2.f32 %v2375_v49  ;;  %v5738_v49 = vld [vmem:[%s7604_s3 + $0x34] ss:$12 sps:$4 sm:$0xff]  }
 0x637   : > { %v5833_v50 = vpop.eup %5832 }
 0x638   : > { %v2377_v54 = vadd.f32 1.0, %v5833_v50  ;;  %v5736_v50 = vld [vmem:[%s7604_s3 + $0x30] ss:$12 sps:$4 sm:$0xff]  }
 0x639   : > { %v5835_v51 = vpop.eup %5834 }
 0x63a   : > { %v2378_v52 = vadd.f32 1.0, %v5835_v51  ;;  %v5739_v51 = vld [vmem:[%s7604_s3 + $0x38] ss:$12 sps:$4 sm:$0xff]  }
 0x63b   : > { %v5837_v53 = vpop.eup %5836 }
 0x63c   : > { %v2379_v55 = vadd.f32 1.0, %v5837_v53  ;;  %5840 = vrcp.f32 %v2378_v52  ;;  %v5742_v52 = vld [vmem:[%s7604_s3 + $0x1c] ss:$12 sps:$4 sm:$0xff]   ;;  %v5740_v53 = vld [vmem:[%s7604_s3 + $0x18] ss:$12 sps:$4 sm:$0xff]  }
 0x63d   : > { %v5839_v56 = vpop.eup %5838 }
 0x63e   : > { %5842 = vrcp.f32 %v2379_v55  ;;  %v2380_v57 = vadd.f32 1.0, %v5839_v56  ;;  %v5746_v55 = vld [vmem:[%s7604_s3 + $0x4] ss:$12 sps:$4 sm:$0xff]   ;;  %v5744_v56 = vld [vmem:[%s7604_s3] ss:$12 sps:$4 sm:$0xff]  }
 0x63f   : > { %5844 = vrcp.f32 %v2377_v54  ;;  %v5743_v54 = vld [vmem:[%s7604_s3 + $0x20] ss:$12 sps:$4 sm:$0xff]  }
 0x640   : > { %5846 = vrcp.f32 %v2380_v57  ;;  %v5747_v57 = vld [vmem:[%s7604_s3 + $0x8] ss:$12 sps:$4 sm:$0xff]  }
 0x649   : > { %v5841_v58 = vpop.eup %5840 }
 0x64a   : > { %v2390_v63 = vmul.f32 %v5841_v58, %v2359_v38  ;;  %v5720_v38 = vld [vmem:[%s7604_s3 + $0x90] ss:$12 sps:$4 sm:$0xff]  }
 0x64b   : > { %v5843_v59 = vpop.eup %5842  ;;  %2798 = vmatpush1.bf16.msra.mxu0 %v5720_v38 }
 0x64c   : > { %v5845_v60 = vpop.eup %5844  ;;  %v2391_v62 = vmul.f32 %v5843_v59, %v2361_v41  ;;  %v5727_v41 = vld [vmem:[%s7604_s3 + $0x80] ss:$12 sps:$4 sm:$0xff]   ;;  %2799 = vmatprep.subr.bf16.mxu0 %v5726_v40 }
 0x64d   : > { %v5847_v61 = vpop.eup %5846  ;;  %v2389_v5 = vmul.f32 %v5845_v60, %v2357_v35 }
 0x64e   : > { %v2392_v0 = vmul.f32 %v5847_v61, %v2363_v45  ;;  %v5734_v45 = vld [vmem:[%s7604_s3 + $0x4c] ss:$12 sps:$4 sm:$0xff]   ;;  %s8334_s3 = scalar_lea.vmem [#allocation42], %s7567_s18 }
 0x64f   : > { %v2393_v7 = vpack.c.bf16 %v2391_v62, %v2389_v5  ;;  %2800 = vmatpush1.bf16.msra.mxu0 %v5724_v1 }
 0x650   : > { %v2394_v6 = vpack.c.bf16 %v2392_v0, %v2390_v63  ;;  %2801 = vmatprep.subr.bf16.mxu0 %v5730_v43 }
 0x652   : > { %2562 = vmatprep.mubr.bf16.mxu1 %v2394_v6  ;;  %v5171_v6 = vld [vmem:[%s8320_s20] ss:$0 sm:$0xff] }
 0x653   : > { %2563 = vmatmul.mubr.bf16.vlgmr.msra.gmra.mxu1 %v2393_v7  ;;  %2802 = vmatpush1.bf16.msra.mxu0 %v5728_v42 }
 0x654   : > { %5401 = vmatpush3.bf16.msra.mxu1 %v5719_v23  ;;  %2803 = vmatprep.subr.bf16.mxu0 %v5734_v45 }
 0x655   : > { %5402 = vmatprep.subr.bf16.mxu1 %v6783_v3  ;;  %5416 = vmatprep.mubr.msk.bf16.mxu1 %vm6787_vm2, %v6783_v3 }
 0x657   : > { %2804 = vmatpush1.bf16.msra.mxu0 %v5732_v46  ;;  %v5199_v46 = vsel %vm2963_vm4, 1.0, %v6783_v3 }
 0x658   : > { %5403 = vmatpush3.bf16.msra.mxu1 %v5723_v39  ;;  %2805 = vmatprep.subr.bf16.mxu0 %v5738_v49 }
 0x659   : > { %5404 = vmatprep.subr.bf16.mxu1 %v6783_v3 }
 0x65b   : > { %2806 = vmatpush1.bf16.msra.mxu0 %v5736_v50 }
 0x65c   : > { %5405 = vmatpush3.bf16.msra.mxu1 %v5727_v41  ;;  %2807 = vmatprep.subr.bf16.mxu0 %v5742_v52 }
 0x65d   : > { %5406 = vmatprep.subr.bf16.mxu1 %v6783_v3 }
 0x65f   : > { %2808 = vmatpush1.bf16.msra.mxu0 %v5740_v53 }
 0x660   : > { %5407 = vmatpush3.bf16.msra.mxu1 %v5731_v44  ;;  %2809 = vmatprep.subr.bf16.mxu0 %v5746_v55 }
 0x661   : > { %5408 = vmatprep.subr.bf16.mxu1 %v6783_v3 }
 0x663   : > { %2810 = vmatpush1.bf16.msra.mxu0 %v5744_v56 }
 0x664   : > { %5409 = vmatpush3.bf16.msra.mxu1 %v5735_v48  ;;  %5444 = vmatprep.subr.bf16.mxu0 %v6783_v3 }
 0x665   : > { %5410 = vmatprep.subr.bf16.mxu1 %v6783_v3 }
 0x668   : > { %5411 = vmatpush3.bf16.msra.mxu1 %v5739_v51 }
 0x669   : > { %5412 = vmatprep.subr.bf16.mxu1 %v6783_v3 }
 0x66c   : > { %5413 = vmatpush3.bf16.msra.mxu1 %v5743_v54 }
 0x66d   : > { %5414 = vmatprep.subr.bf16.mxu1 %v6783_v3 }
 0x670   : > { %5415 = vmatpush3.bf16.msra.mxu1 %v5747_v57 }
 0x671   : > { %5420 = vmatprep.subr.bf16.mxu1 %v6783_v3 }
 0x713   : > { %v5317_v8 = vpop.f32.mrf.mxu1 }
 0x715   : > { %v5318_v10 = vpop.f32.mrf.mxu1 }
 0x716   : > { %v5319_v11 = vadd.f32 %v5318_v10, %v5317_v8  ;;  %v5172_v10 = vld [vmem:[%s8321_s9] ss:$0 sm:$0xff] }
 0x717   : > { %v5320_v12 = vpop.f32.mrf.mxu1 }
 0x718   : > { %v2565_v13 = vadd.f32 %v5319_v11, %v5154_v9 }
 0x719   : > { %v5321_v14 = vpop.f32.mrf.mxu1 }
 0x71a   : > { %v2571_v15 = vmul.f32 0.5, %v2565_v13  ;;  %v5322_v16 = vadd.f32 %v5321_v14, %v5320_v12 }
 0x71c   : > { %v2568_v17 = vadd.f32 %v5322_v16, %v5154_v9  ;;  %v7787_v18 = vadd.f32 %v2571_v15, %v7723_v24  ;;  %v7852_v15 = vsub.s32 2, %v7773_v28  ;;  %v2650_v16 = vld [vmem:[%s7702_s29] sm:$0x7]  ;;  %s8322_s29 = sld [smem:[#allocation60_spill]] }
 0x71e   : > { %v2572_v19 = vmul.f32 0.5, %v2568_v17  ;;  %2575 = vadd.xlane.f32.xlu0 %v7787_v18  ;;  %v2663_v17 = vrot.slane %v2650_v16, %v7852_v15 }
 0x720   : > { %v7791_v20 = vadd.f32 %v2572_v19, %v7725_v25 }
 0x722   : > { %2577 = vadd.xlane.f32.xlu1 %v7791_v20  ;;  %s8323_s19 = scalar_lea.vmem %s8322_s29, %s8352_s8 }
 0x723   : > { %v5198_v57 = vld [vmem:[%s8323_s19] ss:$0 sm:$0xff] }
 0x7a7   : > { %v2576_v24 = vpop.xlane.xlu0 %2575 }
 0x7a8   : > { %v2579_v26 = vmul.f32 0.0125, %v2576_v24 }
 0x7aa   : > { %v2581_v27 = vsub.f32 %v7787_v18, %v2579_v26 }
 0x7ab   : > { %v2578_v25 = vpop.xlane.xlu1 %2577 }
 0x7ac   : > { %v7800_v30 = vmul.f32 %v7693_v4, %v2581_v27  ;;  %v2580_v32 = vmul.f32 0.0125, %v2578_v25  ;;  %v2659_v25 = vrot.slane %v2650_v16, %v7780_v31 }
 0x7ae   : > { %v2582_v33 = vsub.f32 %v7791_v20, %v2580_v32  ;;  %v2585_v34 = vmul.f32 %v7800_v30, %v7800_v30 }
 0x7b0   : > { %v7806_v35 = vmul.f32 %v7693_v4, %v2582_v33  ;;  %2587 = vadd.xlane.f32.xlu0 %v2585_v34 }
 0x7b2   : > { %v2586_v36 = vmul.f32 %v7806_v35, %v7806_v35 }
 0x7b4   : > { %2589 = vadd.xlane.f32.xlu1 %v2586_v36  ;;  %v2655_v36 = vrot.slane %v2650_v16, %v7776_v29 }
 0x839   : > { %v2588_v58 = vpop.xlane.xlu0 %2587 }
 0x83a   : > { %v2591_v59 = vmul.f32 0.0125, %v2588_v58 }
 0x83c   : > { %v2593_v60 = vadd.f32 1e-05, %v2591_v59 }
 0x83d   : > { %v2590_v61 = vpop.xlane.xlu1 %2589 }
 0x83e   : > { %5848 = vrsqrt.f32 %v2593_v60  ;;  %v2592_v62 = vmul.f32 0.0125, %v2590_v61 }
 0x840   : > { %v2594_v63 = vadd.f32 1e-05, %v2592_v62 }
 0x842   : > { %5850 = vrsqrt.f32 %v2594_v63 }
 0x84b   : > { %v5849_v0 = vpop.eup %5848 }
 0x84c   : > { %v2597_v5 = vmul.f32 %v5849_v0, %v7800_v30 }
 0x84e   : > { %v2606_v9 = vmul.f32 %v5171_v6, %v2597_v5 }
 0x84f   : > { %v5851_v7 = vpop.eup %5850 }
 0x850   : > { %v2598_v8 = vmul.f32 %v5851_v7, %v7806_v35  ;;  %v2615_v12 = vadd.f32 %v5172_v10, %v2606_v9 }
 0x852   : > { %v2607_v11 = vmul.f32 %v5171_v6, %v2598_v8 }
 0x854   : > { %v2616_v13 = vadd.f32 %v5172_v10, %v2607_v11 }
 0x856   : > { %v2617_v14 = vpack.c.bf16 %v2616_v13, %v2615_v12 }
 0x858   : > { %2828 = vmatmul.mubr.bf16.vlgmr.msra.gmra.mxu0 %v2617_v14  ;;  %5417 = vmatmul.mubr.bf16.vlgmr.msra.gmra.mxu1 %v2617_v14 }
 0x859   : > { %5422 = vmatprep.mubr.msk.bf16.mxu1 %vm6787_vm2, %v6783_v3  ;;  %5460 = vmatprep.mubr.msk.bf16.mxu0 %vm6787_vm2, %v6783_v3 }
 0x918   : > { %v2829_v19 = vpop.f32.mrf.mxu0  ;;  %v2872_v22 = vpop.f32.mrf.mxu1 }
 0x919   : > { %v2873_v23 = vadd.f32 %v2872_v22, %v2663_v17  ;;  %v2830_v42 = vadd.f32 %v2829_v19, %v2655_v36 }
 0x91a   : > { %v2831_v24 = vpop.f32.mrf.mxu0  ;;  %v5418_v26 = vpop.f32.mrf.mxu1 }
 0x91b   : > { %v7858_v27 = vmul.f32 %v5197_v21, %v2873_v23  ;;  %v2832_v38 = vadd.f32 %v2831_v24, %v2659_v25  ;;  %v2885_v44 = vmul.f32 %v5197_v21, %v2830_v42  ;;  %v2968_v50 = vmul.f32 %v5199_v46, %v2830_v42 }
 0x91c   : > { %v2833_v30 = vpop.f32.mrf.mxu0  ;;  %v2875_v32 = vpop.f32.mrf.mxu1  ;;  %v3035_v51 = vmul.f32 %v5199_v46, %v2873_v23 }
 0x91d   : > { %v2876_v33 = vadd.f32 %v2875_v32, %v2663_v17  ;;  %v2834_v40 = vadd.f32 %v2833_v30, %v2655_v36 }
 0x91e   : > { %v2835_v34 = vpop.f32.mrf.mxu0  ;;  %v5419_v35 = vpop.f32.mrf.mxu1 }
 0x91f   : > { %v7862_v37 = vmul.f32 %v5197_v21, %v2876_v33  ;;  %v2836_v39 = vadd.f32 %v2835_v34, %v2659_v25  ;;  %v2886_v43 = vmul.f32 %v5197_v21, %v2834_v40  ;;  %v2969_v48 = vmul.f32 %v5199_v46, %v2834_v40  ;;  %v5750_v40 = vld [vmem:[%s7705_s30 + $0x28] sm:$0xff]  }
 0x920   : > { %v3036_v49 = vmul.f32 %v5199_v46, %v2876_v33 }
 0x921   : > { %v2962_v1 = vpack.c.bf16 %v7862_v37, %v7858_v27  ;;  %v2888_v41 = vpack.c.bf16 %v2836_v39, %v2832_v38  ;;  %v2887_v45 = vpack.c.bf16 %v2886_v43, %v2885_v44  ;;  %v2970_v52 = vpack.c.bf16 %v2969_v48, %v2968_v50  ;;  %v5748_v38 = vld [vmem:[%s7705_s30 + $0x38] sm:$0xff]   ;;  %v5749_v39 = vld [vmem:[%s7705_s30 + $0x30] sm:$0xff]   ;;  %v5754_v27 = vld [vmem:[%s7705_s30 + $0x8] sm:$0xff]  }
 0x922   : > { %v3037_v53 = vpack.c.bf16 %v3036_v49, %v3035_v51  ;;  %5445 = vmatpush3.bf16.msra.mxu0 %v5748_v38  ;;  %v5755_v37 = vld [vmem:[%s7705_s30] sm:$0xff]  }
 0x923   : > { %5421 = vmatpush3.bf16.xpose.msra.mxu1 %v2888_v41  ;;  %5446 = vmatprep.subr.bf16.mxu0 %v6783_v3  ;;  %v5762_v38 = vld [vmem:[%s7620_s7 + $0x50] ss:$8 sps:$4 sm:$0xff]  }
 0x924   : > { %5426 = vmatprep.subr.bf16.mxu1 %v6783_v3 }
 0x926   : > { %5447 = vmatpush3.bf16.msra.mxu0 %v5749_v39  ;;  %v5765_v39 = vld [vmem:[%s7620_s7 + $0x40] ss:$8 sps:$4 sm:$0xff]  }
 0x927   : > { %5448 = vmatprep.subr.bf16.mxu0 %v6783_v3 }
 0x92a   : > { %5423 = vmatmul.mubr.bf16.vlgmr.msra.gmra.mxu1 %v2887_v45  ;;  %5449 = vmatpush3.bf16.msra.mxu0 %v5750_v40  ;;  %v5767_v40 = vld [vmem:[%s7620_s7 + $0x44] ss:$8 sps:$4 sm:$0xff]  }
 0x92b   : > { %5427 = vmatpush3.bf16.xpose.msra.mxu1 %v2888_v41  ;;  %5428 = vmatprep.mubr.msk.bf16.mxu1 %vm6787_vm2, %v6783_v3  ;;  %v5751_v41 = vld [vmem:[%s7705_s30 + $0x20] sm:$0xff]  }
 0x92c   : > { %5432 = vmatprep.subr.bf16.mxu1 %v6783_v3  ;;  %5450 = vmatprep.subr.bf16.mxu0 %v6783_v3 }
 0x92e   : > { %5451 = vmatpush3.bf16.msra.mxu0 %v5751_v41  ;;  %v5770_v41 = vld [vmem:[%s7620_s7 + $0x34] ss:$8 sps:$4 sm:$0xff]  }
 0x92f   : > { %5452 = vmatprep.subr.bf16.mxu0 %v6783_v3 }
 0x932   : > { %5429 = vmatmul.mubr.bf16.vlgmr.msra.gmra.mxu1 %v2970_v52 }
 0x933   : > { %5433 = vmatpush3.bf16.msra.mxu1 %v3037_v53  ;;  %5434 = vmatprep.mubr.msk.bf16.mxu1 %vm6787_vm2, %v6783_v3 }
 0x934   : > { %5438 = vmatprep.subr.bf16.mxu1 %v6783_v3 }
 0x9ea   : > { %v2929_v2 = vpop.f32.mrf.mxu1 }
 0x9eb   : > { %v2930_v61 = vadd.f32 %v5198_v57, %v2929_v2 }
 0x9ec   : > { %v5424_v54 = vpop.f32.mrf.mxu1 }
 0x9ed   : > { %v2937_v7 = vsel %vm2936_vm5, %v2930_v61, -inf }
 0x9ee   : > { %v2932_v55 = vpop.f32.mrf.mxu1 }
 0x9ef   : > { %v2933_v6 = vadd.f32 %v5198_v57, %v2932_v55 }
 0x9f0   : > { %v5425_v56 = vpop.f32.mrf.mxu1 }
 0x9f1   : > { %v2940_v9 = vsel %vm2936_vm5, %v2933_v6, -inf  ;;  %v5752_v56 = vld [vmem:[%s7705_s30 + $0x18] sm:$0xff]  }
 0x9f2   : > { %v3005_v58 = vpop.f32.mrf.mxu1  ;;  %5453 = vmatpush3.bf16.msra.mxu0 %v5752_v56 }
 0x9f3   : > { %v3006_v59 = vadd.f32 %v5198_v57, %v3005_v58  ;;  %5454 = vmatprep.subr.bf16.mxu0 %v6783_v3 }
 0x9f4   : > { %v5430_v60 = vpop.f32.mrf.mxu1 }
 0x9f5   : > { %v3012_v62 = vsel %vm2936_vm5, %v3006_v59, -inf }
 0x9f6   : > { %3013 = vmax.xlane.f32.xlu0 %v3012_v62  ;;  %v3008_v63 = vpop.f32.mrf.mxu1 }
 0x9f7   : > { %v3009_v0 = vadd.f32 %v5198_v57, %v3008_v63  ;;  %v5753_v57 = vld [vmem:[%s7705_s30 + $0x10] sm:$0xff]   ;;  %s8324_s30 = scalar_lea.vmem [#allocation19], %s7567_s18 }
 0x9f8   : > { %v5431_v5 = vpop.f32.mrf.mxu1  ;;  %5455 = vmatpush3.bf16.msra.mxu0 %v5753_v57  ;;  %v5211_v57 = vld [vmem:[%s8325_s21] ss:$0 sm:$0xff] }
 0x9f9   : > { %v3015_v8 = vsel %vm2936_vm5, %v3009_v0, -inf  ;;  %5456 = vmatprep.subr.bf16.mxu0 %v6783_v3 }
 0x9fa   : > { %2938 = vmax.xlane.f32.xlu0 %v2937_v7  ;;  %3016 = vmax.xlane.f32.xlu1 %v3015_v8  ;;  %v5202_v8 = vld [vmem:[%s8324_s30] ss:$0 sm:$0xff] }
 0x9fc   : > { %5457 = vmatpush3.bf16.msra.mxu0 %v5754_v27 }
 0x9fd   : > { %5458 = vmatprep.subr.bf16.mxu0 %v6783_v3 }
 0x9fe   : > { %2941 = vmax.xlane.f32.xlu1 %v2940_v9 }
 0xa00   : > { %5459 = vmatpush3.bf16.msra.mxu0 %v5755_v37 }
 0xa01   : > { %5464 = vmatprep.subr.bf16.mxu0 %v6783_v3 }
 0xa7f   : > { %v3014_v10 = vpop.xlane.xlu0 %3013 }
 0xa80   : > { %v3018_v11 = vsub.f32 %v3006_v59, %v3014_v10 }
 0xa82   : > { %v3020_v12 = vmul.f32 1.442695, %v3018_v11 }
 0xa83   : > { %v2939_v13 = vpop.xlane.xlu0 %2938  ;;  %v3017_v14 = vpop.xlane.xlu1 %3016 }
 0xa84   : > { %5852 = vpow2.f32 %v3020_v12  ;;  %v2943_v16 = vsub.f32 %v2930_v61, %v2939_v13  ;;  %v3019_v17 = vsub.f32 %v3009_v0, %v3017_v14 }
 0xa86   : > { %v2945_v19 = vmul.f32 1.442695, %v2943_v16  ;;  %v3022_v21 = vmul.f32 1.442695, %v3019_v17 }
 0xa87   : > { %v2942_v22 = vpop.xlane.xlu1 %2941 }
 0xa88   : > { %5854 = vpow2.f32 %v2945_v19  ;;  %v2944_v23 = vsub.f32 %v2933_v6, %v2942_v22  ;;  %v5756_v19 = vld [vmem:[%s7620_s7 + $0x70] ss:$8 sps:$4 sm:$0xff]  }
 0xa89   : > { %5856 = vpow2.f32 %v3022_v21  ;;  %v5758_v21 = vld [vmem:[%s7620_s7 + $0x74] ss:$8 sps:$4 sm:$0xff]  }
 0xa8a   : > { %v2947_v24 = vmul.f32 1.442695, %v2944_v23 }
 0xa8c   : > { %5858 = vpow2.f32 %v2947_v24 }
 0xa91   : > { %v5853_v26 = vpop.eup %5852 }
 0xa92   : > { %v3024_v25 = vsel %vm2936_vm5, %v5853_v26, 0.0 }
 0xa93   : > { %3025 = vadd.xlane.f32.xlu0 %v3024_v25 }
 0xa95   : > { %v5855_v30 = vpop.eup %5854 }
 0xa96   : > { %v5857_v32 = vpop.eup %5856  ;;  %v2949_v33 = vsel %vm2936_vm5, %v5855_v30, 0.0 }
 0xa97   : > { %2950 = vadd.xlane.f32.xlu0 %v2949_v33  ;;  %v3027_v34 = vsel %vm2936_vm5, %v5857_v32, 0.0 }
 0xa98   : > { %3028 = vadd.xlane.f32.xlu1 %v3027_v34  ;;  %v5761_v34 = vld [vmem:[%s7620_s7 + $0x64] ss:$8 sps:$4 sm:$0xff]  }
 0xa99   : > { %v5859_v35 = vpop.eup %5858 }
 0xa9a   : > { %v2952_v36 = vsel %vm2936_vm5, %v5859_v35, 0.0 }
 0xa9c   : > { %2953 = vadd.xlane.f32.xlu1 %v2952_v36  ;;  %v5764_v36 = vld [vmem:[%s7620_s7 + $0x54] ss:$8 sps:$4 sm:$0xff]  }
 0xb1c   : > { %v3026_v42 = vpop.xlane.xlu0 %3025 }
 0xb1d   : > { %5860 = vrcp.f32 %v3026_v42  ;;  %v5768_v42 = vld [vmem:[%s7620_s7 + $0x30] ss:$8 sps:$4 sm:$0xff]  }
 0xb20   : > { %v2951_v44 = vpop.xlane.xlu0 %2950 }
 0xb21   : > { %v3029_v43 = vpop.xlane.xlu1 %3028 }
 0xb22   : > { %5862 = vrcp.f32 %v3029_v43  ;;  %v5773_v43 = vld [vmem:[%s7620_s7 + $0x24] ss:$8 sps:$4 sm:$0xff]  }
 0xb25   : > { %v2954_v45 = vpop.xlane.xlu1 %2953 }
 0xb26   : > { %5864 = vrcp.f32 %v2954_v45  ;;  %v5776_v45 = vld [vmem:[%s7620_s7 + $0x14] ss:$8 sps:$4 sm:$0xff]  }
 0xb27   : > { %5866 = vrcp.f32 %v2951_v44  ;;  %v5771_v44 = vld [vmem:[%s7620_s7 + $0x20] ss:$8 sps:$4 sm:$0xff]  }
 0xb2a   : > { %v5861_v46 = vpop.eup %5860 }
 0xb2b   : > { %v3032_v49 = vmul.f32 %v5861_v46, %v5853_v26  ;;  %v5774_v46 = vld [vmem:[%s7620_s7 + $0x10] ss:$8 sps:$4 sm:$0xff]  }
 0xb2f   : > { %v5863_v48 = vpop.eup %5862 }
 0xb30   : > { %v3033_v50 = vmul.f32 %v5863_v48, %v5857_v32  ;;  %v5779_v48 = vld [vmem:[%s7620_s7 + $0x4] ss:$8 sps:$4 sm:$0xff]  }
 0xb32   : > { %v3034_v51 = vpack.c.bf16 %v3033_v50, %v3032_v49  ;;  %v5777_v49 = vld [vmem:[%s7620_s7] ss:$8 sps:$4 sm:$0xff]  }
 0xb33   : > { %v5865_v52 = vpop.eup %5864 }
 0xb34   : > { %5435 = vmatmul.mubr.msk.bf16.vlgmr.msra.gmra.mxu1 %vm2936_vm5, %v3034_v51  ;;  %v5867_v53 = vpop.eup %5866  ;;  %v2958_v2 = vmul.f32 %v5865_v52, %v5859_v35  ;;  %v5759_v35 = vld [vmem:[%s7620_s7 + $0x60] ss:$8 sps:$4 sm:$0xff]   ;;  %s8335_s7 = sld [smem:[#allocation96_spill]] }
 0xb35   : > { %5439 = vmatpush3.bf16.msra.mxu1 %v2962_v1  ;;  %5440 = vmatprep.mubr.msk.bf16.mxu1 %vm6787_vm2, %v6783_v3  ;;  %v2957_v54 = vmul.f32 %v5867_v53, %v5855_v30 }
 0xb36   : > { %3392 = vmatprep.subr.bf16.mxu1 %v5758_v21 }
 0xb37   : > { %v2959_v55 = vpack.c.bf16 %v2958_v2, %v2957_v54 }
 0xb3a   : > { %p5277_p13 = scmp.ne.s32.totalorder %s8335_s7, 3 }
 0xb3c   : > { %5441 = vmatmul.mubr.msk.bf16.vlgmr.msra.gmra.mxu1 %vm2936_vm5, %v2959_v55 }
 0xb3d   : > { %3424 = vmatprep.mubr.bf16.mxu1 %v6786_v47  ;;  %3393 = vmatpush1.bf16.msra.mxu1 %v5756_v19 }
 0xb3e   : > { %3394 = vmatprep.subr.bf16.mxu1 %v5761_v34 }
 0xb41   : > { %3395 = vmatpush1.bf16.msra.mxu1 %v5759_v35 }
 0xb42   : > { %3396 = vmatprep.subr.bf16.mxu1 %v5764_v36 }
 0xb45   : > { %3397 = vmatpush1.bf16.msra.mxu1 %v5762_v38  ;;  %v3473_v38 = vld [vmem:[#allocation3 + $0x2] sm:$0xff] }
 0xb46   : > { %3398 = vmatprep.subr.bf16.mxu1 %v5767_v40 }
 0xb49   : > { %3399 = vmatpush1.bf16.msra.mxu1 %v5765_v39 }
 0xb4a   : > { %3400 = vmatprep.subr.bf16.mxu1 %v5770_v41 }
 0xb4d   : > { %3401 = vmatpush1.bf16.msra.mxu1 %v5768_v42 }
 0xb4e   : > { %3402 = vmatprep.subr.bf16.mxu1 %v5773_v43  ;;  %v3483_v43 = vld [vmem:[#allocation3 + $0x3] sm:$0xff] }
 0xb51   : > { %3403 = vmatpush1.bf16.msra.mxu1 %v5771_v44 }
 0xb52   : > { %3404 = vmatprep.subr.bf16.mxu1 %v5776_v45  ;;  %v7973_v45 = vsub.s32 4, %v7773_v28 }
 0xb55   : > { %3405 = vmatpush1.bf16.msra.mxu1 %v5774_v46 }
 0xb56   : > { %3406 = vmatprep.subr.bf16.mxu1 %v5779_v48 }
 0xb59   : > { %3407 = vmatpush1.bf16.msra.mxu1 %v5777_v49 }
 0xbf4   : > { %v3075_v1 = vpop.f32.mrf.mxu1 }
 0xbf6   : > { %v5436_v58 = vpop.f32.mrf.mxu1 }
 0xbf7   : > { %v5212_v58 = vld [vmem:[%s8326_s10] ss:$0 sm:$0xff] }
 0xbf8   : > { %v3078_v59 = vpop.f32.mrf.mxu1 }
 0xbfa   : > { %v5437_v60 = vpop.f32.mrf.mxu1 }
 0xbfc   : > { %v3119_v61 = vpop.f32.mrf.mxu1 }
 0xbfd   : > { %v3120_v0 = vadd.f32 %v3119_v61, %v3075_v1 }
 0xbfe   : > { %v5442_v62 = vpop.f32.mrf.mxu1 }
 0xc00   : > { %v3122_v63 = vpop.f32.mrf.mxu1 }
 0xc01   : > { %v3123_v5 = vadd.f32 %v3122_v63, %v3078_v59  ;;  %v5780_v63 = vld [vmem:[%s7631_s5 + $0x38] sm:$0xff]  }
 0xc02   : > { %v5443_v6 = vpop.f32.mrf.mxu1 }
 0xc03   : > { %v3126_v7 = vpack.c.bf16 %v3123_v5, %v3120_v0  ;;  %v5781_v0 = vld [vmem:[%s7631_s5 + $0x30] sm:$0xff]   ;;  %v5782_v5 = vld [vmem:[%s7631_s5 + $0x28] sm:$0xff]   ;;  %v5783_v6 = vld [vmem:[%s7631_s5 + $0x20] sm:$0xff]  }
 0xc05   : > { %5461 = vmatmul.mubr.bf16.vlgmr.msra.gmra.mxu0 %v3126_v7  ;;  %v5784_v7 = vld [vmem:[%s7631_s5 + $0x18] sm:$0xff]  }
 0xc06   : > { %5480 = vmatprep.mubr.msk.bf16.mxu0 %vm6787_vm2, %v6783_v3  ;;  %5465 = vmatpush3.bf16.msra.mxu0 %v5780_v63 }
 0xc07   : > { %5466 = vmatprep.subr.bf16.mxu0 %v6783_v3 }
 0xc0a   : > { %5467 = vmatpush3.bf16.msra.mxu0 %v5781_v0 }
 0xc0b   : > { %5468 = vmatprep.subr.bf16.mxu0 %v6783_v3 }
 0xc0e   : > { %5469 = vmatpush3.bf16.msra.mxu0 %v5782_v5 }
 0xc0f   : > { %5470 = vmatprep.subr.bf16.mxu0 %v6783_v3 }
 0xc12   : > { %5471 = vmatpush3.bf16.msra.mxu0 %v5783_v6  ;;  %v3523_v6 = vld [vmem:[#allocation3 + $0x7] sm:$0xff] }
 0xc13   : > { %5472 = vmatprep.subr.bf16.mxu0 %v6783_v3 }
 0xc16   : > { %5473 = vmatpush3.bf16.msra.mxu0 %v5784_v7 }
 0xc17   : > { %5474 = vmatprep.subr.bf16.mxu0 %v6783_v3 }
 0xcc5   : > { %v3232_v9 = vpop.f32.mrf.mxu0 }
 0xcc6   : > { %v3233_v10 = vadd.f32 %v5202_v8, %v3232_v9  ;;  %v5787_v9 = vld [vmem:[%s7631_s5] sm:$0xff]  }
 0xcc7   : > { %v5462_v11 = vpop.f32.mrf.mxu0 }
 0xcc8   : > { %v7915_v12 = vadd.f32 %v3233_v10, %v7787_v18  ;;  %v3300_v10 = vld [vmem:[%s7699_s27] sm:$0x3]  ;;  %s8327_s27 = scalar_lea.vmem [#allocation25], %s7567_s18 }
 0xcc9   : > { %v3235_v13 = vpop.f32.mrf.mxu0  ;;  %v3309_v11 = vrot.slane %v3300_v10, %v7780_v31 }
 0xcca   : > { %v3236_v14 = vadd.f32 %v5202_v8, %v3235_v13  ;;  %3241 = vadd.xlane.f32.xlu0 %v7915_v12  ;;  %v5786_v8 = vld [vmem:[%s7631_s5 + $0x8] sm:$0xff]  }
 0xccb   : > { %v5463_v16 = vpop.f32.mrf.mxu0 }
 0xccc   : > { %v7919_v17 = vadd.f32 %v3236_v14, %v7791_v20 }
 0xcce   : > { %3243 = vadd.xlane.f32.xlu1 %v7919_v17 }
 0xd53   : > { %v3242_v22 = vpop.xlane.xlu0 %3241 }
 0xd54   : > { %v3245_v18 = vmul.f32 0.0125, %v3242_v22 }
 0xd56   : > { %v3247_v23 = vsub.f32 %v7915_v12, %v3245_v18 }
 0xd57   : > { %v3244_v24 = vpop.xlane.xlu1 %3243 }
 0xd58   : > { %v3249_v26 = vmul.f32 %v7693_v4, %v3247_v23  ;;  %v3246_v20 = vmul.f32 0.0125, %v3244_v24 }
 0xd5a   : > { %v3248_v25 = vsub.f32 %v7919_v17, %v3246_v20  ;;  %v3251_v30 = vmul.f32 %v3249_v26, %v3249_v26  ;;  %v3451_v20 = vld [vmem:[%s7710_s28] sm:$0xff] }
 0xd5b   : > { %v3478_v36 = vrot.slane %v3451_v20, %v7852_v15 }
 0xd5c   : > { %v3250_v32 = vmul.f32 %v7693_v4, %v3248_v25  ;;  %3253 = vadd.xlane.f32.xlu0 %v3251_v30  ;;  %v3460_v25 = vrot.slane %v3451_v20, %v7776_v29  ;;  %v3455_v30 = vld [vmem:[#allocation3] sm:$0xff] }
 0xd5d   : > { %v3479_v42 = vmul.f32 %v3478_v36, %v3473_v38 }
 0xd5e   : > { %v3252_v33 = vmul.f32 %v3250_v32, %v3250_v32  ;;  %v3461_v34 = vmul.f32 %v3460_v25, %v3455_v30 }
 0xd60   : > { %3255 = vadd.xlane.f32.xlu1 %v3252_v33  ;;  %v7968_v33 = vsub.s32 3, %v7773_v28 }
 0xd62   : > { %v3488_v40 = vrot.slane %v3451_v20, %v7968_v33 }
 0xd64   : > { %v3489_v48 = vmul.f32 %v3488_v40, %v3483_v43 }
 0xde5   : > { %v3254_v50 = vpop.xlane.xlu0 %3253 }
 0xde6   : > { %v3257_v51 = vmul.f32 0.0125, %v3254_v50 }
 0xde8   : > { %v3259_v52 = vadd.f32 1e-05, %v3257_v51  ;;  %v3498_v51 = vrot.slane %v3451_v20, %v7973_v45 }
 0xde9   : > { %v3256_v53 = vpop.xlane.xlu1 %3255 }
 0xdea   : > { %5868 = vrsqrt.f32 %v3259_v52  ;;  %v3258_v2 = vmul.f32 0.0125, %v3256_v53  ;;  %v7977_v52 = vsub.s32 5, %v7773_v28  ;;  %v3493_v53 = vld [vmem:[#allocation3 + $0x4] sm:$0xff] }
 0xdec   : > { %v3260_v54 = vadd.f32 1e-05, %v3258_v2 }
 0xdee   : > { %5870 = vrsqrt.f32 %v3260_v54  ;;  %v3499_v54 = vmul.f32 %v3498_v51, %v3493_v53 }
 0xdf7   : > { %v5869_v55 = vpop.eup %5868 }
 0xdf8   : > { %v3263_v56 = vmul.f32 %v5869_v55, %v3249_v26  ;;  %v3508_v55 = vrot.slane %v3451_v20, %v7977_v52 }
 0xdfa   : > { %v3272_v1 = vmul.f32 %v5211_v57, %v3263_v56  ;;  %v7981_v56 = vsub.s32 6, %v7773_v28 }
 0xdfb   : > { %v5871_v27 = vpop.eup %5870 }
 0xdfc   : > { %v3264_v37 = vmul.f32 %v5871_v27, %v3250_v32  ;;  %v3281_v60 = vadd.f32 %v5212_v58, %v3272_v1  ;;  %v3463_v32 = vld [vmem:[#allocation3 + $0x1] sm:$0xff]  ;;  %v3305_v27 = vrot.slane %v3300_v10, %v7776_v29 }
 0xdfe   : > { %v3273_v59 = vmul.f32 %v5211_v57, %v3264_v37  ;;  %v3503_v57 = vld [vmem:[#allocation3 + $0x5] sm:$0xff] }
 0xdff   : > { %v3509_v1 = vmul.f32 %v3508_v55, %v3503_v57 }
 0xe00   : > { %v3282_v61 = vadd.f32 %v5212_v58, %v3273_v59  ;;  %v3518_v58 = vrot.slane %v3451_v20, %v7981_v56  ;;  %v3513_v59 = vld [vmem:[#allocation3 + $0x6] sm:$0xff] }
 0xe02   : > { %v3283_v62 = vpack.c.bf16 %v3282_v61, %v3281_v60  ;;  %v7986_v61 = vsub.s32 7, %v7773_v28  ;;  %v3519_v5 = vmul.f32 %v3518_v58, %v3513_v59 }
 0xe04   : > { %3425 = vmatmul.mubr.bf16.vlgmr.msra.gmra.mxu1 %v3283_v62 }
 0xe05   : > { %4071 = vmatprep.mubr.bf16.mxu1 %v6786_v47  ;;  %v5785_v47 = vld [vmem:[%s7631_s5 + $0x10] sm:$0xff]   ;;  %s8329_s5 = scalar_lea.vmem [#allocation30], %s7567_s18 }
 0xe06   : > { %5475 = vmatpush3.bf16.msra.mxu0 %v5785_v47  ;;  %v3528_v47 = vrot.slane %v3451_v20, %v7986_v61 }
 0xe07   : > { %5476 = vmatprep.subr.bf16.mxu0 %v6783_v3 }
 0xe0a   : > { %5477 = vmatpush3.bf16.msra.mxu0 %v5786_v8 }
 0xe0b   : > { %5478 = vmatprep.subr.bf16.mxu0 %v6783_v3  ;;  %v3468_v3 = vrot.slane %v3451_v20, %v7780_v31 }
 0xe0d   : > { %v3469_v35 = vmul.f32 %v3468_v3, %v3463_v32 }
 0xe0e   : > { %5479 = vmatpush3.bf16.msra.mxu0 %v5787_v9 }
 0xe0f   : > { %v3471_v41 = vadd.f32 %v3469_v35, %v3461_v34 }
 0xe11   : > { %v3481_v49 = vadd.f32 %v3479_v42, %v3471_v41 }
 0xe13   : > { %v3491_v2 = vadd.f32 %v3489_v48, %v3481_v49 }
 0xe15   : > { %v3501_v37 = vadd.f32 %v3499_v54, %v3491_v2 }
 0xe17   : > { %v3511_v0 = vadd.f32 %v3509_v1, %v3501_v37 }
 0xe19   : > { %v3521_v10 = vadd.f32 %v3519_v5, %v3511_v0 }
 0xec4   : > { %v3426_v13 = vpop.f32.mrf.mxu1 }
 0xec5   : > { %v3427_v60 = vadd.f32 %v3426_v13, %v3305_v27  ;;  %v3452_v13 = vld [vmem:[%s7710_s28 + $0x8] sm:$0xff] }
 0xec6   : > { %v3428_v14 = vpop.f32.mrf.mxu1  ;;  %v3537_v28 = vrot.slane %v3452_v13, %v7776_v29  ;;  %v3564_v30 = vrot.slane %v3452_v13, %v7968_v33  ;;  %v3573_v41 = vrot.slane %v3452_v13, %v7973_v45  ;;  %v3600_v1 = vrot.slane %v3452_v13, %v7986_v61 }
 0xec7   : > { %v3429_v16 = vadd.f32 %v3428_v14, %v3309_v11 }
 0xec8   : > { %v3430_v19 = vpop.f32.mrf.mxu1 }
 0xec9   : > { %v3435_v21 = vsub.f32 0.0, %v3429_v16  ;;  %v3431_v7 = vadd.f32 %v3430_v19, %v3305_v27  ;;  %v3546_v16 = vrot.slane %v3452_v13, %v7780_v31  ;;  %v3555_v19 = vrot.slane %v3452_v13, %v7852_v15 }
 0xeca   : > { %v3432_v22 = vpop.f32.mrf.mxu1 }
 0xecb   : > { %v3437_v18 = vmul.f32 1.442695, %v3435_v21  ;;  %v3433_v23 = vadd.f32 %v3432_v22, %v3309_v11  ;;  %v3529_v11 = vmul.f32 %v3528_v47, %v3523_v6 }
 0xecd   : > { %5872 = vpow2.f32 %v3437_v18  ;;  %v3436_v24 = vsub.f32 0.0, %v3433_v23  ;;  %v3531_v14 = vadd.f32 %v3529_v11, %v3521_v10 }
 0xecf   : > { %v3439_v26 = vmul.f32 1.442695, %v3436_v24 }
 0xed1   : > { %5874 = vpow2.f32 %v3439_v26 }
 0xeda   : > { %v5873_v39 = vpop.eup %5872 }
 0xedb   : > { %v3441_v44 = vadd.f32 1.0, %v5873_v39 }
 0xedd   : > { %5876 = vrcp.f32 %v3441_v44 }
 0xede   : > { %v5875_v46 = vpop.eup %5874 }
 0xedf   : > { %v3442_v50 = vadd.f32 1.0, %v5875_v46 }
 0xee1   : > { %5878 = vrcp.f32 %v3442_v50 }
 0xeea   : > { %v5877_v62 = vpop.eup %5876 }
 0xeeb   : > { %v7988_v63 = vmul.f32 %v5877_v62, %v3427_v60 }
 0xeed   : > { %3449 = vst [vmem:[#allocation3 + $0xf] sm:$0xff] %v7988_v63 }
 0xeee   : > { %v5879_v8 = vpop.eup %5878 }
 0xeef   : > { %v7992_v9 = vmul.f32 %v5879_v8, %v3431_v7  ;;  %v3530_v7 = vmul.f32 %v3528_v47, %v7988_v63 }
 0xef1   : > { %3450 = vst [vmem:[#allocation3 + $0x17] sm:$0xff] %v7992_v9 }
 0xef4   : > { %v3456_v21 = vld [vmem:[#allocation3 + $0x8] sm:$0xff] }
 0xef5   : > { %v3464_v22 = vld [vmem:[#allocation3 + $0x9] sm:$0xff]  ;;  %v3462_v23 = vmul.f32 %v3460_v25, %v3456_v21  ;;  %v3538_v26 = vmul.f32 %v3537_v28, %v3456_v21  ;;  %v3582_v25 = vrot.slane %v3452_v13, %v7977_v52 }
 0xef6   : > { %v3474_v18 = vld [vmem:[#allocation3 + $0xa] sm:$0xff]  ;;  %v3470_v24 = vmul.f32 %v3468_v3, %v3464_v22  ;;  %v3547_v38 = vmul.f32 %v3546_v16, %v3464_v22 }
 0xef7   : > { %v3484_v20 = vld [vmem:[#allocation3 + $0xb] sm:$0xff]  ;;  %v3480_v34 = vmul.f32 %v3478_v36, %v3474_v18  ;;  %v3540_v35 = vadd.f32 %v3538_v26, %v3531_v14  ;;  %v3556_v46 = vmul.f32 %v3555_v19, %v3474_v18  ;;  %v3591_v36 = vrot.slane %v3452_v13, %v7981_v56 }
 0xef8   : > { %v3472_v32 = vadd.f32 %v3470_v24, %v3462_v23  ;;  %v3494_v39 = vld [vmem:[#allocation3 + $0xc] sm:$0xff]  ;;  %v3490_v43 = vmul.f32 %v3488_v40, %v3484_v20  ;;  %v3565_v53 = vmul.f32 %v3564_v30, %v3484_v20  ;;  %v3453_v40 = vld [vmem:[%s7710_s28 + $0x10] sm:$0xff]  ;;  %v3601_v13 = vmul.f32 %v3600_v1, %v7988_v63 }
 0xef9   : > { %v3549_v44 = vadd.f32 %v3547_v38, %v3540_v35  ;;  %v3504_v48 = vld [vmem:[#allocation3 + $0xd] sm:$0xff]  ;;  %v3500_v49 = vmul.f32 %v3498_v51, %v3494_v39  ;;  %v3574_v37 = vmul.f32 %v3573_v41, %v3494_v39  ;;  %v3609_v6 = vrot.slane %v3453_v40, %v7776_v29 }
 0xefa   : > { %v3482_v42 = vadd.f32 %v3480_v34, %v3472_v32  ;;  %v3514_v2 = vld [vmem:[#allocation3 + $0xe] sm:$0xff]  ;;  %v3510_v57 = vmul.f32 %v3508_v55, %v3504_v48  ;;  %v3583_v0 = vmul.f32 %v3582_v25, %v3504_v48  ;;  %v3618_v55 = vrot.slane %v3453_v40, %v7780_v31 }
 0xefb   : > { %v3558_v50 = vadd.f32 %v3556_v46, %v3549_v44  ;;  %v3520_v60 = vmul.f32 %v3518_v58, %v3514_v2  ;;  %v3533_v5 = vld [vmem:[#allocation3 + $0x10] sm:$0xff]  ;;  %v3592_v10 = vmul.f32 %v3591_v36, %v3514_v2  ;;  %v3627_v58 = vrot.slane %v3453_v40, %v7852_v15 }
 0xefc   : > { %v3492_v3 = vadd.f32 %v3490_v43, %v3482_v42  ;;  %v3542_v11 = vld [vmem:[#allocation3 + $0x11] sm:$0xff]  ;;  %v3539_v21 = vmul.f32 %v3537_v28, %v3533_v5  ;;  %v3610_v20 = vmul.f32 %v3609_v6, %v3533_v5  ;;  %v3636_v47 = vrot.slane %v3453_v40, %v7968_v33 }
 0xefd   : > { %v3567_v27 = vadd.f32 %v3565_v53, %v3558_v50  ;;  %v3551_v18 = vld [vmem:[#allocation3 + $0x12] sm:$0xff]  ;;  %v3548_v24 = vmul.f32 %v3546_v16, %v3542_v11  ;;  %v3619_v39 = vmul.f32 %v3618_v55, %v3542_v11  ;;  %v3645_v28 = vrot.slane %v3453_v40, %v7973_v45 }
 0xefe   : > { %v3502_v54 = vadd.f32 %v3500_v49, %v3492_v3  ;;  %v3560_v32 = vld [vmem:[#allocation3 + $0x13] sm:$0xff]  ;;  %v3557_v35 = vmul.f32 %v3555_v19, %v3551_v18  ;;  %v3628_v46 = vmul.f32 %v3627_v58, %v3551_v18  ;;  %v3654_v16 = vrot.slane %v3453_v40, %v7977_v52 }
 0xeff   : > { %v3576_v62 = vadd.f32 %v3574_v37, %v3567_v27  ;;  %v3569_v42 = vld [vmem:[#allocation3 + $0x14] sm:$0xff]  ;;  %v3566_v63 = vmul.f32 %v3564_v30, %v3560_v32  ;;  %v3637_v53 = vmul.f32 %v3636_v47, %v3560_v32  ;;  %v3663_v19 = vrot.slane %v3453_v40, %v7981_v56 }
 0xf00   : > { %v3512_v59 = vadd.f32 %v3510_v57, %v3502_v54  ;;  %v3578_v48 = vld [vmem:[#allocation3 + $0x15] sm:$0xff]  ;;  %v3575_v49 = vmul.f32 %v3573_v41, %v3569_v42  ;;  %v3454_v54 = vld [vmem:[%s7710_s28 + $0x18] sm:$0x7f]  ;;  %s8328_s28 = scalar_lea.vmem [#allocation27], %s7567_s18 }
 0xf01   : > { %v3585_v8 = vadd.f32 %v3583_v0, %v3576_v62  ;;  %v3587_v2 = vld [vmem:[#allocation3 + $0x16] sm:$0xff]  ;;  %v3584_v27 = vmul.f32 %v3582_v25, %v3578_v48  ;;  %v3655_v5 = vmul.f32 %v3654_v16, %v3578_v48  ;;  %v3668_v48 = vld [vmem:[#allocation3 + $0x1f] sm:$0xff] }
 0xf02   : > { %v3522_v51 = vadd.f32 %v3520_v60, %v3512_v59  ;;  %v3646_v59 = vmul.f32 %v3645_v28, %v3569_v42  ;;  %v3672_v60 = vrot.slane %v3453_v40, %v7986_v61  ;;  %v3593_v62 = vmul.f32 %v3591_v36, %v3587_v2  ;;  %v3623_v40 = vld [vmem:[#allocation3 + $0x1a] sm:$0xff] }
 0xf03   : > { %v3594_v22 = vadd.f32 %v3592_v10, %v3585_v8  ;;  %v3602_v8 = vmul.f32 %v3600_v1, %v7992_v9  ;;  %v3664_v11 = vmul.f32 %v3663_v19, %v3587_v2  ;;  %v3699_v36 = vrot.slane %v3454_v54, %v7852_v15 }
 0xf04   : > { %v3532_v14 = vadd.f32 %v3530_v7, %v3522_v51  ;;  %v3605_v51 = vld [vmem:[#allocation3 + $0x18] sm:$0xff]  ;;  %v3681_v7 = vrot.slane %v3454_v54, %v7776_v29  ;;  %v3673_v61 = vmul.f32 %v3672_v60, %v7992_v9  ;;  %v3708_v1 = vrot.slane %v3454_v54, %v7968_v33 }
 0xf05   : > { %v3603_v26 = vadd.f32 %v3601_v13, %v3594_v22  ;;  %v3611_v22 = vmul.f32 %v3609_v6, %v3605_v51  ;;  %v3717_v6 = vrot.slane %v3454_v54, %v7973_v45  ;;  %v3726_v15 = vrot.slane %v3454_v54, %v7977_v52  ;;  %v3659_v33 = vld [vmem:[#allocation3 + $0x1e] sm:$0xff] }
 0xf06   : > { %v3541_v23 = vadd.f32 %v3539_v21, %v3532_v14  ;;  %v3614_v14 = vld [vmem:[#allocation3 + $0x19] sm:$0xff]  ;;  %v3690_v21 = vrot.slane %v3454_v54, %v7780_v31  ;;  %v3686_v52 = vld [vmem:[#allocation3 + $0x21] sm:$0xff] }
 0xf07   : > { %v3612_v38 = vadd.f32 %v3610_v20, %v3603_v26  ;;  %v3682_v26 = vmul.f32 %v3681_v7, %v3605_v51  ;;  %v3632_v20 = vld [vmem:[#allocation3 + $0x1b] sm:$0xff] }
 0xf08   : > { %v3550_v34 = vadd.f32 %v3548_v24, %v3541_v23  ;;  %v3620_v23 = vmul.f32 %v3618_v55, %v3614_v14  ;;  %v3695_v51 = vld [vmem:[#allocation3 + $0x22] sm:$0xff] }
 0xf09   : > { %v3621_v44 = vadd.f32 %v3619_v39, %v3612_v38  ;;  %v3691_v38 = vmul.f32 %v3690_v21, %v3614_v14  ;;  %v3641_v39 = vld [vmem:[#allocation3 + $0x1c] sm:$0xff]  ;;  %v3713_v14 = vld [vmem:[#allocation3 + $0x24] sm:$0xff] }
 0xf0a   : > { %v3559_v43 = vadd.f32 %v3557_v35, %v3550_v34  ;;  %v3629_v34 = vmul.f32 %v3627_v58, %v3623_v40  ;;  %v3736_v58 = vrot.slane %v3454_v54, %v7981_v56  ;;  %v3718_v45 = vmul.f32 %v3717_v6, %v3641_v39  ;;  %v5229_v56 = vld [vmem:[%s8327_s27] ss:$0 sm:$0xff] }
 0xf0b   : > { %v3630_v50 = vadd.f32 %v3628_v46, %v3621_v44  ;;  %v3650_v44 = vld [vmem:[#allocation3 + $0x1d] sm:$0xff]  ;;  %v3647_v46 = vmul.f32 %v3645_v28, %v3641_v39 }
 0xf0c   : > { %v3568_v3 = vadd.f32 %v3566_v63, %v3559_v43  ;;  %v3638_v43 = vmul.f32 %v3636_v47, %v3632_v20  ;;  %v3700_v63 = vmul.f32 %v3699_v36, %v3623_v40  ;;  %v3677_v47 = vld [vmem:[#allocation3 + $0x20] sm:$0xff] }
 0xf0d   : > { %v3639_v37 = vadd.f32 %v3637_v53, %v3630_v50  ;;  %v3656_v53 = vmul.f32 %v3654_v16, %v3650_v44 }
 0xf0e   : > { %v3577_v57 = vadd.f32 %v3575_v49, %v3568_v3  ;;  %v3709_v49 = vmul.f32 %v3708_v1, %v3632_v20 }
 0xf0f   : > { %v3648_v0 = vadd.f32 %v3646_v59, %v3639_v37  ;;  %v3665_v37 = vmul.f32 %v3663_v19, %v3659_v33  ;;  %v5230_v19 = vld [vmem:[%s8328_s28] ss:$0 sm:$0xff] }
 0xf10   : > { %v3586_v30 = vadd.f32 %v3584_v27, %v3577_v57  ;;  %v3674_v57 = vmul.f32 %v3672_v60, %v3668_v48  ;;  %v3701_v60 = vmul.f32 %v3699_v36, %v3695_v51  ;;  %v5231_v48 = vld [vmem:[%s8329_s5] ss:$0 sm:$0xff]  ;;  %v5793_v51 = vld [vmem:[%s7647_s4 + $0x64] ss:$8 sps:$4 sm:$0xff]  }
 0xf11   : > { %v3657_v10 = vadd.f32 %v3655_v5, %v3648_v0  ;;  %v3737_v5 = vmul.f32 %v3736_v58, %v3659_v33 }
 0xf12   : > { %v3595_v41 = vadd.f32 %v3593_v62, %v3586_v30  ;;  %v3727_v30 = vmul.f32 %v3726_v15, %v3650_v44  ;;  %v3683_v62 = vmul.f32 %v3681_v7, %v3677_v47  ;;  %v3719_v7 = vmul.f32 %v3717_v6, %v3713_v14  ;;  %v5790_v47 = vld [vmem:[%s7647_s4 + $0x74] ss:$8 sps:$4 sm:$0xff]  }
 0xf13   : > { %v3666_v13 = vadd.f32 %v3664_v11, %v3657_v10  ;;  %4039 = vmatprep.subr.bf16.mxu1 %v5790_v47  ;;  %v5808_v14 = vld [vmem:[%s7647_s4 + $0x14] ss:$8 sps:$4 sm:$0xff]  }
 0xf14   : > { %v3604_v25 = vadd.f32 %v3602_v8, %v3595_v41  ;;  %v3692_v41 = vmul.f32 %v3690_v21, %v3686_v52  ;;  %v3704_v8 = vld [vmem:[#allocation3 + $0x23] sm:$0xff] }
 0xf15   : > { %v3675_v24 = vadd.f32 %v3673_v61, %v3666_v13  ;;  %v3722_v13 = vld [vmem:[#allocation3 + $0x25] sm:$0xff] }
 0xf16   : > { %v3613_v18 = vadd.f32 %v3611_v22, %v3604_v25  ;;  %v3710_v22 = vmul.f32 %v3708_v1, %v3704_v8  ;;  %v5802_v8 = vld [vmem:[%s7647_s4 + $0x34] ss:$8 sps:$4 sm:$0xff]  }
 0xf17   : > { %v3684_v35 = vadd.f32 %v3682_v26, %v3675_v24  ;;  %v3728_v24 = vmul.f32 %v3726_v15, %v3722_v13 }
 0xf18   : > { %v3622_v32 = vadd.f32 %v3620_v23, %v3613_v18  ;;  %v3732_v18 = vld [vmem:[#allocation3 + $0x26] sm:$0xff] }
 0xf19   : > { %v3693_v9 = vadd.f32 %v3691_v38, %v3684_v35  ;;  %v3738_v20 = vmul.f32 %v3736_v58, %v3732_v18 }
 0xf1a   : > { %v3631_v42 = vadd.f32 %v3629_v34, %v3622_v32 }
 0xf1b   : > { %v3702_v3 = vadd.f32 %v3700_v63, %v3693_v9 }
 0xf1c   : > { %v3640_v55 = vadd.f32 %v3638_v43, %v3631_v42 }
 0xf1d   : > { %v3711_v2 = vadd.f32 %v3709_v49, %v3702_v3 }
 0xf1e   : > { %v3649_v50 = vadd.f32 %v3647_v46, %v3640_v55 }
 0xf1f   : > { %v3720_v59 = vadd.f32 %v3718_v45, %v3711_v2 }
 0xf20   : > { %v3658_v27 = vadd.f32 %v3656_v53, %v3649_v50 }
 0xf21   : > { %v3729_v0 = vadd.f32 %v3727_v30, %v3720_v59 }
 0xf22   : > { %v3667_v28 = vadd.f32 %v3665_v37, %v3658_v27 }
 0xf23   : > { %v3739_v16 = vadd.f32 %v3737_v5, %v3729_v0  ;;  %v5791_v5 = vld [vmem:[%s7647_s4 + $0x60] ss:$8 sps:$4 sm:$0xff]  }
 0xf24   : > { %v3676_v54 = vadd.f32 %v3674_v57, %v3667_v28  ;;  %v5788_v57 = vld [vmem:[%s7647_s4 + $0x70] ss:$8 sps:$4 sm:$0xff]  }
 0xf25   : > { %v3748_v11 = vmul.f32 %v5229_v56, %v3739_v16  ;;  %4040 = vmatpush1.bf16.msra.mxu1 %v5788_v57  ;;  %v5797_v16 = vld [vmem:[%s7647_s4 + $0x40] ss:$8 sps:$4 sm:$0xff]  }
 0xf26   : > { %v3685_v10 = vadd.f32 %v3683_v62, %v3676_v54  ;;  %4041 = vmatprep.subr.bf16.mxu1 %v5793_v51  ;;  %v5796_v54 = vld [vmem:[%s7647_s4 + $0x54] ss:$8 sps:$4 sm:$0xff]   ;;  %v3947_v57 = vld [vmem:[%s7654_s22] sm:$0x3]  ;;  %s8332_s22 = scalar_lea.vmem [#allocation39], %s7567_s18 }
 0xf27   : > { %v3757_v40 = vadd.f32 %v5230_v19, %v3748_v11  ;;  %v5803_v11 = vld [vmem:[%s7647_s4 + $0x20] ss:$8 sps:$4 sm:$0xff]   ;;  %v3952_v47 = vrot.slane %v3947_v57, %v7776_v29 }
 0xf28   : > { %v3694_v25 = vadd.f32 %v3692_v41, %v3685_v10  ;;  %v5799_v41 = vld [vmem:[%s7647_s4 + $0x44] ss:$8 sps:$4 sm:$0xff]   ;;  %v5800_v10 = vld [vmem:[%s7647_s4 + $0x30] ss:$8 sps:$4 sm:$0xff]  }
 0xf29   : > { %v3759_v21 = vsub.f32 0.0, %v3757_v40  ;;  %4042 = vmatpush1.bf16.msra.mxu1 %v5791_v5 }
 0xf2a   : > { %v3703_v61 = vadd.f32 %v3701_v60, %v3694_v25  ;;  %4043 = vmatprep.subr.bf16.mxu1 %v5796_v54  ;;  %v5805_v60 = vld [vmem:[%s7647_s4 + $0x24] ss:$8 sps:$4 sm:$0xff]  }
 0xf2b   : > { %v3761_v35 = vmul.f32 1.442695, %v3759_v21  ;;  %v5811_v25 = vld [vmem:[%s7647_s4 + $0x4] ss:$8 sps:$4 sm:$0xff]  }
 0xf2c   : > { %v3712_v23 = vadd.f32 %v3710_v22, %v3703_v61  ;;  %v5809_v22 = vld [vmem:[%s7647_s4] ss:$8 sps:$4 sm:$0xff]  }
 0xf2d   : > { %5880 = vpow2.f32 %v3761_v35 }
 0xf2e   : > { %v3721_v26 = vadd.f32 %v3719_v7, %v3712_v23 }
 0xf30   : > { %v3730_v32 = vadd.f32 %v3728_v24, %v3721_v26 }
 0xf32   : > { %v3740_v34 = vadd.f32 %v3738_v20, %v3730_v32  ;;  %v5240_v20 = vld [vmem:[%s8330_s26] ss:$0 sm:$0xff] }
 0xf34   : > { %v3749_v36 = vmul.f32 %v5229_v56, %v3740_v34  ;;  %v5794_v56 = vld [vmem:[%s7647_s4 + $0x50] ss:$8 sps:$4 sm:$0xff]  }
 0xf35   : > { %4044 = vmatpush1.bf16.msra.mxu1 %v5794_v56 }
 0xf36   : > { %v3758_v38 = vadd.f32 %v5230_v19, %v3749_v36  ;;  %4045 = vmatprep.subr.bf16.mxu1 %v5799_v41  ;;  %v5806_v19 = vld [vmem:[%s7647_s4 + $0x10] ss:$8 sps:$4 sm:$0xff]   ;;  %s8331_s4 = scalar_lea.vmem [#allocation33], %s7567_s18 }
 0xf37   : > { %v5241_v35 = vld [vmem:[%s8331_s4] ss:$0 sm:$0xff] }
 0xf38   : > { %v3760_v39 = vsub.f32 0.0, %v3758_v38 }
 0xf39   : > { %4046 = vmatpush1.bf16.msra.mxu1 %v5797_v16 }
 0xf3a   : > { %v3763_v42 = vmul.f32 1.442695, %v3760_v39  ;;  %v5881_v1 = vpop.eup %5880  ;;  %4047 = vmatprep.subr.bf16.mxu1 %v5802_v8 }
 0xf3b   : > { %v3765_v43 = vadd.f32 1.0, %v5881_v1  ;;  %v5812_v1 = vld [vmem:[%s7658_s23 + $0x78] sm:$0xff]  }
 0xf3c   : > { %5882 = vpow2.f32 %v3763_v42  ;;  %5358 = vmatprep.subr.bf16.mxu0 %v5812_v1 }
 0xf3d   : > { %5884 = vrcp.f32 %v3765_v43  ;;  %4048 = vmatpush1.bf16.msra.mxu1 %v5800_v10  ;;  %v5813_v43 = vld [vmem:[%s7658_s23 + $0x38] sm:$0xff]  }
 0xf3e   : > { %4049 = vmatprep.subr.bf16.mxu1 %v5805_v60 }
 0xf41   : > { %4050 = vmatpush1.bf16.msra.mxu1 %v5803_v11 }
 0xf42   : > { %4051 = vmatprep.subr.bf16.mxu1 %v5808_v14 }
 0xf45   : > { %4052 = vmatpush1.bf16.msra.mxu1 %v5806_v19 }
 0xf46   : > { %4053 = vmatprep.subr.bf16.mxu1 %v5811_v25 }
 0xf49   : > { %v5883_v6 = vpop.eup %5882  ;;  %4054 = vmatpush1.bf16.msra.mxu1 %v5809_v22 }
 0xf4a   : > { %v3766_v9 = vadd.f32 1.0, %v5883_v6  ;;  %v5885_v63 = vpop.eup %5884  ;;  %v5814_v6 = vld [vmem:[%s7658_s23 + $0x70] sm:$0xff]  }
 0xf4b   : > { %v3771_v15 = vmul.f32 %v5885_v63, %v3757_v40  ;;  %v5816_v63 = vld [vmem:[%s7658_s23 + $0x68] sm:$0xff]  }
 0xf4c   : > { %5886 = vrcp.f32 %v3766_v9  ;;  %v5815_v9 = vld [vmem:[%s7658_s23 + $0x30] sm:$0xff]  }
 0xf59   : > { %v5887_v44 = vpop.eup %5886 }
 0xf5a   : > { %v3772_v55 = vmul.f32 %v5887_v44, %v3758_v38  ;;  %v5817_v44 = vld [vmem:[%s7658_s23 + $0x28] sm:$0xff]  }
 0xf5c   : > { %v3773_v46 = vpack.c.bf16 %v3772_v55, %v3771_v15  ;;  %v5818_v15 = vld [vmem:[%s7658_s23 + $0x60] sm:$0xff]  }
 0xf5d   : > { %v5819_v55 = vld [vmem:[%s7658_s23 + $0x20] sm:$0xff]  }
 0xf5e   : > { %5481 = vmatmul.mubr.bf16.vlgmr.msra.gmra.mxu0 %v3773_v46  ;;  %v5820_v46 = vld [vmem:[%s7658_s23 + $0x58] sm:$0xff]  }
 0xf5f   : > { %5359 = vmatpush3.bf16.msra.mxu0 %v5813_v43 }
 0xf60   : > { %5360 = vmatprep.subr.bf16.mxu0 %v5814_v6 }
 0xf63   : > { %5361 = vmatpush3.bf16.msra.mxu0 %v5815_v9 }
 0xf64   : > { %5362 = vmatprep.subr.bf16.mxu0 %v5816_v63 }
 0xf67   : > { %5363 = vmatpush3.bf16.msra.mxu0 %v5817_v44 }
 0xf68   : > { %5364 = vmatprep.subr.bf16.mxu0 %v5818_v15 }
 0xf6b   : > { %5365 = vmatpush3.bf16.msra.mxu0 %v5819_v55 }
 0xf6c   : > { %5366 = vmatprep.subr.bf16.mxu0 %v5820_v46 }
0x101e   : > { %v3879_v3 = vpop.f32.mrf.mxu0 }
0x101f   : > { %v3880_v49 = vadd.f32 %v5231_v48, %v3879_v3  ;;  %v5822_v3 = vld [vmem:[%s7658_s23 + $0x50] sm:$0xff]  }
0x1020   : > { %v5482_v33 = vpop.f32.mrf.mxu0 }
0x1021   : > { %v8032_v58 = vadd.f32 %v3880_v49, %v7915_v12  ;;  %v5823_v49 = vld [vmem:[%s7658_s23 + $0x10] sm:$0xff]   ;;  %v5824_v33 = vld [vmem:[%s7658_s23 + $0x48] sm:$0xff]  }
0x1022   : > { %v3882_v50 = vpop.f32.mrf.mxu0 }
0x1023   : > { %v3883_v53 = vadd.f32 %v5231_v48, %v3882_v50  ;;  %3888 = vadd.xlane.f32.xlu0 %v8032_v58  ;;  %v5821_v48 = vld [vmem:[%s7658_s23 + $0x18] sm:$0xff]   ;;  %v5825_v50 = vld [vmem:[%s7658_s23 + $0x8] sm:$0xff]  }
0x1024   : > { %v5483_v2 = vpop.f32.mrf.mxu0  ;;  %5367 = vmatpush3.bf16.msra.mxu0 %v5821_v48 }
0x1025   : > { %v8036_v45 = vadd.f32 %v3883_v53, %v7919_v17  ;;  %5368 = vmatprep.subr.bf16.mxu0 %v5822_v3  ;;  %v5826_v53 = vld [vmem:[%s7658_s23 + $0x40] sm:$0xff]  }
0x1026   : > { %v5827_v2 = vld [vmem:[%s7658_s23] sm:$0xff]  }
0x1027   : > { %3890 = vadd.xlane.f32.xlu1 %v8036_v45 }
0x1028   : > { %5369 = vmatpush3.bf16.msra.mxu0 %v5823_v49 }
0x1029   : > { %5370 = vmatprep.subr.bf16.mxu0 %v5824_v33 }
0x102c   : > { %5371 = vmatpush3.bf16.msra.mxu0 %v5825_v50 }
0x102d   : > { %5372 = vmatprep.subr.bf16.mxu0 %v5826_v53 }
0x1030   : > { %5373 = vmatpush3.bf16.msra.mxu0 %v5827_v2 }
0x10ac   : > { %v3889_v27 = vpop.xlane.xlu0 %3888 }
0x10ad   : > { %v3892_v12 = vmul.f32 0.0125, %v3889_v27  ;;  %v3956_v27 = vrot.slane %v3947_v57, %v7780_v31 }
0x10af   : > { %v3894_v37 = vsub.f32 %v8032_v58, %v3892_v12 }
0x10b0   : > { %v3891_v59 = vpop.xlane.xlu1 %3890 }
0x10b1   : > { %v3896_v30 = vmul.f32 %v7693_v4, %v3894_v37  ;;  %v3893_v17 = vmul.f32 0.0125, %v3891_v59 }
0x10b3   : > { %v3895_v52 = vsub.f32 %v8036_v45, %v3893_v17  ;;  %v3898_v28 = vmul.f32 %v3896_v30, %v3896_v30 }
0x10b5   : > { %v3897_v62 = vmul.f32 %v7693_v4, %v3895_v52  ;;  %3900 = vadd.xlane.f32.xlu0 %v3898_v28 }
0x10b7   : > { %v3899_v0 = vmul.f32 %v3897_v62, %v3897_v62 }
0x10b9   : > { %3902 = vadd.xlane.f32.xlu1 %v3899_v0 }
0x113e   : > { %v3901_v13 = vpop.xlane.xlu0 %3900 }
0x113f   : > { %v3904_v61 = vmul.f32 0.0125, %v3901_v13 }
0x1141   : > { %v3906_v7 = vadd.f32 1e-05, %v3904_v61 }
0x1142   : > { %v3903_v40 = vpop.xlane.xlu1 %3902 }
0x1143   : > { %5888 = vrsqrt.f32 %v3906_v7  ;;  %v3905_v18 = vmul.f32 0.0125, %v3903_v40 }
0x1145   : > { %v3907_v23 = vadd.f32 1e-05, %v3905_v18 }
0x1147   : > { %5890 = vrsqrt.f32 %v3907_v23 }
0x1150   : > { %v5889_v24 = vpop.eup %5888 }
0x1151   : > { %v3910_v26 = vmul.f32 %v5889_v24, %v3896_v30 }
0x1153   : > { %v3919_v34 = vmul.f32 %v5240_v20, %v3910_v26 }
0x1154   : > { %v5891_v21 = vpop.eup %5890 }
0x1155   : > { %v3911_v32 = vmul.f32 %v5891_v21, %v3897_v62  ;;  %v3928_v38 = vadd.f32 %v5241_v35, %v3919_v34 }
0x1157   : > { %v3920_v36 = vmul.f32 %v5240_v20, %v3911_v32  ;;  %v5258_v32 = vld [vmem:[%s8332_s22] ss:$0 sm:$0xff] }
0x1159   : > { %v3929_v39 = vadd.f32 %v5241_v35, %v3920_v36 }
0x115b   : > { %v3930_v42 = vpack.c.bf16 %v3929_v39, %v3928_v38 }
0x115d   : > { %4072 = vmatmul.mubr.bf16.vlgmr.msra.gmra.mxu1 %v3930_v42 }
0x121d   : > { %v4073_v12 = vpop.f32.mrf.mxu1 }
0x121e   : > { %v4074_v37 = vadd.f32 %v4073_v12, %v3952_v47 }
0x121f   : > { %v4075_v59 = vpop.f32.mrf.mxu1 }
0x1220   : > { %v4082_v30 = vsub.f32 0.0, %v4074_v37  ;;  %v4076_v17 = vadd.f32 %v4075_v59, %v3956_v27 }
0x1221   : > { %v4077_v52 = vpop.f32.mrf.mxu1 }
0x1222   : > { %v4086_v28 = vmul.f32 1.442695, %v4082_v30  ;;  %v4083_v62 = vsub.f32 0.0, %v4076_v17  ;;  %v4078_v0 = vadd.f32 %v4077_v52, %v3952_v47  ;;  %v5276_v30 = vld [vmem:[%s8334_s3] ss:$0 sm:$0xff] }
0x1223   : > { %v4079_v5 = vpop.f32.mrf.mxu1 }
0x1224   : > { %v4088_v51 = vmul.f32 1.442695, %v4083_v62  ;;  %v4084_v56 = vsub.f32 0.0, %v4078_v0  ;;  %v4080_v54 = vadd.f32 %v4079_v5, %v3956_v27  ;;  %5892 = vpow2.f32 %v4086_v28 }
0x1226   : > { %5894 = vpow2.f32 %v4088_v51  ;;  %v4090_v41 = vmul.f32 1.442695, %v4084_v56  ;;  %v4085_v16 = vsub.f32 0.0, %v4080_v54 }
0x1228   : > { %5896 = vpow2.f32 %v4090_v41  ;;  %v4092_v29 = vmul.f32 1.442695, %v4085_v16 }
0x122a   : > { %5898 = vpow2.f32 %v4092_v29 }
0x1231   : > { %v5893_v31 = vpop.eup %5892 }
0x1232   : > { %v4094_v11 = vadd.f32 1.0, %v5893_v31 }
0x1233   : > { %v5895_v8 = vpop.eup %5894 }
0x1234   : > { %v4095_v10 = vadd.f32 1.0, %v5895_v8 }
0x1235   : > { %v5897_v60 = vpop.eup %5896 }
0x1236   : > { %v4096_v14 = vadd.f32 1.0, %v5897_v60  ;;  %5900 = vrcp.f32 %v4095_v10 }
0x1237   : > { %v5899_v19 = vpop.eup %5898 }
0x1238   : > { %5902 = vrcp.f32 %v4096_v14  ;;  %v4097_v25 = vadd.f32 1.0, %v5899_v19 }
0x1239   : > { %5904 = vrcp.f32 %v4094_v11 }
0x123a   : > { %5906 = vrcp.f32 %v4097_v25 }
0x1243   : > { %v5901_v22 = vpop.eup %5900 }
0x1244   : > { %v4107_v18 = vmul.f32 %v5901_v22, %v4076_v17 }
0x1245   : > { %v5903_v13 = vpop.eup %5902 }
0x1246   : > { %v5905_v61 = vpop.eup %5904  ;;  %v4108_v40 = vmul.f32 %v5903_v13, %v4078_v0 }
0x1247   : > { %v5907_v7 = vpop.eup %5906  ;;  %v4106_v24 = vmul.f32 %v5905_v61, %v4074_v37  ;;  %v5275_v37 = vld [vmem:[%s8333_s11] ss:$0 sm:$0xff] }
0x1248   : > { %v4109_v23 = vmul.f32 %v5907_v7, %v4080_v54 }
0x1249   : > { %v4110_v20 = vpack.c.bf16 %v4108_v40, %v4106_v24 }
0x124a   : > { %v4111_v26 = vpack.c.bf16 %v4109_v23, %v4107_v18 }
0x124c   : > { %4279 = vmatprep.mubr.bf16.mxu0 %v4111_v26 }
0x124d   : > { %4280 = vmatmul.mubr.bf16.vlgmr.msra.gmra.mxu0 %v4110_v20 }
0x130d   : > { %v5374_v21 = vpop.f32.mrf.mxu0 }
0x130f   : > { %v5375_v34 = vpop.f32.mrf.mxu0 }
0x1310   : > { %v5376_v35 = vadd.f32 %v5375_v34, %v5374_v21 }
0x1311   : > { %v5377_v36 = vpop.f32.mrf.mxu0 }
0x1312   : > { %v4282_v38 = vadd.f32 %v5376_v35, %v5258_v32 }
0x1313   : > { %v5378_v39 = vpop.f32.mrf.mxu0 }
0x1314   : > { %v4288_v42 = vmul.f32 0.5, %v4282_v38  ;;  %v5379_v1 = vadd.f32 %v5378_v39, %v5377_v36 }
0x1316   : > { %v4285_v43 = vadd.f32 %v5379_v1, %v5258_v32  ;;  %v4290_v6 = vadd.f32 %v4288_v42, %v8032_v58 }
0x1318   : > { %v4289_v9 = vmul.f32 0.5, %v4285_v43  ;;  %4292 = vadd.xlane.f32.xlu0 %v4290_v6 }
0x131a   : > { %v4291_v63 = vadd.f32 %v4289_v9, %v8036_v45 }
0x131c   : > { %4294 = vadd.xlane.f32.xlu1 %v4291_v63 }
0x13a1   : > { %v4293_v44 = vpop.xlane.xlu0 %4292 }
0x13a2   : > { %v4296_v15 = vmul.f32 0.0125, %v4293_v44 }
0x13a4   : > { %v4298_v55 = vsub.f32 %v4290_v6, %v4296_v15 }
0x13a5   : > { %v4295_v46 = vpop.xlane.xlu1 %4294 }
0x13a6   : > { %v4300_v48 = vmul.f32 %v7693_v4, %v4298_v55  ;;  %v4297_v3 = vmul.f32 0.0125, %v4295_v46 }
0x13a8   : > { %v4299_v49 = vsub.f32 %v4291_v63, %v4297_v3  ;;  %v4302_v33 = vmul.f32 %v4300_v48, %v4300_v48 }
0x13aa   : > { %v4301_v50 = vmul.f32 %v7693_v4, %v4299_v49  ;;  %4304 = vadd.xlane.f32.xlu0 %v4302_v33 }
0x13ac   : > { %v4303_v58 = vmul.f32 %v4301_v50, %v4301_v50 }
0x13ae   : > { %4306 = vadd.xlane.f32.xlu1 %v4303_v58 }
0x1433   : > { %v4305_v53 = vpop.xlane.xlu0 %4304 }
0x1434   : > { %v4308_v2 = vmul.f32 0.0125, %v4305_v53 }
0x1436   : > { %v4310_v45 = vadd.f32 1e-05, %v4308_v2 }
0x1437   : > { %v4307_v57 = vpop.xlane.xlu1 %4306 }
0x1438   : > { %5908 = vrsqrt.f32 %v4310_v45  ;;  %v4309_v47 = vmul.f32 0.0125, %v4307_v57 }
0x143a   : > { %v4311_v27 = vadd.f32 1e-05, %v4309_v47 }
0x143c   : > { %5910 = vrsqrt.f32 %v4311_v27 }
0x1445   : > { %v5909_v12 = vpop.eup %5908 }
0x1446   : > { %v4314_v59 = vmul.f32 %v5909_v12, %v4300_v48 }
0x1448   : > { %v4323_v17 = vmul.f32 %v5275_v37, %v4314_v59 }
0x1449   : > { %v5911_v52 = vpop.eup %5910 }
0x144a   : > { %v4332_v4 = vadd.f32 %v5276_v30, %v4323_v17  ;;  %v4315_v28 = vmul.f32 %v5911_v52, %v4301_v50 }
0x144c   : > { %4334 = vst [vmem:[#allocation2] sm:$0xff] %v4332_v4  ;;  %v4324_v62 = vmul.f32 %v5275_v37, %v4315_v28  ;;  %4339 = sbr.rel (%p5277_p13) target bundleno = 5558 (0x15b6), region = 272 }
0x144e   : > { %v4333_v0 = vadd.f32 %v5276_v30, %v4324_v62 }
0x1450   : > { %4335 = vst [vmem:[#allocation2 + $0x8] sm:$0xff] %v4333_v0 }
0x1451   : > { %v5278_v5 = vld [vmem:[#allocation43] ss:$0 sm:$0xff]  ;;  %v6788_v54 = vmov 0   ;;  %v5279_v41 = vld [vmem:[#allocation4] ss:$0 sm:$0xff]  ;;  %vm4362_vm6 = vcmask 7168  }
0x1452   : > { %v4347_v51 = vmul.f32 %v5278_v5, %v4332_v4  ;;  %v4348_v56 = vmul.f32 %v5278_v5, %v4333_v0  ;;  %5912 = vset.pattern.permute.xlu1 %v6788_v54  ;;  %5913 = vset.pattern.permute.xlu0 %v6788_v54 }
0x1454   : > { %4349 = vadd.xlane.f32.xlu0 %v4347_v51 }
0x1458   : > { %4351 = vadd.xlane.f32.xlu0 %v4348_v56 }
0x14dd   : > { %v4350_v16 = vpop.xlane.xlu0 %4349 }
0x14de   : > { %v4360_v29 = vadd.f32 %v5279_v41, %v4350_v16 }
0x14e0   : > { %v4363_v10 = vsel %vm4362_vm6, %v4360_v29, -inf }
0x14e1   : > { %v4352_v31 = vpop.xlane.xlu0 %4351 }
0x14e2   : > { %v4361_v8 = vadd.f32 %v5279_v41, %v4352_v31 }
0x14e4   : > { %v4364_v60 = vsel %vm4362_vm6, %v4361_v8, -inf }
0x14e5   : > { %v4365_v11 = vmax.f32 %v4363_v10, %v4364_v60 }
0x14e7   : > { %v4366_v14 = vrot.slane %v4365_v11, 4 }
0x14e9   : > { %v4367_v19 = vmax.f32 %v4365_v11, %v4366_v14 }
0x14eb   : > { %v4368_v25 = vrot.slane %v4367_v19, 2 }
0x14ed   : > { %v4369_v22 = vmax.f32 %v4367_v19, %v4368_v25 }
0x14ef   : > { %v4370_v13 = vrot.slane %v4369_v22, 1 }
0x14f1   : > { %v4371_v61 = vmax.f32 %v4369_v22, %v4370_v13 }
0x14f3   : > { %v4372_v7 = vsub.f32 %v4360_v29, %v4371_v61  ;;  %v4373_v40 = vsub.f32 %v4361_v8, %v4371_v61 }
0x14f5   : > { %v4374_v18 = vmul.f32 1.442695, %v4372_v7  ;;  %v4376_v23 = vmul.f32 1.442695, %v4373_v40 }
0x14f7   : > { %5914 = vpow2.f32 %v4374_v18 }
0x14f8   : > { %5916 = vpow2.f32 %v4376_v23 }
0x1504   : > { %v5915_v24 = vpop.eup %5914 }
0x1505   : > { %v5917_v26 = vpop.eup %5916  ;;  %v4378_v20 = vsel %vm4362_vm6, %v5915_v24, 0.0 }
0x1506   : > { %v4379_v21 = vsel %vm4362_vm6, %v5917_v26, 0.0 }
0x1507   : > { %v4380_v32 = vadd.f32 %v4379_v21, %v4378_v20 }
0x1509   : > { %v4381_v34 = vrot.slane %v4380_v32, 4 }
0x150b   : > { %v4382_v35 = vadd.f32 %v4381_v34, %v4380_v32 }
0x150d   : > { %v4383_v36 = vrot.slane %v4382_v35, 2 }
0x150f   : > { %v4384_v38 = vadd.f32 %v4383_v36, %v4382_v35 }
0x1511   : > { %v4385_v39 = vrot.slane %v4384_v38, 1 }
0x1513   : > { %v4386_v42 = vadd.f32 %v4385_v39, %v4384_v38 }
0x1515   : > { %5918 = vrcp.f32 %v4386_v42 }
0x1522   : > { %v5919_v1 = vpop.eup %5918 }
0x1523   : > { %v4388_v43 = vmul.f32 %v5919_v1, %v5915_v24  ;;  %v4389_v6 = vmul.f32 %v5919_v1, %v5917_v26 }
0x1525   : > { %4392 = vperm.xlu1 %5912, %v4388_v43  }
0x1529   : > { %4397 = vperm.xlu1 %5912, %v4389_v6  }
0x15a0   : > { %v4393_v9 = vpop.permute.xlu1 %4392 }
0x15a1   : > { %v4400_v44 = vmul.f32 %v4393_v9, %v4332_v4 }
0x15a4   : > { %v4398_v63 = vpop.permute.xlu1 %4397 }
0x15a5   : > { %v4401_v15 = vmul.f32 %v4398_v63, %v4333_v0 }
0x15a7   : > { %v4402_v55 = vadd.f32 %v4401_v15, %v4400_v44 }
0x15a9   : > { %v4403_v46 = vrot.slane %v4402_v55, 4 }
0x15ab   : > { %v4404_v48 = vadd.f32 %v4403_v46, %v4402_v55 }
0x15ad   : > { %v4405_v3 = vrot.slane %v4404_v48, 2 }
0x15af   : > { %v4406_v49 = vadd.f32 %v4405_v3, %v4404_v48 }
0x15b1   : > { %v4407_v33 = vrot.slane %v4406_v49, 1 }
0x15b3   : > { %v4408_v50 = vadd.f32 %v4407_v33, %v4406_v49 }
0x15b5   : > { %4409 = vst [vmem:[%s2037_s17] sm:$0x1] %v4408_v50 }
0x15b6 PF: > { %s8337_s23 = sld [smem:[#allocation100_spill]] }
0x15b7   : > { %s8338_s0 = sld [smem:[#allocation94_spill]] }
0x15b8   : > { %s8339_s5 = sld [smem:[#allocation95_spill]] }
0x15b9   : > { %s8340_s22 = sld [smem:[#allocation103_spill]] }
0x15ba   : > { %s8342_s26 = sld [smem:[#allocation99_spill]] }
0x15bb   : > { %s8343_s28 = sld [smem:[#allocation101_spill]] }
0x15bc   : > { %s121_s2 = sadd.s32 1, %s8337_s23   ;;  %s8341_s23 = sld [smem:[#allocation98_spill]] }
0x15bd   : > { %p118_p0 = scmp.ge.s32.totalorder %s121_s2, 10   ;;  %s8344_s1 = sld [smem:[#allocation102_spill]] }
0x15bf   :  { %120 = sbr.rel (!%p118_p0) target bundleno = 105 (0x69), region = 548 }
0x15c4   :  { %4427 = vsyncpa [#allocation6], 1 }
0x15c5   :  { %4429 = vsyncpa [#allocation6 + $0x1], 1 }
0x15c6   :  { %4430 = vsyncpa [#allocation8], 1 }
0x15c7   :  { %4432 = vsyncpa [#allocation8 + $0x1], 1 }
0x15c8   :  { %4433 = vsyncpa [#allocation11], 1 }
0x15c9   :  { %4435 = vsyncpa [#allocation11 + $0x1], 1 }
0x15ca   :  { %4436 = vsyncpa [#allocation14], 1 }
0x15cb   :  { %4438 = vsyncpa [#allocation14 + $0x1], 1 }
0x15cc   :  { %4439 = vsyncpa [#allocation17], 1 }
0x15cd   :  { %4441 = vsyncpa [#allocation17 + $0x1], 1 }
0x15ce   :  { %4442 = vsyncpa [#allocation20], 1 }
0x15cf   :  { %4444 = vsyncpa [#allocation20 + $0x1], 1 }
0x15d0   :  { %4445 = vsyncpa [#allocation23], 1 }
0x15d1   :  { %4447 = vsyncpa [#allocation23 + $0x1], 1 }
0x15d2   :  { %4448 = vsyncpa [#allocation26], 1 }
0x15d3   :  { %4450 = vsyncpa [#allocation26 + $0x1], 1 }
0x15d4   :  { %4451 = vsyncpa [#allocation29], 1 }
0x15d5   :  { %4453 = vsyncpa [#allocation29 + $0x1], 1 }
0x15d6   :  { %4454 = vsyncpa [#allocation32], 1 }
0x15d7   :  { %4456 = vsyncpa [#allocation32 + $0x1], 1 }
0x15d8   :  { %4457 = vsyncpa [#allocation35], 1 }
0x15d9   :  { %4459 = vsyncpa [#allocation35 + $0x1], 1 }
0x15da   :  { %4460 = vsyncpa [#allocation38], 1 }
0x15db   :  { %4462 = vsyncpa [#allocation38 + $0x1], 1 }
0x15dc   :  { %4463 = vsyncpa [#allocation41], 1 }
0x15dd   :  { %4465 = vsyncpa [#allocation41 + $0x1], 1 }
0x15de   :  { %4466 = vsyncpa [#allocation44], 1 }

</bundles_post_ra>
